<compile_context>
chip_gen: v7x
topology: tpu7x:2x2x1
jax: 0.10.0
libtpu: 0.0.40
codegen_flags: <defaults>
</compile_context>

<pallas_src>
import functools

import jax
import jax.numpy as jnp
import numpy as np
from jax import lax
from jax.experimental import pallas as pl
from jax.experimental.pallas import tpu as pltpu


def _round_up(x, m):
    return ((x + m - 1) // m) * m


# ---------------------------------------------------------------------------
# Pallas kernel: tiled bf16 GEMM, bias + (none | leaky | sigmoid) epilogue,
#                optional fused per-channel sum / sum-of-squares partials.
# ---------------------------------------------------------------------------
def _conv_gemm_kernel(*refs, act, with_stats, acc_in_out):
    if with_stats:
        a_ref, b_ref, bias_ref, o_ref, sum_ref, sq_ref = refs[:6]
        scratch = refs[6:]
    else:
        a_ref, b_ref, bias_ref, o_ref = refs[:4]
        sum_ref = sq_ref = None
        scratch = refs[4:]
    # f32 outputs are accumulated in-place in the resident output block; only
    # bf16 outputs need a separate f32 scratch accumulator.
    acc_ref = o_ref if acc_in_out else scratch[0]

    k = pl.program_id(2)

    @pl.when(k == 0)
    def _():
        acc_ref[...] = jnp.zeros_like(acc_ref)

    # bf16 x bf16 operands, f32 accumulation on the MXU.
    acc_ref[...] += jnp.dot(a_ref[...], b_ref[...],
                            preferred_element_type=jnp.float32)

    @pl.when(k == pl.num_programs(2) - 1)
    def _():
        acc = acc_ref[...]
        if with_stats:
            # Per-channel partial statistics of the pre-bias conv output as
            # (8, tn) group sums (sublane-group reduction on the VPU).  Rows
            # coming from zero padding of A contribute exactly zero, so no
            # masking is needed; the wrapper divides by the true row count and
            # re-adds the bias when folding BatchNorm.
            tm, tn = acc.shape
            grp = acc.reshape(tm // 8, 8, tn)
            sum_ref[...] = jnp.sum(grp, axis=0)
            sq_ref[...] = jnp.sum(grp * grp, axis=0)
        y = acc + bias_ref[...]                    # epilogue stays in f32
        if act == "leaky":
            y = jnp.where(y > 0, y, 0.2 * y)
        elif act == "sigmoid":
            y = jax.nn.sigmoid(y)
        o_ref[...] = y.astype(o_ref.dtype)


def _pick_tiles(M, K, N):
    K_pad = _round_up(K, 128)
    N_pad = _round_up(N, 128)
    # 256-wide output tiles fill the v6e/v7x MXU whenever N allows; v5e
    # (128-wide MXU) is indifferent.
    tn = 256 if N_pad % 256 == 0 else 128
    tm = min(512, _round_up(M, 16))
    M_pad = _round_up(M, tm)
    # Keep at least 2 (i, j) tiles so the ("parallel","parallel") axes can be
    # sharded across v7x's two TensorCores / megacore when the layer is big
    # enough to care.
    if (M_pad // tm) * (N_pad // tn) < 2:
        if N_pad // 128 >= 2:
            tn = 128
        elif tm >= 32:
            tm //= 2
            M_pad = _round_up(M, tm)
    # K tile: cap at 1024 and prefer >=2 K steps so the double-buffered DMA
    # actually overlaps compute.
    tk = K_pad
    for cand in (1024, 512, 256, 128):
        if K_pad % cand == 0 and K_pad // cand >= 2:
            tk = cand
            break
    return tm, tk, tn, M_pad, K_pad, N_pad


def _pallas_conv_gemm(a, b, bias, act, with_stats, out_dtype):
    """a: [M, K] bf16, b: [K, N] bf16, bias: [N] f32
       -> (y [M, N] out_dtype, col_sum [N] f32 | None, col_sumsq [N] f32 | None)."""
    M, K = a.shape
    N = b.shape[1]
    tm, tk, tn, M_pad, K_pad, N_pad = _pick_tiles(M, K, N)
    gm, gn, gk = M_pad // tm, N_pad // tn, K_pad // tk
    acc_in_out = out_dtype == jnp.float32

    if (M_pad, K_pad) != (M, K):
        a = jnp.pad(a, ((0, M_pad - M), (0, K_pad - K)))
    if (K_pad, N_pad) != (K, N):
        b = jnp.pad(b, ((0, K_pad - K), (0, N_pad - N)))
    bias_p = bias if N_pad == N else jnp.pad(bias, (0, N_pad - N))
    bias_p = bias_p.reshape(1, N_pad).astype(jnp.float32)

    out_shape = [jax.ShapeDtypeStruct((M_pad, N_pad), out_dtype)]
    out_specs = [pl.BlockSpec((tm, tn), lambda i, j, k: (i, j))]
    if with_stats:
        out_shape += [jax.ShapeDtypeStruct((gm * 8, N_pad), jnp.float32)] * 2
        out_specs += [pl.BlockSpec((8, tn), lambda i, j, k: (i, j))] * 2
    scratch_shapes = [] if acc_in_out else [pltpu.VMEM((tm, tn), jnp.float32)]

    outs = pl.pallas_call(
        functools.partial(_conv_gemm_kernel, act=act, with_stats=with_stats,
                          acc_in_out=acc_in_out),
        out_shape=tuple(out_shape),
        grid_spec=pltpu.PrefetchScalarGridSpec(
            num_scalar_prefetch=0,
            grid=(gm, gn, gk),
            in_specs=[
                pl.BlockSpec((tm, tk), lambda i, j, k: (i, k)),
                pl.BlockSpec((tk, tn), lambda i, j, k: (k, j)),
                pl.BlockSpec((1, tn), lambda i, j, k: (0, j)),
            ],
            out_specs=out_specs,
            scratch_shapes=scratch_shapes,
        ),
        compiler_params=pltpu.CompilerParams(
            dimension_semantics=("parallel", "parallel", "arbitrary"),
            vmem_limit_bytes=32 * 1024 * 1024,
        ),
    )(a, b, bias_p)

    if with_stats:
        y, sums, sqs = outs
        col_sum = sums.reshape(gm, 8, N_pad).sum(axis=(0, 1))[:N]
        col_sq = sqs.reshape(gm, 8, N_pad).sum(axis=(0, 1))[:N]
        return y[:M, :N], col_sum, col_sq
    y = outs[0]
    return y[:M, :N], None, None


# ---------------------------------------------------------------------------
# Conv / BN wrappers (im2col + BN-fold glue is plain JAX so XLA fuses it)
# ---------------------------------------------------------------------------
def _im2col(x_nhwc, ksize, stride, pad):
    # TODO(synk): fuse im2col into the GEMM pipeline (K grid steps over the 16
    # (kh,kw) taps reading a phase-decomposed activation directly) so the
    # 4x/16x patch blow-up never round-trips HBM; needs element-offset
    # index_maps or a manual-DMA A feed for the +/-1 window shifts.
    x_nhwc = x_nhwc.astype(jnp.bfloat16)           # bf16 patches in HBM
    B, H, W, C = x_nhwc.shape
    xp = jnp.pad(x_nhwc, ((0, 0), (pad, pad), (pad, pad), (0, 0)))
    Ho = (H + 2 * pad - ksize) // stride + 1
    Wo = (W + 2 * pad - ksize) // stride + 1
    cols = []
    for kh in range(ksize):
        for kw in range(ksize):
            cols.append(
                lax.slice(
                    xp,
                    (0, kh, kw, 0),
                    (B, kh + stride * (Ho - 1) + 1,
                     kw + stride * (Wo - 1) + 1, C),
                    (1, stride, stride, 1),
                )
            )
    patches = jnp.stack(cols, axis=3)                     # [B,Ho,Wo,k*k,C]
    patches = patches.reshape(B * Ho * Wo, ksize * ksize * C)
    return patches, (B, Ho, Wo)


def conv2d_pallas(x_nhwc, w2d, bias, ksize, stride, pad, act,
                  with_stats, out_dtype):
    """x_nhwc: [B,H,W,Cin] float/bf16, w2d: [k*k*Cin, Cout] bf16, bias: [Cout] f32."""
    patches, (B, Ho, Wo) = _im2col(x_nhwc, ksize, stride, pad)
    y, col_sum, col_sq = _pallas_conv_gemm(patches, w2d, bias, act,
                                           with_stats, out_dtype)
    Cout = w2d.shape[1]
    return y.reshape(B, Ho, Wo, Cout), col_sum, col_sq, B * Ho * Wo


def _bn_scale_shift(col_sum, col_sq, bias, gamma, beta, count, eps=1e-5):
    # Statistics of the conv output y = acc + bias, derived from f32 sums of
    # acc: mean(y) = mean(acc) + bias, var(y) = var(acc) (biased, training
    # mode).  NOTE: E[x^2]-E[x]^2 can cancel when |mean| >> std; acceptable at
    # the tolerances checked below.
    mean_acc = col_sum / count
    var = jnp.maximum(col_sq / count - mean_acc * mean_acc, 0.0)
    mean = mean_acc + bias
    scale = gamma / jnp.sqrt(var + eps)
    shift = beta - mean * scale
    return scale, shift


# ---------------------------------------------------------------------------
# PatchGANDiscriminator parameters + forward
# ---------------------------------------------------------------------------
def init_params(key, input_channels=4):
    dims = [(64, input_channels), (128, 64), (256, 128), (512, 256), (1, 512)]
    params = {}
    keys = jax.random.split(key, 2 * len(dims))
    for idx, (cout, cin) in enumerate(dims, start=1):
        wk, bk = keys[2 * (idx - 1)], keys[2 * (idx - 1) + 1]
        bound = 1.0 / np.sqrt(cin * 16)     # PyTorch Conv2d default init range
        params[f"w{idx}"] = jax.random.uniform(
            wk, (cout, cin, 4, 4), jnp.float32, -bound, bound)
        params[f"b{idx}"] = jax.random.uniform(bk, (cout,), jnp.float32,
                                               -bound, bound)
    for idx, c in zip((2, 3, 4), (128, 256, 512)):
        params[f"gamma{idx}"] = jnp.ones((c,), jnp.float32)
        params[f"beta{idx}"] = jnp.zeros((c,), jnp.float32)
    return params


def prepare_params(params):
    """Hoist the per-layer weight transpose/reshape/bf16 cast out of the
    per-forward path (run once per parameter set)."""
    prepared = {}
    for idx in range(1, 6):
        w = params[f"w{idx}"]                              # [Cout, Cin, k, k]
        cout, cin, kh, kw = w.shape
        w2d = jnp.transpose(w, (2, 3, 1, 0)).reshape(kh * kw * cin, cout)
        prepared[f"w{idx}"] = w2d.astype(jnp.bfloat16)     # MXU operand dtype
        prepared[f"b{idx}"] = params[f"b{idx}"].astype(jnp.float32)
    for idx in (2, 3, 4):
        prepared[f"gamma{idx}"] = params[f"gamma{idx}"].astype(jnp.float32)
        prepared[f"beta{idx}"] = params[f"beta{idx}"].astype(jnp.float32)
    return prepared


def patchgan_discriminator(gray, color, fwd_params):
    x = jnp.concatenate([gray, color], axis=1)             # NCHW channel concat
    x = jnp.transpose(x, (0, 2, 3, 1))                     # -> NHWC
    # block 1: conv + LeakyReLU (no normalization); emit bf16 directly since
    # the only consumer is the next layer's bf16 im2col patches.
    x, _, _, _ = conv2d_pallas(x, fwd_params["w1"], fwd_params["b1"],
                               4, 2, 1, act="leaky",
                               with_stats=False, out_dtype=jnp.bfloat16)
    # blocks 2-4: conv (f32 + fused stats) -> BatchNorm fold -> LeakyReLU.
    # The scale/shift + LeakyReLU + bf16 cast is plain jnp so XLA fuses it into
    # the next conv's im2col pad/slice producer (no extra HBM round trip).
    for idx in (2, 3, 4):
        y, cs, cq, cnt = conv2d_pallas(x, fwd_params[f"w{idx}"],
                                       fwd_params[f"b{idx}"], 4, 2, 1,
                                       act="none", with_stats=True,
                                       out_dtype=jnp.float32)
        scale, shift = _bn_scale_shift(cs, cq, fwd_params[f"b{idx}"],
                                       fwd_params[f"gamma{idx}"],
                                       fwd_params[f"beta{idx}"], cnt)
        z = y * scale + shift
        x = jnp.where(z > 0, z, 0.2 * z)
    # final conv (k=4, s=1, p=1) + sigmoid; single output channel.
    # TODO(synk): for a large final layer, a VPU dot-reduce would avoid the
    # 128x over-wide padded MXU pass for this 1-channel conv.
    x, _, _, _ = conv2d_pallas(x, fwd_params["w5"], fwd_params["b5"],
                               4, 1, 1, act="sigmoid",
                               with_stats=False, out_dtype=jnp.float32)
    return jnp.transpose(x, (0, 3, 1, 2))                  # -> NCHW


# ---------------------------------------------------------------------------
# Pure-JAX reference (lax.conv) for correctness checks
# ---------------------------------------------------------------------------
def _reference(gray, color, params, eps=1e-5, operand_dtype=jnp.float32):
    def conv(x, w, b, stride, pad):
        y = lax.conv_general_dilated(
            x.astype(operand_dtype), w.astype(operand_dtype),
            (stride, stride), ((pad, pad), (pad, pad)),
            dimension_numbers=("NCHW", "OIHW", "NCHW"),
            preferred_element_type=jnp.float32,
            precision=lax.Precision.HIGHEST,
        )
        return y + b.reshape(1, -1, 1, 1)

    def lrelu(v):
        return jnp.where(v > 0, v, 0.2 * v)

    x = jnp.concatenate([gray, color], axis=1)
    x = lrelu(conv(x, params["w1"], params["b1"], 2, 1))
    for idx in (2, 3, 4):
        x = conv(x, params[f"w{idx}"], params[f"b{idx}"], 2, 1)
        mean = jnp.mean(x, axis=(0, 2, 3), keepdims=True)
        var = jnp.mean(jnp.square(x - mean), axis=(0, 2, 3), keepdims=True)
        x = (x - mean) / jnp.sqrt(var + eps)
        x = (x * params[f"gamma{idx}"].reshape(1, -1, 1, 1)
             + params[f"beta{idx}"].reshape(1, -1, 1, 1))
        x = lrelu(x)
    x = conv(x, params["w5"], params["b5"], 1, 1)
    return jax.nn.sigmoid(x)


if __name__ == "__main__":
    key = jax.random.PRNGKey(0)
    kp, kg, kc = jax.random.split(key, 3)
    params = init_params(kp, input_channels=4)
    fwd_params = prepare_params(params)

    # spatial=32: four stride-2 convs -> 2x2, final k=4 s=1 p=1 conv -> 1x1
    # (spatial<32 would make the final conv's output size non-positive).
    B, H, W = 2, 32, 32
    gray = jax.random.normal(kg, (B, 1, H, W), jnp.float32)
    color = jax.random.normal(kc, (B, 3, H, W), jnp.float32)

    out = jax.jit(patchgan_discriminator)(gray, color, fwd_params)
    out = jax.block_until_ready(out)
    assert out.shape == (B, 1, 1, 1), out.shape

    # Tight check vs a matched-precision (bf16 operand / f32 accumulate)
    # XLA reference, loose sanity check vs the full-f32 reference.
    ref_bf16 = _reference(gray, color, params, operand_dtype=jnp.bfloat16)
    np.testing.assert_allclose(np.asarray(out), np.asarray(ref_bf16),
                               atol=5e-3, rtol=5e-3)
    ref_f32 = _reference(gray, color, params, operand_dtype=jnp.float32)
    np.testing.assert_allclose(np.asarray(out), np.asarray(ref_f32),
                               atol=2e-2, rtol=2e-2)

    print("KERNEL_OK")
</pallas_src>

<mosaic_0001>
module attributes {stable_mosaic.version = 11 : i64} {
  func.func @_conv_gemm_kernel(%arg0: i32, %arg1: i32, %arg2: i32, %arg3: memref<256x128xbf16, #tpu.memory_space<vmem>>, %arg4: memref<128x128xbf16, #tpu.memory_space<vmem>>, %arg5: memref<1x128xf32, #tpu.memory_space<vmem>>, %arg6: memref<256x128xbf16, #tpu.memory_space<vmem>>, %arg7: memref<256x128xf32, #tpu.memory_space<vmem>>) attributes {dimension_semantics = [#tpu.dimension_semantics<parallel>, #tpu.dimension_semantics<parallel>, #tpu.dimension_semantics<arbitrary>], iteration_bounds = array<i64: 2, 1, 1>, scalar_prefetch = 0 : i64, scratch_operands = 1 : i64, tpu.core_type = #tpu.core_type<tc>, window_params = [{transform_indices = @transform_0, window_bounds = array<i64: 256, 128>}, {transform_indices = @transform_1, window_bounds = array<i64: 128, 128>}, {transform_indices = @transform_2, window_bounds = array<i64: 1, 128>}, {transform_indices = @transform_3, window_bounds = array<i64: 256, 128>}]} {
    %c0_i32 = arith.constant 0 : i32
    %0 = arith.cmpi eq, %arg2, %c0_i32 : i32
    %1 = arith.extui %0 : i1 to i32
    %c0_i32_0 = arith.constant 0 : i32
    %2 = arith.cmpi ne, %1, %c0_i32_0 : i32
    scf.if %2 {
      %cst_10 = arith.constant 0.000000e+00 : f32
      %12 = vector.broadcast %cst_10 : f32 to vector<256x128xf32>
      %c0_11 = arith.constant 0 : index
      %c0_12 = arith.constant 0 : index
      %13 = vector.load %arg7[%c0_11, %c0_12] : memref<256x128xf32, #tpu.memory_space<vmem>>, vector<256x128xf32>
      tpu.vector_store %arg7[%c0_11, %c0_12], %12 {strides = array<i32>} : memref<256x128xf32, #tpu.memory_space<vmem>>, vector<256x128xf32>,
    } else {
    }
    %c0 = arith.constant 0 : index
    %c0_1 = arith.constant 0 : index
    %3 = vector.load %arg7[%c0, %c0_1] : memref<256x128xf32, #tpu.memory_space<vmem>>, vector<256x128xf32>
    %c0_2 = arith.constant 0 : index
    %c0_3 = arith.constant 0 : index
    %4 = vector.load %arg3[%c0_2, %c0_3] : memref<256x128xbf16, #tpu.memory_space<vmem>>, vector<256x128xbf16>
    %c0_4 = arith.constant 0 : index
    %c0_5 = arith.constant 0 : index
    %5 = vector.load %arg4[%c0_4, %c0_5] : memref<128x128xbf16, #tpu.memory_space<vmem>>, vector<128x128xbf16>
    %cst = arith.constant dense<0.000000e+00> : vector<256x128xf32>
    %6 = tpu.matmul %4, %5, %cst {dimension_numbers = #tpu.dot_dimension_numbers<[1], [0], [0], [1], [0, 0, 1, 1], [], []>} : vector<256x128xbf16>, vector<128x128xbf16>, vector<256x128xf32> -> vector<256x128xf32>
    %7 = arith.addf %3, %6 : vector<256x128xf32>
    %c0_6 = arith.constant 0 : index
    %c0_7 = arith.constant 0 : index
    %8 = vector.load %arg7[%c0_6, %c0_7] : memref<256x128xf32, #tpu.memory_space<vmem>>, vector<256x128xf32>
    tpu.vector_store %arg7[%c0_6, %c0_7], %7 {strides = array<i32>} : memref<256x128xf32, #tpu.memory_space<vmem>>, vector<256x128xf32>,
    %c0_i32_8 = arith.constant 0 : i32
    %9 = arith.cmpi eq, %arg2, %c0_i32_8 : i32
    %10 = arith.extui %9 : i1 to i32
    %c0_i32_9 = arith.constant 0 : i32
    %11 = arith.cmpi ne, %10, %c0_i32_9 : i32
    scf.if %11 {
      %c0_10 = arith.constant 0 : index
      %c0_11 = arith.constant 0 : index
      %12 = vector.load %arg7[%c0_10, %c0_11] : memref<256x128xf32, #tpu.memory_space<vmem>>, vector<256x128xf32>
      %c0_12 = arith.constant 0 : index
      %c0_13 = arith.constant 0 : index
      %13 = vector.load %arg5[%c0_12, %c0_13] : memref<1x128xf32, #tpu.memory_space<vmem>>, vector<1x128xf32>
      %14 = vector.broadcast %13 : vector<1x128xf32> to vector<256x128xf32>
      %15 = arith.addf %12, %14 : vector<256x128xf32>
      %cst_14 = arith.constant 0.000000e+00 : f32
      %16 = vector.broadcast %cst_14 : f32 to vector<256x128xf32>
      %17 = arith.cmpf ogt, %15, %16 : vector<256x128xf32>
      %cst_15 = arith.constant 2.000000e-01 : f32
      %18 = vector.broadcast %cst_15 : f32 to vector<256x128xf32>
      %19 = arith.mulf %18, %15 : vector<256x128xf32>
      %20 = arith.select %17, %15, %19 : vector<256x128xi1>, vector<256x128xf32>
      %21 = arith.truncf %20 : vector<256x128xf32> to vector<256x128xbf16>
      %c0_16 = arith.constant 0 : index
      %c0_17 = arith.constant 0 : index
      %22 = vector.load %arg6[%c0_16, %c0_17] : memref<256x128xbf16, #tpu.memory_space<vmem>>, vector<256x128xbf16>
      tpu.vector_store %arg6[%c0_16, %c0_17], %21 {strides = array<i32>} : memref<256x128xbf16, #tpu.memory_space<vmem>>, vector<256x128xbf16>,
    } else {
    }
    return
  }
  func.func @transform_0(%arg0: i32, %arg1: i32, %arg2: i32) -> (i32, i32) {
    %c0_i32 = arith.constant 0 : i32
    return %arg0, %arg2 : i32, i32
  }
  func.func @transform_1(%arg0: i32, %arg1: i32, %arg2: i32) -> (i32, i32) {
    %c0_i32 = arith.constant 0 : i32
    return %arg2, %arg1 : i32, i32
  }
  func.func @transform_2(%arg0: i32, %arg1: i32, %arg2: i32) -> (i32, i32) {
    %c0_i32 = arith.constant 0 : i32
    %c0_i32_0 = arith.constant 0 : i32
    return %c0_i32, %arg1 : i32, i32
  }
  func.func @transform_3(%arg0: i32, %arg1: i32, %arg2: i32) -> (i32, i32) {
    %c0_i32 = arith.constant 0 : i32
    return %arg0, %arg1 : i32, i32
  }
}

module attributes {stable_mosaic.version = 11 : i64} {
  func.func @_conv_gemm_kernel(%arg0: i32, %arg1: i32, %arg2: i32, %arg3: memref<64x512xbf16, #tpu.memory_space<vmem>>, %arg4: memref<512x128xbf16, #tpu.memory_space<vmem>>, %arg5: memref<1x128xf32, #tpu.memory_space<vmem>>, %arg6: memref<64x128xf32, #tpu.memory_space<vmem>>, %arg7: memref<8x128xf32, #tpu.memory_space<vmem>>, %arg8: memref<8x128xf32, #tpu.memory_space<vmem>>) attributes {dimension_semantics = [#tpu.dimension_semantics<parallel>, #tpu.dimension_semantics<parallel>, #tpu.dimension_semantics<arbitrary>], iteration_bounds = array<i64: 2, 1, 2>, scalar_prefetch = 0 : i64, scratch_operands = 0 : i64, tpu.core_type = #tpu.core_type<tc>, window_params = [{transform_indices = @transform_0, window_bounds = array<i64: 64, 512>}, {transform_indices = @transform_1, window_bounds = array<i64: 512, 128>}, {transform_indices = @transform_2, window_bounds = array<i64: 1, 128>}, {transform_indices = @transform_3, window_bounds = array<i64: 64, 128>}, {transform_indices = @transform_4, window_bounds = array<i64: 8, 128>}, {transform_indices = @transform_5, window_bounds = array<i64: 8, 128>}]} {
    %c0_i32 = arith.constant 0 : i32
    %0 = arith.cmpi eq, %arg2, %c0_i32 : i32
    %1 = arith.extui %0 : i1 to i32
    %c0_i32_0 = arith.constant 0 : i32
    %2 = arith.cmpi ne, %1, %c0_i32_0 : i32
    scf.if %2 {
      %cst_9 = arith.constant 0.000000e+00 : f32
      %12 = vector.broadcast %cst_9 : f32 to vector<64x128xf32>
      %c0_10 = arith.constant 0 : index
      %c0_11 = arith.constant 0 : index
      %13 = vector.load %arg6[%c0_10, %c0_11] : memref<64x128xf32, #tpu.memory_space<vmem>>, vector<64x128xf32>
      tpu.vector_store %arg6[%c0_10, %c0_11], %12 {strides = array<i32>} : memref<64x128xf32, #tpu.memory_space<vmem>>, vector<64x128xf32>,
    } else {
    }
    %c0 = arith.constant 0 : index
    %c0_1 = arith.constant 0 : index
    %3 = vector.load %arg6[%c0, %c0_1] : memref<64x128xf32, #tpu.memory_space<vmem>>, vector<64x128xf32>
    %c0_2 = arith.constant 0 : index
    %c0_3 = arith.constant 0 : index
    %4 = vector.load %arg3[%c0_2, %c0_3] : memref<64x512xbf16, #tpu.memory_space<vmem>>, vector<64x512xbf16>
    %c0_4 = arith.constant 0 : index
    %c0_5 = arith.constant 0 : index
    %5 = vector.load %arg4[%c0_4, %c0_5] : memref<512x128xbf16, #tpu.memory_space<vmem>>, vector<512x128xbf16>
    %cst = arith.constant dense<0.000000e+00> : vector<64x128xf32>
    %6 = tpu.matmul %4, %5, %cst {dimension_numbers = #tpu.dot_dimension_numbers<[1], [0], [0], [1], [0, 0, 1, 1], [], []>} : vector<64x512xbf16>, vector<512x128xbf16>, vector<64x128xf32> -> vector<64x128xf32>
    %7 = arith.addf %3, %6 : vector<64x128xf32>
    %c0_6 = arith.constant 0 : index
    %c0_7 = arith.constant 0 : index
    %8 = vector.load %arg6[%c0_6, %c0_7] : memref<64x128xf32, #tpu.memory_space<vmem>>, vector<64x128xf32>
    tpu.vector_store %arg6[%c0_6, %c0_7], %7 {strides = array<i32>} : memref<64x128xf32, #tpu.memory_space<vmem>>, vector<64x128xf32>,
    %c1_i32 = arith.constant 1 : i32
    %9 = arith.cmpi eq, %arg2, %c1_i32 : i32
    %10 = arith.extui %9 : i1 to i32
    %c0_i32_8 = arith.constant 0 : i32
    %11 = arith.cmpi ne, %10, %c0_i32_8 : i32
    scf.if %11 {
      %c0_9 = arith.constant 0 : index
      %c0_10 = arith.constant 0 : index
      %12 = vector.load %arg6[%c0_9, %c0_10] : memref<64x128xf32, #tpu.memory_space<vmem>>, vector<64x128xf32>
      %13 = vector.shape_cast %12 : vector<64x128xf32> to vector<8x8x128xf32>
      %cst_11 = arith.constant dense<0.000000e+00> : vector<8x128xf32>
      %14 = vector.multi_reduction <add>, %13, %cst_11 [0] : vector<8x8x128xf32> to vector<8x128xf32>
      %c0_12 = arith.constant 0 : index
      %c0_13 = arith.constant 0 : index
      %15 = vector.load %arg7[%c0_12, %c0_13] : memref<8x128xf32, #tpu.memory_space<vmem>>, vector<8x128xf32>
      tpu.vector_store %arg7[%c0_12, %c0_13], %14 {strides = array<i32>} : memref<8x128xf32, #tpu.memory_space<vmem>>, vector<8x128xf32>,
      %16 = arith.mulf %13, %13 : vector<8x8x128xf32>
      %cst_14 = arith.constant dense<0.000000e+00> : vector<8x128xf32>
      %17 = vector.multi_reduction <add>, %16, %cst_14 [0] : vector<8x8x128xf32> to vector<8x128xf32>
      %c0_15 = arith.constant 0 : index
      %c0_16 = arith.constant 0 : index
      %18 = vector.load %arg8[%c0_15, %c0_16] : memref<8x128xf32, #tpu.memory_space<vmem>>, vector<8x128xf32>
      tpu.vector_store %arg8[%c0_15, %c0_16], %17 {strides = array<i32>} : memref<8x128xf32, #tpu.memory_space<vmem>>, vector<8x128xf32>,
      %c0_17 = arith.constant 0 : index
      %c0_18 = arith.constant 0 : index
      %19 = vector.load %arg5[%c0_17, %c0_18] : memref<1x128xf32, #tpu.memory_space<vmem>>, vector<1x128xf32>
      %20 = vector.broadcast %19 : vector<1x128xf32> to vector<64x128xf32>
      %21 = arith.addf %12, %20 : vector<64x128xf32>
      %c0_19 = arith.constant 0 : index
      %c0_20 = arith.constant 0 : index
      %22 = vector.load %arg6[%c0_19, %c0_20] : memref<64x128xf32, #tpu.memory_space<vmem>>, vector<64x128xf32>
      tpu.vector_store %arg6[%c0_19, %c0_20], %21 {strides = array<i32>} : memref<64x128xf32, #tpu.memory_space<vmem>>, vector<64x128xf32>,
    } else {
    }
    return
  }
  func.func @transform_0(%arg0: i32, %arg1: i32, %arg2: i32) -> (i32, i32) {
    %c0_i32 = arith.constant 0 : i32
    return %arg0, %arg2 : i32, i32
  }
  func.func @transform_1(%arg0: i32, %arg1: i32, %arg2: i32) -> (i32, i32) {
    %c0_i32 = arith.constant 0 : i32
    return %arg2, %arg1 : i32, i32
  }
  func.func @transform_2(%arg0: i32, %arg1: i32, %arg2: i32) -> (i32, i32) {
    %c0_i32 = arith.constant 0 : i32
    %c0_i32_0 = arith.constant 0 : i32
    return %c0_i32, %arg1 : i32, i32
  }
  func.func @transform_3(%arg0: i32, %arg1: i32, %arg2: i32) -> (i32, i32) {
    %c0_i32 = arith.constant 0 : i32
    return %arg0, %arg1 : i32, i32
  }
  func.func @transform_4(%arg0: i32, %arg1: i32, %arg2: i32) -> (i32, i32) {
    %c0_i32 = arith.constant 0 : i32
    return %arg0, %arg1 : i32, i32
  }
  func.func @transform_5(%arg0: i32, %arg1: i32, %arg2: i32) -> (i32, i32) {
    %c0_i32 = arith.constant 0 : i32
    return %arg0, %arg1 : i32, i32
  }
}

module attributes {stable_mosaic.version = 11 : i64} {
  func.func @_conv_gemm_kernel(%arg0: i32, %arg1: i32, %arg2: i32, %arg3: memref<32x1024xbf16, #tpu.memory_space<vmem>>, %arg4: memref<1024x128xbf16, #tpu.memory_space<vmem>>, %arg5: memref<1x128xf32, #tpu.memory_space<vmem>>, %arg6: memref<32x128xf32, #tpu.memory_space<vmem>>, %arg7: memref<8x128xf32, #tpu.memory_space<vmem>>, %arg8: memref<8x128xf32, #tpu.memory_space<vmem>>) attributes {dimension_semantics = [#tpu.dimension_semantics<parallel>, #tpu.dimension_semantics<parallel>, #tpu.dimension_semantics<arbitrary>], iteration_bounds = array<i64: 1, 2, 2>, scalar_prefetch = 0 : i64, scratch_operands = 0 : i64, tpu.core_type = #tpu.core_type<tc>, window_params = [{transform_indices = @transform_0, window_bounds = array<i64: 32, 1024>}, {transform_indices = @transform_1, window_bounds = array<i64: 1024, 128>}, {transform_indices = @transform_2, window_bounds = array<i64: 1, 128>}, {transform_indices = @transform_3, window_bounds = array<i64: 32, 128>}, {transform_indices = @transform_4, window_bounds = array<i64: 8, 128>}, {transform_indices = @transform_5, window_bounds = array<i64: 8, 128>}]} {
    %c0_i32 = arith.constant 0 : i32
    %0 = arith.cmpi eq, %arg2, %c0_i32 : i32
    %1 = arith.extui %0 : i1 to i32
    %c0_i32_0 = arith.constant 0 : i32
    %2 = arith.cmpi ne, %1, %c0_i32_0 : i32
    scf.if %2 {
      %cst_9 = arith.constant 0.000000e+00 : f32
      %12 = vector.broadcast %cst_9 : f32 to vector<32x128xf32>
      %c0_10 = arith.constant 0 : index
      %c0_11 = arith.constant 0 : index
      %13 = vector.load %arg6[%c0_10, %c0_11] : memref<32x128xf32, #tpu.memory_space<vmem>>, vector<32x128xf32>
      tpu.vector_store %arg6[%c0_10, %c0_11], %12 {strides = array<i32>} : memref<32x128xf32, #tpu.memory_space<vmem>>, vector<32x128xf32>,
    } else {
    }
    %c0 = arith.constant 0 : index
    %c0_1 = arith.constant 0 : index
    %3 = vector.load %arg6[%c0, %c0_1] : memref<32x128xf32, #tpu.memory_space<vmem>>, vector<32x128xf32>
    %c0_2 = arith.constant 0 : index
    %c0_3 = arith.constant 0 : index
    %4 = vector.load %arg3[%c0_2, %c0_3] : memref<32x1024xbf16, #tpu.memory_space<vmem>>, vector<32x1024xbf16>
    %c0_4 = arith.constant 0 : index
    %c0_5 = arith.constant 0 : index
    %5 = vector.load %arg4[%c0_4, %c0_5] : memref<1024x128xbf16, #tpu.memory_space<vmem>>, vector<1024x128xbf16>
    %cst = arith.constant dense<0.000000e+00> : vector<32x128xf32>
    %6 = tpu.matmul %4, %5, %cst {dimension_numbers = #tpu.dot_dimension_numbers<[1], [0], [0], [1], [0, 0, 1, 1], [], []>} : vector<32x1024xbf16>, vector<1024x128xbf16>, vector<32x128xf32> -> vector<32x128xf32>
    %7 = arith.addf %3, %6 : vector<32x128xf32>
    %c0_6 = arith.constant 0 : index
    %c0_7 = arith.constant 0 : index
    %8 = vector.load %arg6[%c0_6, %c0_7] : memref<32x128xf32, #tpu.memory_space<vmem>>, vector<32x128xf32>
    tpu.vector_store %arg6[%c0_6, %c0_7], %7 {strides = array<i32>} : memref<32x128xf32, #tpu.memory_space<vmem>>, vector<32x128xf32>,
    %c1_i32 = arith.constant 1 : i32
    %9 = arith.cmpi eq, %arg2, %c1_i32 : i32
    %10 = arith.extui %9 : i1 to i32
    %c0_i32_8 = arith.constant 0 : i32
    %11 = arith.cmpi ne, %10, %c0_i32_8 : i32
    scf.if %11 {
      %c0_9 = arith.constant 0 : index
      %c0_10 = arith.constant 0 : index
      %12 = vector.load %arg6[%c0_9, %c0_10] : memref<32x128xf32, #tpu.memory_space<vmem>>, vector<32x128xf32>
      %13 = vector.shape_cast %12 : vector<32x128xf32> to vector<4x8x128xf32>
      %cst_11 = arith.constant dense<0.000000e+00> : vector<8x128xf32>
      %14 = vector.multi_reduction <add>, %13, %cst_11 [0] : vector<4x8x128xf32> to vector<8x128xf32>
      %c0_12 = arith.constant 0 : index
      %c0_13 = arith.constant 0 : index
      %15 = vector.load %arg7[%c0_12, %c0_13] : memref<8x128xf32, #tpu.memory_space<vmem>>, vector<8x128xf32>
      tpu.vector_store %arg7[%c0_12, %c0_13], %14 {strides = array<i32>} : memref<8x128xf32, #tpu.memory_space<vmem>>, vector<8x128xf32>,
      %16 = arith.mulf %13, %13 : vector<4x8x128xf32>
      %cst_14 = arith.constant dense<0.000000e+00> : vector<8x128xf32>
      %17 = vector.multi_reduction <add>, %16, %cst_14 [0] : vector<4x8x128xf32> to vector<8x128xf32>
      %c0_15 = arith.constant 0 : index
      %c0_16 = arith.constant 0 : index
      %18 = vector.load %arg8[%c0_15, %c0_16] : memref<8x128xf32, #tpu.memory_space<vmem>>, vector<8x128xf32>
      tpu.vector_store %arg8[%c0_15, %c0_16], %17 {strides = array<i32>} : memref<8x128xf32, #tpu.memory_space<vmem>>, vector<8x128xf32>,
      %c0_17 = arith.constant 0 : index
      %c0_18 = arith.constant 0 : index
      %19 = vector.load %arg5[%c0_17, %c0_18] : memref<1x128xf32, #tpu.memory_space<vmem>>, vector<1x128xf32>
      %20 = vector.broadcast %19 : vector<1x128xf32> to vector<32x128xf32>
      %21 = arith.addf %12, %20 : vector<32x128xf32>
      %c0_19 = arith.constant 0 : index
      %c0_20 = arith.constant 0 : index
      %22 = vector.load %arg6[%c0_19, %c0_20] : memref<32x128xf32, #tpu.memory_space<vmem>>, vector<32x128xf32>
      tpu.vector_store %arg6[%c0_19, %c0_20], %21 {strides = array<i32>} : memref<32x128xf32, #tpu.memory_space<vmem>>, vector<32x128xf32>,
    } else {
    }
    return
  }
  func.func @transform_0(%arg0: i32, %arg1: i32, %arg2: i32) -> (i32, i32) {
    %c0_i32 = arith.constant 0 : i32
    return %arg0, %arg2 : i32, i32
  }
  func.func @transform_1(%arg0: i32, %arg1: i32, %arg2: i32) -> (i32, i32) {
    %c0_i32 = arith.constant 0 : i32
    return %arg2, %arg1 : i32, i32
  }
  func.func @transform_2(%arg0: i32, %arg1: i32, %arg2: i32) -> (i32, i32) {
    %c0_i32 = arith.constant 0 : i32
    %c0_i32_0 = arith.constant 0 : i32
    return %c0_i32, %arg1 : i32, i32
  }
  func.func @transform_3(%arg0: i32, %arg1: i32, %arg2: i32) -> (i32, i32) {
    %c0_i32 = arith.constant 0 : i32
    return %arg0, %arg1 : i32, i32
  }
  func.func @transform_4(%arg0: i32, %arg1: i32, %arg2: i32) -> (i32, i32) {
    %c0_i32 = arith.constant 0 : i32
    return %arg0, %arg1 : i32, i32
  }
  func.func @transform_5(%arg0: i32, %arg1: i32, %arg2: i32) -> (i32, i32) {
    %c0_i32 = arith.constant 0 : i32
    return %arg0, %arg1 : i32, i32
  }
}

module attributes {stable_mosaic.version = 11 : i64} {
  func.func @_conv_gemm_kernel(%arg0: i32, %arg1: i32, %arg2: i32, %arg3: memref<16x1024xbf16, #tpu.memory_space<vmem>>, %arg4: memref<1024x256xbf16, #tpu.memory_space<vmem>>, %arg5: memref<1x256xf32, #tpu.memory_space<vmem>>, %arg6: memref<16x256xf32, #tpu.memory_space<vmem>>, %arg7: memref<8x256xf32, #tpu.memory_space<vmem>>, %arg8: memref<8x256xf32, #tpu.memory_space<vmem>>) attributes {dimension_semantics = [#tpu.dimension_semantics<parallel>, #tpu.dimension_semantics<parallel>, #tpu.dimension_semantics<arbitrary>], iteration_bounds = array<i64: 1, 2, 4>, scalar_prefetch = 0 : i64, scratch_operands = 0 : i64, tpu.core_type = #tpu.core_type<tc>, window_params = [{transform_indices = @transform_0, window_bounds = array<i64: 16, 1024>}, {transform_indices = @transform_1, window_bounds = array<i64: 1024, 256>}, {transform_indices = @transform_2, window_bounds = array<i64: 1, 256>}, {transform_indices = @transform_3, window_bounds = array<i64: 16, 256>}, {transform_indices = @transform_4, window_bounds = array<i64: 8, 256>}, {transform_indices = @transform_5, window_bounds = array<i64: 8, 256>}]} {
    %c0_i32 = arith.constant 0 : i32
    %0 = arith.cmpi eq, %arg2, %c0_i32 : i32
    %1 = arith.extui %0 : i1 to i32
    %c0_i32_0 = arith.constant 0 : i32
    %2 = arith.cmpi ne, %1, %c0_i32_0 : i32
    scf.if %2 {
      %cst_9 = arith.constant 0.000000e+00 : f32
      %12 = vector.broadcast %cst_9 : f32 to vector<16x256xf32>
      %c0_10 = arith.constant 0 : index
      %c0_11 = arith.constant 0 : index
      %13 = vector.load %arg6[%c0_10, %c0_11] : memref<16x256xf32, #tpu.memory_space<vmem>>, vector<16x256xf32>
      tpu.vector_store %arg6[%c0_10, %c0_11], %12 {strides = array<i32>} : memref<16x256xf32, #tpu.memory_space<vmem>>, vector<16x256xf32>,
    } else {
    }
    %c0 = arith.constant 0 : index
    %c0_1 = arith.constant 0 : index
    %3 = vector.load %arg6[%c0, %c0_1] : memref<16x256xf32, #tpu.memory_space<vmem>>, vector<16x256xf32>
    %c0_2 = arith.constant 0 : index
    %c0_3 = arith.constant 0 : index
    %4 = vector.load %arg3[%c0_2, %c0_3] : memref<16x1024xbf16, #tpu.memory_space<vmem>>, vector<16x1024xbf16>
    %c0_4 = arith.constant 0 : index
    %c0_5 = arith.constant 0 : index
    %5 = vector.load %arg4[%c0_4, %c0_5] : memref<1024x256xbf16, #tpu.memory_space<vmem>>, vector<1024x256xbf16>
    %cst = arith.constant dense<0.000000e+00> : vector<16x256xf32>
    %6 = tpu.matmul %4, %5, %cst {dimension_numbers = #tpu.dot_dimension_numbers<[1], [0], [0], [1], [0, 0, 1, 1], [], []>} : vector<16x1024xbf16>, vector<1024x256xbf16>, vector<16x256xf32> -> vector<16x256xf32>
    %7 = arith.addf %3, %6 : vector<16x256xf32>
    %c0_6 = arith.constant 0 : index
    %c0_7 = arith.constant 0 : index
    %8 = vector.load %arg6[%c0_6, %c0_7] : memref<16x256xf32, #tpu.memory_space<vmem>>, vector<16x256xf32>
    tpu.vector_store %arg6[%c0_6, %c0_7], %7 {strides = array<i32>} : memref<16x256xf32, #tpu.memory_space<vmem>>, vector<16x256xf32>,
    %c3_i32 = arith.constant 3 : i32
    %9 = arith.cmpi eq, %arg2, %c3_i32 : i32
    %10 = arith.extui %9 : i1 to i32
    %c0_i32_8 = arith.constant 0 : i32
    %11 = arith.cmpi ne, %10, %c0_i32_8 : i32
    scf.if %11 {
      %c0_9 = arith.constant 0 : index
      %c0_10 = arith.constant 0 : index
      %12 = vector.load %arg6[%c0_9, %c0_10] : memref<16x256xf32, #tpu.memory_space<vmem>>, vector<16x256xf32>
      %13 = vector.shape_cast %12 : vector<16x256xf32> to vector<2x8x256xf32>
      %cst_11 = arith.constant dense<0.000000e+00> : vector<8x256xf32>
      %14 = vector.multi_reduction <add>, %13, %cst_11 [0] : vector<2x8x256xf32> to vector<8x256xf32>
      %c0_12 = arith.constant 0 : index
      %c0_13 = arith.constant 0 : index
      %15 = vector.load %arg7[%c0_12, %c0_13] : memref<8x256xf32, #tpu.memory_space<vmem>>, vector<8x256xf32>
      tpu.vector_store %arg7[%c0_12, %c0_13], %14 {strides = array<i32>} : memref<8x256xf32, #tpu.memory_space<vmem>>, vector<8x256xf32>,
      %16 = arith.mulf %13, %13 : vector<2x8x256xf32>
      %cst_14 = arith.constant dense<0.000000e+00> : vector<8x256xf32>
      %17 = vector.multi_reduction <add>, %16, %cst_14 [0] : vector<2x8x256xf32> to vector<8x256xf32>
      %c0_15 = arith.constant 0 : index
      %c0_16 = arith.constant 0 : index
      %18 = vector.load %arg8[%c0_15, %c0_16] : memref<8x256xf32, #tpu.memory_space<vmem>>, vector<8x256xf32>
      tpu.vector_store %arg8[%c0_15, %c0_16], %17 {strides = array<i32>} : memref<8x256xf32, #tpu.memory_space<vmem>>, vector<8x256xf32>,
      %c0_17 = arith.constant 0 : index
      %c0_18 = arith.constant 0 : index
      %19 = vector.load %arg5[%c0_17, %c0_18] : memref<1x256xf32, #tpu.memory_space<vmem>>, vector<1x256xf32>
      %20 = vector.broadcast %19 : vector<1x256xf32> to vector<16x256xf32>
      %21 = arith.addf %12, %20 : vector<16x256xf32>
      %c0_19 = arith.constant 0 : index
      %c0_20 = arith.constant 0 : index
      %22 = vector.load %arg6[%c0_19, %c0_20] : memref<16x256xf32, #tpu.memory_space<vmem>>, vector<16x256xf32>
      tpu.vector_store %arg6[%c0_19, %c0_20], %21 {strides = array<i32>} : memref<16x256xf32, #tpu.memory_space<vmem>>, vector<16x256xf32>,
    } else {
    }
    return
  }
  func.func @transform_0(%arg0: i32, %arg1: i32, %arg2: i32) -> (i32, i32) {
    %c0_i32 = arith.constant 0 : i32
    return %arg0, %arg2 : i32, i32
  }
  func.func @transform_1(%arg0: i32, %arg1: i32, %arg2: i32) -> (i32, i32) {
    %c0_i32 = arith.constant 0 : i32
    return %arg2, %arg1 : i32, i32
  }
  func.func @transform_2(%arg0: i32, %arg1: i32, %arg2: i32) -> (i32, i32) {
    %c0_i32 = arith.constant 0 : i32
    %c0_i32_0 = arith.constant 0 : i32
    return %c0_i32, %arg1 : i32, i32
  }
  func.func @transform_3(%arg0: i32, %arg1: i32, %arg2: i32) -> (i32, i32) {
    %c0_i32 = arith.constant 0 : i32
    return %arg0, %arg1 : i32, i32
  }
  func.func @transform_4(%arg0: i32, %arg1: i32, %arg2: i32) -> (i32, i32) {
    %c0_i32 = arith.constant 0 : i32
    return %arg0, %arg1 : i32, i32
  }
  func.func @transform_5(%arg0: i32, %arg1: i32, %arg2: i32) -> (i32, i32) {
    %c0_i32 = arith.constant 0 : i32
    return %arg0, %arg1 : i32, i32
  }
}

module attributes {stable_mosaic.version = 11 : i64} {
  func.func @_conv_gemm_kernel(%arg0: i32, %arg1: i32, %arg2: i32, %arg3: memref<16x1024xbf16, #tpu.memory_space<vmem>>, %arg4: memref<1024x128xbf16, #tpu.memory_space<vmem>>, %arg5: memref<1x128xf32, #tpu.memory_space<vmem>>, %arg6: memref<16x128xf32, #tpu.memory_space<vmem>>) attributes {dimension_semantics = [#tpu.dimension_semantics<parallel>, #tpu.dimension_semantics<parallel>, #tpu.dimension_semantics<arbitrary>], iteration_bounds = array<i64: 1, 1, 8>, scalar_prefetch = 0 : i64, scratch_operands = 0 : i64, tpu.core_type = #tpu.core_type<tc>, window_params = [{transform_indices = @transform_0, window_bounds = array<i64: 16, 1024>}, {transform_indices = @transform_1, window_bounds = array<i64: 1024, 128>}, {transform_indices = @transform_2, window_bounds = array<i64: 1, 128>}, {transform_indices = @transform_3, window_bounds = array<i64: 16, 128>}]} {
    %c0_i32 = arith.constant 0 : i32
    %0 = arith.cmpi eq, %arg2, %c0_i32 : i32
    %1 = arith.extui %0 : i1 to i32
    %c0_i32_0 = arith.constant 0 : i32
    %2 = arith.cmpi ne, %1, %c0_i32_0 : i32
    scf.if %2 {
      %cst_9 = arith.constant 0.000000e+00 : f32
      %12 = vector.broadcast %cst_9 : f32 to vector<16x128xf32>
      %c0_10 = arith.constant 0 : index
      %c0_11 = arith.constant 0 : index
      %13 = vector.load %arg6[%c0_10, %c0_11] : memref<16x128xf32, #tpu.memory_space<vmem>>, vector<16x128xf32>
      tpu.vector_store %arg6[%c0_10, %c0_11], %12 {strides = array<i32>} : memref<16x128xf32, #tpu.memory_space<vmem>>, vector<16x128xf32>,
    } else {
    }
    %c0 = arith.constant 0 : index
    %c0_1 = arith.constant 0 : index
    %3 = vector.load %arg6[%c0, %c0_1] : memref<16x128xf32, #tpu.memory_space<vmem>>, vector<16x128xf32>
    %c0_2 = arith.constant 0 : index
    %c0_3 = arith.constant 0 : index
    %4 = vector.load %arg3[%c0_2, %c0_3] : memref<16x1024xbf16, #tpu.memory_space<vmem>>, vector<16x1024xbf16>
    %c0_4 = arith.constant 0 : index
    %c0_5 = arith.constant 0 : index
    %5 = vector.load %arg4[%c0_4, %c0_5] : memref<1024x128xbf16, #tpu.memory_space<vmem>>, vector<1024x128xbf16>
    %cst = arith.constant dense<0.000000e+00> : vector<16x128xf32>
    %6 = tpu.matmul %4, %5, %cst {dimension_numbers = #tpu.dot_dimension_numbers<[1], [0], [0], [1], [0, 0, 1, 1], [], []>} : vector<16x1024xbf16>, vector<1024x128xbf16>, vector<16x128xf32> -> vector<16x128xf32>
    %7 = arith.addf %3, %6 : vector<16x128xf32>
    %c0_6 = arith.constant 0 : index
    %c0_7 = arith.constant 0 : index
    %8 = vector.load %arg6[%c0_6, %c0_7] : memref<16x128xf32, #tpu.memory_space<vmem>>, vector<16x128xf32>
    tpu.vector_store %arg6[%c0_6, %c0_7], %7 {strides = array<i32>} : memref<16x128xf32, #tpu.memory_space<vmem>>, vector<16x128xf32>,
    %c7_i32 = arith.constant 7 : i32
    %9 = arith.cmpi eq, %arg2, %c7_i32 : i32
    %10 = arith.extui %9 : i1 to i32
    %c0_i32_8 = arith.constant 0 : i32
    %11 = arith.cmpi ne, %10, %c0_i32_8 : i32
    scf.if %11 {
      %c0_9 = arith.constant 0 : index
      %c0_10 = arith.constant 0 : index
      %12 = vector.load %arg6[%c0_9, %c0_10] : memref<16x128xf32, #tpu.memory_space<vmem>>, vector<16x128xf32>
      %c0_11 = arith.constant 0 : index
      %c0_12 = arith.constant 0 : index
      %13 = vector.load %arg5[%c0_11, %c0_12] : memref<1x128xf32, #tpu.memory_space<vmem>>, vector<1x128xf32>
      %14 = vector.broadcast %13 : vector<1x128xf32> to vector<16x128xf32>
      %15 = arith.addf %12, %14 : vector<16x128xf32>
      %16 = arith.negf %15 : vector<16x128xf32>
      %17 = math.exp %16 : vector<16x128xf32>
      %cst_13 = arith.constant 1.000000e+00 : f32
      %18 = vector.broadcast %cst_13 : f32 to vector<16x128xf32>
      %19 = arith.addf %18, %17 : vector<16x128xf32>
      %20 = arith.divf %18, %19 : vector<16x128xf32>
      %c0_14 = arith.constant 0 : index
      %c0_15 = arith.constant 0 : index
      %21 = vector.load %arg6[%c0_14, %c0_15] : memref<16x128xf32, #tpu.memory_space<vmem>>, vector<16x128xf32>
      tpu.vector_store %arg6[%c0_14, %c0_15], %20 {strides = array<i32>} : memref<16x128xf32, #tpu.memory_space<vmem>>, vector<16x128xf32>,
    } else {
    }
    return
  }
  func.func @transform_0(%arg0: i32, %arg1: i32, %arg2: i32) -> (i32, i32) {
    %c0_i32 = arith.constant 0 : i32
    return %arg0, %arg2 : i32, i32
  }
  func.func @transform_1(%arg0: i32, %arg1: i32, %arg2: i32) -> (i32, i32) {
    %c0_i32 = arith.constant 0 : i32
    return %arg2, %arg1 : i32, i32
  }
  func.func @transform_2(%arg0: i32, %arg1: i32, %arg2: i32) -> (i32, i32) {
    %c0_i32 = arith.constant 0 : i32
    %c0_i32_0 = arith.constant 0 : i32
    return %c0_i32, %arg1 : i32, i32
  }
  func.func @transform_3(%arg0: i32, %arg1: i32, %arg2: i32) -> (i32, i32) {
    %c0_i32 = arith.constant 0 : i32
    return %arg0, %arg1 : i32, i32
  }
}

</mosaic_0001>

<bundles_post_ra>
// kernel: patchgan_discriminator.5
= control target key start
LH: loop header
LB: loop body
LE: loop exit
PB: predicated region body
PF: predicated region fallthrough
CT: control target
= control target key end

     0   :  { %s1563_s12 = smov 0   ;;  %s1565_s13 = smov 0   ;;  %s1706_s0 = inlined_call_operand.vmem [shape: bf16[512,128], index: 0, kind: input, shape index: {}]   ;;  %s1707_s1 = inlined_call_operand.vmem [shape: bf16[128,128], index: 1, kind: input, shape index: {}]   ;;  %s1708_s2 = inlined_call_operand.vmem [shape: f32[1,128], index: 2, kind: input, shape index: {}]   ;;  %s1709_s3 = inlined_call_operand.vmem [shape: bf16[512,128], index: 3, kind: output, shape index: {}]  }
   0x1   :  { %s1567_s14 = smov 0  }
   0x2 LB: > { %s32_s15 = sadd.s32 1, %s1537_s13  ;;  %p1192_p0 = scmp.ge.s32.totalorder %s1541_s14, 1  ;;  %s1541_s14 = sphi %s1567_s14, %s13_s14   ;;  %s1537_s13 = sphi %s1565_s13, %s1711_s13   ;;  %s1533_s12 = sphi %s1563_s12, %s1710_s12  }
   0x3   : > { %p34_p1 = scmp.ge.s32.totalorder %s32_s15, 2  ;;  %p188_p2 = scmp.lt.s32.totalorder %s1541_s14, 3 }
   0x5   : > { %s1713_s15 = smov (%p34_p1, %s32_s15), 0  ;;  %p189_p3 = pnand %p1192_p0, %p188_p2 }
   0x6   : > { %v1495_v0 = vld [vmem:[%s1707_s1] sm:$0xff] (!%p189_p3)   ;;  %s1193_s18 = sshll.u32 (!%p189_p3), %s1533_s12, 5  ;;  %v1496_v1 = vld [vmem:[%s1707_s1 + $0x8] sm:$0xff] (!%p189_p3)   ;;  %v1497_v2 = vld [vmem:[%s1707_s1 + $0x10] sm:$0xff] (!%p189_p3)  }
   0x7   : > { %192 = sbr.rel (%p189_p3) target bundleno = 294 (0x126), region = 32  ;;  %p230_p4 = scmp.lt.s32.totalorder (!%p189_p3), %s1193_s18, 63  ;;  %1407 = vmatprep.subr.bf16.mxu0 (!%p189_p3), %v1495_v0  ;;  %1455 = vmatprep.subr.bf16.mxu1 (!%p189_p3), %v1495_v0  ;;  %v1498_v3 = vld [vmem:[%s1707_s1 + $0x18] sm:$0xff] (!%p189_p3)   ;;  %v1499_v6 = vld [vmem:[%s1707_s1 + $0x20] sm:$0xff] (!%p189_p3)   ;;  %v1500_v7 = vld [vmem:[%s1707_s1 + $0x28] sm:$0xff] (!%p189_p3)  }
   0x8   : > { %1408 = vmatpush3.bf16.msra.mxu0 (!%p189_p3), %v1495_v0  ;;  %1463 = vmatpush3.bf16.msra.mxu1 (!%p189_p3), %v1495_v0  ;;  %v1501_v8 = vld [vmem:[%s1707_s1 + $0x30] sm:$0xff] (!%p189_p3)   ;;  %v1502_v9 = vld [vmem:[%s1707_s1 + $0x38] sm:$0xff] (!%p189_p3)   ;;  %v1634_v24 = vld [vmem:[%s1708_s2] ss:$0 sm:$0xff] (!%p189_p3) }
   0x9   : > { %1409 = vmatprep.subr.bf16.mxu0 (!%p189_p3), %v1496_v1  ;;  %1456 = vmatprep.subr.bf16.mxu1 (!%p189_p3), %v1496_v1 }
   0xc   : > { %1410 = vmatpush3.bf16.msra.mxu0 (!%p189_p3), %v1496_v1  ;;  %1464 = vmatpush3.bf16.msra.mxu1 (!%p189_p3), %v1496_v1 }
   0xd   : > { %1411 = vmatprep.subr.bf16.mxu0 (!%p189_p3), %v1497_v2  ;;  %1457 = vmatprep.subr.bf16.mxu1 (!%p189_p3), %v1497_v2 }
   0xe   : > { %s1715_s18 = smov (!%p230_p4, %s1193_s18), 63 }
   0xf   : > { %s1194_s23 = sshll.u32 %s1715_s18, 2 }
  0x10   : > { %s1598_s26 = scalar_lea.vmem %s1706_s0, %s1194_s23  ;;  %1412 = vmatpush3.bf16.msra.mxu0 %v1497_v2  ;;  %1465 = vmatpush3.bf16.msra.mxu1 %v1497_v2  ;;  %s1651_s17 = scalar_lea.vmem %s1709_s3, %s1194_s23 }
  0x11   : > { %v1503_v4 = vld [vmem:[%s1598_s26] sm:$0xff]   ;;  %1413 = vmatprep.subr.bf16.mxu0 %v1498_v3  ;;  %1458 = vmatprep.subr.bf16.mxu1 %v1498_v3  ;;  %v1505_v10 = vld [vmem:[%s1598_s26 + $0x8] sm:$0xff]   ;;  %v1507_v12 = vld [vmem:[%s1598_s26 + $0x10] sm:$0xff]  }
  0x12   : > { %v1504_v5 = vld [vmem:[%s1598_s26 + $0x40] sm:$0xff]   ;;  %1423 = vmatprep.mubr.bf16.mxu0 %v1503_v4  ;;  %v1506_v11 = vld [vmem:[%s1598_s26 + $0x48] sm:$0xff]   ;;  %v1508_v13 = vld [vmem:[%s1598_s26 + $0x50] sm:$0xff]  }
  0x13   : > { %1439 = vmatprep.mubr.bf16.mxu1 %v1504_v5  ;;  %v1509_v14 = vld [vmem:[%s1598_s26 + $0x18] sm:$0xff]   ;;  %v1511_v16 = vld [vmem:[%s1598_s26 + $0x20] sm:$0xff]   ;;  %v1513_v18 = vld [vmem:[%s1598_s26 + $0x28] sm:$0xff]  }
  0x14   : > { %1414 = vmatpush3.bf16.msra.mxu0 %v1498_v3  ;;  %1466 = vmatpush3.bf16.msra.mxu1 %v1498_v3  ;;  %v1510_v15 = vld [vmem:[%s1598_s26 + $0x58] sm:$0xff]   ;;  %v1512_v17 = vld [vmem:[%s1598_s26 + $0x60] sm:$0xff]   ;;  %v1514_v19 = vld [vmem:[%s1598_s26 + $0x68] sm:$0xff]  }
  0x15   : > { %1415 = vmatprep.subr.bf16.mxu0 %v1499_v6  ;;  %1459 = vmatprep.subr.bf16.mxu1 %v1499_v6  ;;  %v1515_v20 = vld [vmem:[%s1598_s26 + $0x30] sm:$0xff]   ;;  %v1517_v22 = vld [vmem:[%s1598_s26 + $0x38] sm:$0xff]  }
  0x16   : > { %v1516_v21 = vld [vmem:[%s1598_s26 + $0x70] sm:$0xff]   ;;  %v1518_v23 = vld [vmem:[%s1598_s26 + $0x78] sm:$0xff]  }
  0x18   : > { %1416 = vmatpush3.bf16.msra.mxu0 %v1499_v6  ;;  %1467 = vmatpush3.bf16.msra.mxu1 %v1499_v6 }
  0x19   : > { %1417 = vmatprep.subr.bf16.mxu0 %v1500_v7  ;;  %1460 = vmatprep.subr.bf16.mxu1 %v1500_v7 }
  0x1c   : > { %1418 = vmatpush3.bf16.msra.mxu0 %v1500_v7  ;;  %1468 = vmatpush3.bf16.msra.mxu1 %v1500_v7 }
  0x1d   : > { %1419 = vmatprep.subr.bf16.mxu0 %v1501_v8  ;;  %1461 = vmatprep.subr.bf16.mxu1 %v1501_v8 }
  0x20   : > { %1420 = vmatpush3.bf16.msra.mxu0 %v1501_v8  ;;  %1469 = vmatpush3.bf16.msra.mxu1 %v1501_v8 }
  0x21   : > { %1421 = vmatprep.subr.bf16.mxu0 %v1502_v9  ;;  %1462 = vmatprep.subr.bf16.mxu1 %v1502_v9 }
  0x24   : > { %1422 = vmatpush3.bf16.msra.mxu0 %v1502_v9  ;;  %1470 = vmatpush3.bf16.msra.mxu1 %v1502_v9 }
  0x27   : > { %1424 = vmatmul.mubr.bf16.vlgmr.msra.gmra.mrb[0].mxu0 %v1505_v10  ;;  %1440 = vmatmul.mubr.bf16.vlgmr.msra.gmra.mrb[0].mxu1 %v1506_v11 }
  0x28   : > { %1427 = vmatprep.mubr.bf16.mxu0 %v1507_v12  ;;  %1443 = vmatprep.mubr.bf16.mxu1 %v1508_v13 }
  0x2f   : > { %1428 = vmatmul.mubr.bf16.gmra.mrb[4].mxu0 %v1509_v14  ;;  %1444 = vmatmul.mubr.bf16.gmra.mrb[4].mxu1 %v1510_v15 }
  0x30   : > { %1431 = vmatprep.mubr.bf16.mxu0 %v1511_v16  ;;  %1447 = vmatprep.mubr.bf16.mxu1 %v1512_v17 }
  0x37   : > { %1432 = vmatmul.mubr.bf16.gmra.mrb[8].mxu0 %v1513_v18  ;;  %1448 = vmatmul.mubr.bf16.gmra.mrb[8].mxu1 %v1514_v19 }
  0x38   : > { %1435 = vmatprep.mubr.bf16.mxu0 %v1515_v20  ;;  %1451 = vmatprep.mubr.bf16.mxu1 %v1516_v21 }
  0x3f   : > { %1436 = vmatmul.mubr.bf16.gmra.mrb[12].mxu0 %v1517_v22  ;;  %1452 = vmatmul.mubr.bf16.gmra.mrb[12].mxu1 %v1518_v23 }
  0xfa   : > { %v1425_v25 = vpop.f32.mrb[0].mxu0  ;;  %v1441_v26 = vpop.f32.mrb[0].mxu1 }
  0xfb   : > { %v789_v27 = vadd.f32 %v1425_v25, %v1634_v24  ;;  %v805_v28 = vadd.f32 %v1441_v26, %v1634_v24  ;;  %v554_v29 = vpop.f32.mrb[1].mxu0  ;;  %v618_v30 = vpop.f32.mrb[1].mxu1 }
  0xfc   : > { %v787_v31 = vadd.f32 %v1634_v24, %v554_v29  ;;  %v803_v32 = vadd.f32 %v1634_v24, %v618_v30  ;;  %v1426_v33 = vpop.f32.mrb[2].mxu0  ;;  %v1442_v34 = vpop.f32.mrb[2].mxu1 }
  0xfd   : > { %vm821_vm0 = vcmp.gt.f32.partialorder %v789_v27, 0.0  ;;  %v853_v35 = vmul.f32 0.2, %v789_v27  ;;  %vm837_vm1 = vcmp.gt.f32.partialorder %v805_v28, 0.0  ;;  %v869_v36 = vmul.f32 0.2, %v805_v28 }
  0xfe   : > { %vm819_vm2 = vcmp.gt.f32.partialorder %v787_v31, 0.0  ;;  %v851_v37 = vmul.f32 0.2, %v787_v31  ;;  %vm835_vm3 = vcmp.gt.f32.partialorder %v803_v32, 0.0  ;;  %v867_v38 = vmul.f32 0.2, %v803_v32 }
  0xff   : > { %v790_v39 = vadd.f32 %v1426_v33, %v1634_v24  ;;  %v806_v40 = vadd.f32 %v1442_v34, %v1634_v24  ;;  %v557_v41 = vpop.f32.mrb[3].mxu0  ;;  %v621_v42 = vpop.f32.mrb[3].mxu1  ;;  %v885_v43 = vsel %vm821_vm0, %v789_v27, %v853_v35  ;;  %v901_v44 = vsel %vm837_vm1, %v805_v28, %v869_v36 }
 0x100   : > { %v788_v45 = vadd.f32 %v1634_v24, %v557_v41  ;;  %v804_v46 = vadd.f32 %v1634_v24, %v621_v42  ;;  %v883_v51 = vsel %vm819_vm2, %v787_v31, %v851_v37  ;;  %v899_v52 = vsel %vm835_vm3, %v803_v32, %v867_v38 }
 0x101   : > { %vm822_vm4 = vcmp.gt.f32.partialorder %v790_v39, 0.0  ;;  %v854_v47 = vmul.f32 0.2, %v790_v39  ;;  %vm838_vm5 = vcmp.gt.f32.partialorder %v806_v40, 0.0  ;;  %v870_v48 = vmul.f32 0.2, %v806_v40 }
 0x102   : > { %vm820_vm6 = vcmp.gt.f32.partialorder %v788_v45, 0.0  ;;  %v852_v49 = vmul.f32 0.2, %v788_v45  ;;  %vm836_vm7 = vcmp.gt.f32.partialorder %v804_v46, 0.0  ;;  %v868_v50 = vmul.f32 0.2, %v804_v46 }
 0x103   : > { %v886_v53 = vsel %vm822_vm4, %v790_v39, %v854_v47  ;;  %v902_v54 = vsel %vm838_vm5, %v806_v40, %v870_v48  ;;  %v1429_v55 = vpop.f32.mrb[4].mxu0  ;;  %v1445_v56 = vpop.f32.mrb[4].mxu1 }
 0x104   : > { %v1296_v57 = vpack.c.bf16 %v886_v53, %v885_v43  ;;  %v1336_v58 = vpack.c.bf16 %v902_v54, %v901_v44  ;;  %v884_v59 = vsel %vm820_vm6, %v788_v45, %v852_v49  ;;  %v900_v60 = vsel %vm836_vm7, %v804_v46, %v868_v50  ;;  %v570_v61 = vpop.f32.mrb[5].mxu0  ;;  %v634_v62 = vpop.f32.mrb[5].mxu1 }
 0x105   : > { %v1291_v63 = vpack.c.bf16 %v884_v59, %v883_v51  ;;  %v1331_v0 = vpack.c.bf16 %v900_v60, %v899_v52  ;;  %v793_v1 = vadd.f32 %v1429_v55, %v1634_v24  ;;  %v809_v2 = vadd.f32 %v1445_v56, %v1634_v24  ;;  %v1430_v3 = vpop.f32.mrb[6].mxu0  ;;  %v1446_v4 = vpop.f32.mrb[6].mxu1 }
 0x106   : > { %1368 = vst [vmem:[%s1651_s17 + $0x8] sm:$0xff] %v1296_v57   ;;  %1376 = vst [vmem:[%s1651_s17 + $0x48] sm:$0xff] %v1336_v58   ;;  %v791_v5 = vadd.f32 %v1634_v24, %v570_v61  ;;  %v807_v6 = vadd.f32 %v1634_v24, %v634_v62  ;;  %v794_v7 = vadd.f32 %v1430_v3, %v1634_v24  ;;  %v573_v9 = vpop.f32.mrb[7].mxu0  ;;  %v637_v10 = vpop.f32.mrb[7].mxu1 }
 0x107   : > { %v810_v8 = vadd.f32 %v1446_v4, %v1634_v24  ;;  %1292 = vst [vmem:[%s1651_s17] sm:$0xff] %v1291_v63   ;;  %1375 = vst [vmem:[%s1651_s17 + $0x40] sm:$0xff] %v1331_v0   ;;  %vm825_vm8 = vcmp.gt.f32.partialorder %v793_v1, 0.0  ;;  %v857_v11 = vmul.f32 0.2, %v793_v1  ;;  %vm841_vm9 = vcmp.gt.f32.partialorder %v809_v2, 0.0 }
 0x108   : > { %v873_v12 = vmul.f32 0.2, %v809_v2  ;;  %vm823_vm10 = vcmp.gt.f32.partialorder %v791_v5, 0.0  ;;  %v855_v13 = vmul.f32 0.2, %v791_v5  ;;  %vm839_vm11 = vcmp.gt.f32.partialorder %v807_v6, 0.0 }
 0x109   : > { %v889_v14 = vsel %vm825_vm8, %v793_v1, %v857_v11  ;;  %v871_v15 = vmul.f32 0.2, %v807_v6  ;;  %vm826_vm12 = vcmp.gt.f32.partialorder %v794_v7, 0.0  ;;  %v858_v16 = vmul.f32 0.2, %v794_v7 }
 0x10a   : > { %v905_v17 = vsel %vm841_vm9, %v809_v2, %v873_v12  ;;  %v887_v18 = vsel %vm823_vm10, %v791_v5, %v855_v13  ;;  %vm842_vm13 = vcmp.gt.f32.partialorder %v810_v8, 0.0  ;;  %v874_v19 = vmul.f32 0.2, %v810_v8  ;;  %v1433_v20 = vpop.f32.mrb[8].mxu0  ;;  %v1449_v21 = vpop.f32.mrb[8].mxu1 }
 0x10b   : > { %v890_v22 = vsel %vm826_vm12, %v794_v7, %v858_v16  ;;  %v792_v23 = vadd.f32 %v1634_v24, %v573_v9  ;;  %v808_v25 = vadd.f32 %v1634_v24, %v637_v10  ;;  %v797_v26 = vadd.f32 %v1433_v20, %v1634_v24  ;;  %v586_v27 = vpop.f32.mrb[9].mxu0  ;;  %v650_v28 = vpop.f32.mrb[9].mxu1 }
 0x10c   : > { %v1306_v29 = vpack.c.bf16 %v890_v22, %v889_v14  ;;  %v906_v30 = vsel %vm842_vm13, %v810_v8, %v874_v19  ;;  %v813_v31 = vadd.f32 %v1449_v21, %v1634_v24  ;;  %v795_v32 = vadd.f32 %v1634_v24, %v586_v27  ;;  %v1434_v33 = vpop.f32.mrb[10].mxu0  ;;  %v1450_v34 = vpop.f32.mrb[10].mxu1 }
 0x10d   : > { %v1346_v35 = vpack.c.bf16 %v906_v30, %v905_v17  ;;  %vm824_vm14 = vcmp.gt.f32.partialorder %v792_v23, 0.0  ;;  %v856_v36 = vmul.f32 0.2, %v792_v23  ;;  %vm840_vm15 = vcmp.gt.f32.partialorder %v808_v25, 0.0  ;;  %v589_v37 = vpop.f32.mrb[11].mxu0  ;;  %v653_v38 = vpop.f32.mrb[11].mxu1 }
 0x10e   : > { %1370 = vst [vmem:[%s1651_s17 + $0x18] sm:$0xff] %v1306_v29   ;;  %v872_v39 = vmul.f32 0.2, %v808_v25  ;;  %vm829_vm0 = vcmp.gt.f32.partialorder %v797_v26, 0.0  ;;  %v861_v40 = vmul.f32 0.2, %v797_v26  ;;  %v903_v41 = vsel %vm839_vm11, %v807_v6, %v871_v15 }
 0x10f   : > { %vm845_vm1 = vcmp.gt.f32.partialorder %v813_v31, 0.0  ;;  %1378 = vst [vmem:[%s1651_s17 + $0x58] sm:$0xff] %v1346_v35   ;;  %v888_v42 = vsel %vm824_vm14, %v792_v23, %v856_v36  ;;  %v877_v43 = vmul.f32 0.2, %v813_v31  ;;  %vm827_vm2 = vcmp.gt.f32.partialorder %v795_v32, 0.0 }
 0x110   : > { %v1301_v44 = vpack.c.bf16 %v888_v42, %v887_v18  ;;  %v904_v45 = vsel %vm840_vm15, %v808_v25, %v872_v39  ;;  %v859_v46 = vmul.f32 0.2, %v795_v32  ;;  %v811_v47 = vadd.f32 %v1634_v24, %v650_v28 }
 0x111   : > { %v1341_v48 = vpack.c.bf16 %v904_v45, %v903_v41  ;;  %v893_v49 = vsel %vm829_vm0, %v797_v26, %v861_v40  ;;  %v909_v50 = vsel %vm845_vm1, %v813_v31, %v877_v43  ;;  %v798_v51 = vadd.f32 %v1434_v33, %v1634_v24 }
 0x112   : > { %1369 = vst [vmem:[%s1651_s17 + $0x10] sm:$0xff] %v1301_v44   ;;  %vm843_vm3 = vcmp.gt.f32.partialorder %v811_v47, 0.0  ;;  %v875_v52 = vmul.f32 0.2, %v811_v47  ;;  %v814_v53 = vadd.f32 %v1450_v34, %v1634_v24  ;;  %v796_v54 = vadd.f32 %v1634_v24, %v589_v37  ;;  %v1437_v55 = vpop.f32.mrb[12].mxu0  ;;  %v1453_v56 = vpop.f32.mrb[12].mxu1 }
 0x113   : > { %1377 = vst [vmem:[%s1651_s17 + $0x50] sm:$0xff] %v1341_v48   ;;  %vm830_vm4 = vcmp.gt.f32.partialorder %v798_v51, 0.0  ;;  %v862_v57 = vmul.f32 0.2, %v798_v51  ;;  %v812_v58 = vadd.f32 %v1634_v24, %v653_v38  ;;  %v801_v59 = vadd.f32 %v1437_v55, %v1634_v24  ;;  %v602_v60 = vpop.f32.mrb[13].mxu0  ;;  %v666_v61 = vpop.f32.mrb[13].mxu1 }
 0x114   : > { %v891_v62 = vsel %vm827_vm2, %v795_v32, %v859_v46  ;;  %vm846_vm5 = vcmp.gt.f32.partialorder %v814_v53, 0.0  ;;  %v878_v63 = vmul.f32 0.2, %v814_v53  ;;  %vm828_vm6 = vcmp.gt.f32.partialorder %v796_v54, 0.0  ;;  %v1438_v0 = vpop.f32.mrb[14].mxu0  ;;  %v1454_v1 = vpop.f32.mrb[14].mxu1 }
 0x115   : > { %v894_v2 = vsel %vm830_vm4, %v798_v51, %v862_v57  ;;  %v860_v3 = vmul.f32 0.2, %v796_v54  ;;  %vm844_vm7 = vcmp.gt.f32.partialorder %v812_v58, 0.0  ;;  %v876_v4 = vmul.f32 0.2, %v812_v58  ;;  %v605_v5 = vpop.f32.mrb[15].mxu0 }
 0x116   : > { %v907_v6 = vsel %vm843_vm3, %v811_v47, %v875_v52  ;;  %v1316_v7 = vpack.c.bf16 %v894_v2, %v893_v49  ;;  %v910_v8 = vsel %vm846_vm5, %v814_v53, %v878_v63  ;;  %v865_v9 = vmul.f32 0.2, %v801_v59  ;;  %v669_v10 = vpop.f32.mrb[15].mxu1 }
 0x117   : > { %v1356_v11 = vpack.c.bf16 %v910_v8, %v909_v50  ;;  %v892_v12 = vsel %vm828_vm6, %v796_v54, %v860_v3  ;;  %v908_v13 = vsel %vm844_vm7, %v812_v58, %v876_v4  ;;  %v817_v14 = vadd.f32 %v1453_v56, %v1634_v24 }
 0x118   : > { %1372 = vst [vmem:[%s1651_s17 + $0x28] sm:$0xff] %v1316_v7   ;;  %v1311_v15 = vpack.c.bf16 %v892_v12, %v891_v62  ;;  %v1351_v16 = vpack.c.bf16 %v908_v13, %v907_v6  ;;  %vm833_vm8 = vcmp.gt.f32.partialorder %v801_v59, 0.0  ;;  %v799_v17 = vadd.f32 %v1634_v24, %v602_v60 }
 0x119   : > { %1380 = vst [vmem:[%s1651_s17 + $0x68] sm:$0xff] %v1356_v11   ;;  %vm849_vm9 = vcmp.gt.f32.partialorder %v817_v14, 0.0  ;;  %v881_v18 = vmul.f32 0.2, %v817_v14  ;;  %v815_v19 = vadd.f32 %v1634_v24, %v666_v61  ;;  %v802_v20 = vadd.f32 %v1438_v0, %v1634_v24 }
 0x11a   : > { %1371 = vst [vmem:[%s1651_s17 + $0x20] sm:$0xff] %v1311_v15   ;;  %1379 = vst [vmem:[%s1651_s17 + $0x60] sm:$0xff] %v1351_v16   ;;  %v863_v21 = vmul.f32 0.2, %v799_v17  ;;  %v818_v22 = vadd.f32 %v1454_v1, %v1634_v24  ;;  %v800_v23 = vadd.f32 %v1634_v24, %v605_v5  ;;  %v897_v25 = vsel %vm833_vm8, %v801_v59, %v865_v9 }
 0x11b   : > { %vm831_vm10 = vcmp.gt.f32.partialorder %v799_v17, 0.0  ;;  %vm834_vm11 = vcmp.gt.f32.partialorder %v802_v20, 0.0  ;;  %v913_v26 = vsel %vm849_vm9, %v817_v14, %v881_v18  ;;  %v866_v27 = vmul.f32 0.2, %v802_v20 }
 0x11c   : > { %vm850_vm12 = vcmp.gt.f32.partialorder %v818_v22, 0.0  ;;  %v882_v28 = vmul.f32 0.2, %v818_v22  ;;  %vm847_vm13 = vcmp.gt.f32.partialorder %v815_v19, 0.0  ;;  %vm832_vm14 = vcmp.gt.f32.partialorder %v800_v23, 0.0 }
 0x11d   : > { %v864_v29 = vmul.f32 0.2, %v800_v23  ;;  %v816_v30 = vadd.f32 %v1634_v24, %v669_v10  ;;  %v895_v31 = vsel %vm831_vm10, %v799_v17, %v863_v21  ;;  %v879_v32 = vmul.f32 0.2, %v815_v19 }
 0x11e   : > { %v898_v33 = vsel %vm834_vm11, %v802_v20, %v866_v27  ;;  %v914_v34 = vsel %vm850_vm12, %v818_v22, %v882_v28 }
 0x11f   : > { %v1326_v35 = vpack.c.bf16 %v898_v33, %v897_v25  ;;  %v1366_v36 = vpack.c.bf16 %v914_v34, %v913_v26  ;;  %v896_v37 = vsel %vm832_vm14, %v800_v23, %v864_v29  ;;  %vm848_vm15 = vcmp.gt.f32.partialorder %v816_v30, 0.0 }
 0x120   : > { %v1321_v38 = vpack.c.bf16 %v896_v37, %v895_v31  ;;  %v880_v39 = vmul.f32 0.2, %v816_v30  ;;  %v911_v40 = vsel %vm847_vm13, %v815_v19, %v879_v32 }
 0x121   : > { %1374 = vst [vmem:[%s1651_s17 + $0x38] sm:$0xff] %v1326_v35   ;;  %1382 = vst [vmem:[%s1651_s17 + $0x78] sm:$0xff] %v1366_v36  }
 0x122   : > { %1373 = vst [vmem:[%s1651_s17 + $0x30] sm:$0xff] %v1321_v38   ;;  %v912_v41 = vsel %vm848_vm15, %v816_v30, %v880_v39 }
 0x123   : > { %v1361_v42 = vpack.c.bf16 %v912_v41, %v911_v40 }
 0x125   : > { %1381 = vst [vmem:[%s1651_s17 + $0x70] sm:$0xff] %v1361_v42  }
 0x126 PF: > { %s13_s14 = sadd.s32 1, %s1541_s14   ;;  %s1710_s12 = smov %s1537_s13 }
 0x127   : > { %p10_p5 = scmp.ge.s32.totalorder %s13_s14, 4   ;;  %s1711_s13 = smov %s1713_s15 }
 0x129   :  { %12 = sbr.rel (!%p10_p5) target bundleno = 2 (0x2), region = 76 }

// kernel: patchgan_discriminator.6
= control target key start
LH: loop header
LB: loop body
LE: loop exit
PB: predicated region body
PF: predicated region fallthrough
CT: control target
= control target key end

     0   :  { %s1523_s18 = smov 0   ;;  %s1525_s19 = smov 0   ;;  %s1746_s0 = inlined_call_operand.vmem [shape: bf16[128,1024], index: 0, kind: input, shape index: {}]   ;;  %s1747_s1 = inlined_call_operand.vmem [shape: bf16[1024,128], index: 1, kind: input, shape index: {}]   ;;  %s1748_s2 = inlined_call_operand.vmem [shape: f32[1,128], index: 2, kind: input, shape index: {}]   ;;  %s1749_s3 = inlined_call_operand.vmem [shape: f32[128,128], index: 3, kind: output, shape index: {0}]   ;;  %s1750_s4 = inlined_call_operand.vmem [shape: f32[16,128], index: 4, kind: output, shape index: {1}]   ;;  %s1751_s5 = inlined_call_operand.vmem [shape: f32[16,128], index: 5, kind: output, shape index: {2}]  }
   0x1   :  { %s1527_s20 = smov 0   ;;  %s1529_s21 = smov 0  }
   0x2   :  { %s1531_s22 = smov 0   ;;  %s1533_s23 = smov 0  }
   0x3   :  { %s1535_s24 = smov 0  }
   0x4 LB: > { %s28_s25 = sadd.s32 1, %s1482_s22  ;;  %s35_s26 = sadd.s32 1, %s1486_s23  ;;  %s1490_s24 = sphi %s1535_s24, %s16_s24   ;;  %s1486_s23 = sphi %s1533_s23, %s1757_s23   ;;  %s1482_s22 = sphi %s1531_s22, %s1756_s22   ;;  %s1478_s21 = sphi %s1529_s21, %s1755_s21   ;;  %s1474_s20 = sphi %s1527_s20, %s1754_s20   ;;  %s1470_s19 = sphi %s1525_s19, %s1753_s19   ;;  %s1466_s18 = sphi %s1523_s18, %s1752_s18  }
   0x5   : > { %p29_p0 = scmp.ge.s32.totalorder %s28_s25, 2  ;;  %p51_p1 = scmp.ne.s32.totalorder %s1470_s19, %s1466_s18 }
   0x6   : > { %p52_p2 = scmp.eq.s32.totalorder %s1490_s24, 0  ;;  %s44_s30 = sadd.s32 1, %s1470_s19 }
   0x7   : > { %s1759_s25 = smov (%p29_p0, %s28_s25), 0  ;;  %s1761_s26 = smov (!%p29_p0, %s35_s26), %s1486_s23 }
   0x8   : > { %p53_p3 = por %p52_p2, %p51_p1  ;;  %p37_p4 = scmp.ge.s32.totalorder %s1761_s26, 2 }
   0x9   : > { %s40_s27 = ssub.s32 %s1482_s22, %s1759_s25  ;;  %p1175_p6 = scmp.ge.s32.totalorder %s1490_s24, 4 }
   0xa   : > { %s1763_s26 = smov (%p37_p4, %s1761_s26), 0 }
   0xb   : > { %s39_s28 = ssub.s32 %s1486_s23, %s1763_s26  ;;  %221 = sbr.rel (%p1175_p6) target bundleno = 33 (0x21), region = 20 }
   0xc   : > { %s41_s29 = sor.u32 %s40_s27, %s39_s28 }
   0xd   : > { %p42_p5 = scmp.eq.s32.totalorder %s41_s29, 0 }
   0xf   : > { %s1574_s6 = scalar_select %p42_p5, %s1470_s19, %s44_s30  }
  0x12   : > { %224 = sbr.rel (!%p53_p3) target bundleno = 33 (0x21), region = 24  ;;  %s226_s7 = sand.u32 (%p53_p3), 1, %s1470_s19  }
  0x13   : > { %s1178_s8 = sshll.u32 (%p53_p3), %s1482_s22, 2  ;;  %s1176_s9 = sshll.u32 (%p53_p3), %s226_s7, 7 }
  0x14   : > { %s1242_s10 = sshll.u32 (%p53_p3), %s1486_s23, 6  ;;  %s228_s16 = scalar_lea.vmem (%p53_p3), [#allocation2], %s1176_s9 }
  0x15   : > { %s232_s11 = sadd.s32 (%p53_p3), %s1242_s10, %s1178_s8 }
  0x16   : > { %s1180_s12 = sshll.u32 (%p53_p3), %s232_s11, 2 }
  0x17   : > { %s1583_s15 = scalar_lea.vmem (%p53_p3), %s1746_s0, %s1180_s12 }
  0x18   : > { %v247_v0 = vld [vmem:[%s1583_s15] sm:$0xff] (%p53_p3)  ;;  %v249_v1 = vld [vmem:[%s1583_s15 + $0x8] sm:$0xff] (%p53_p3) }
  0x19   : > { %v251_v2 = vld [vmem:[%s1583_s15 + $0x20] sm:$0xff]  ;;  %248 = vst [vmem:[%s228_s16] sm:$0xff] %v247_v0  ;;  %250 = vst [vmem:[%s228_s16 + $0x8] sm:$0xff] %v249_v1  ;;  %v253_v3 = vld [vmem:[%s1583_s15 + $0x28] sm:$0xff] }
  0x1a   : > { %252 = vst [vmem:[%s228_s16 + $0x10] sm:$0xff] %v251_v2  ;;  %v255_v4 = vld [vmem:[%s1583_s15 + $0x40] sm:$0xff]  ;;  %v257_v5 = vld [vmem:[%s1583_s15 + $0x48] sm:$0xff]  ;;  %254 = vst [vmem:[%s228_s16 + $0x18] sm:$0xff] %v253_v3 }
  0x1b   : > { %256 = vst [vmem:[%s228_s16 + $0x20] sm:$0xff] %v255_v4  ;;  %258 = vst [vmem:[%s228_s16 + $0x28] sm:$0xff] %v257_v5  ;;  %v259_v6 = vld [vmem:[%s1583_s15 + $0x60] sm:$0xff]  ;;  %v261_v7 = vld [vmem:[%s1583_s15 + $0x68] sm:$0xff] }
  0x1c   : > { %v263_v8 = vld [vmem:[%s1583_s15 + $0x80] sm:$0xff]  ;;  %260 = vst [vmem:[%s228_s16 + $0x30] sm:$0xff] %v259_v6  ;;  %262 = vst [vmem:[%s228_s16 + $0x38] sm:$0xff] %v261_v7  ;;  %v265_v9 = vld [vmem:[%s1583_s15 + $0x88] sm:$0xff] }
  0x1d   : > { %264 = vst [vmem:[%s228_s16 + $0x40] sm:$0xff] %v263_v8  ;;  %v267_v10 = vld [vmem:[%s1583_s15 + $0xa0] sm:$0xff]  ;;  %v269_v11 = vld [vmem:[%s1583_s15 + $0xa8] sm:$0xff]  ;;  %266 = vst [vmem:[%s228_s16 + $0x48] sm:$0xff] %v265_v9 }
  0x1e   : > { %268 = vst [vmem:[%s228_s16 + $0x50] sm:$0xff] %v267_v10  ;;  %270 = vst [vmem:[%s228_s16 + $0x58] sm:$0xff] %v269_v11  ;;  %v271_v12 = vld [vmem:[%s1583_s15 + $0xc0] sm:$0xff]  ;;  %v273_v13 = vld [vmem:[%s1583_s15 + $0xc8] sm:$0xff] }
  0x1f   : > { %v275_v14 = vld [vmem:[%s1583_s15 + $0xe0] sm:$0xff]  ;;  %272 = vst [vmem:[%s228_s16 + $0x60] sm:$0xff] %v271_v12  ;;  %274 = vst [vmem:[%s228_s16 + $0x68] sm:$0xff] %v273_v13  ;;  %v277_v15 = vld [vmem:[%s1583_s15 + $0xe8] sm:$0xff] }
  0x20   : > { %276 = vst [vmem:[%s228_s16 + $0x70] sm:$0xff] %v275_v14  ;;  %278 = vst [vmem:[%s228_s16 + $0x78] sm:$0xff] %v277_v15 }
  0x21 PF: > { %p1181_p7 = scmp.ge.s32.totalorder %s1490_s24, 1  ;;  %p295_p8 = scmp.lt.s32.totalorder %s1490_s24, 5 }
  0x23   : > { %p296_p9 = pnand %p1181_p7, %p295_p8 }
  0x24   : > { %s302_s17 = sand.u32 (!%p296_p9), 1, %s1466_s18   ;;  %s1183_s27 = sshll.u32 (!%p296_p9), %s1474_s20, 6 }
  0x25   : > { %299 = sbr.rel (%p296_p9) target bundleno = 349 (0x15d), region = 51  ;;  %s1182_s28 = sshll.u32 (!%p296_p9), %s302_s17, 7 }
  0x26   : > { %p360_p10 = scmp.lt.s32.totalorder (!%p296_p9), %s1183_s27, 127  ;;  %s1185_s29 = sshll.u32 (!%p296_p9), %s1478_s21, 3 }
  0x27   : > { %p372_p11 = scmp.lt.s32.totalorder (!%p296_p9), %s1185_s29, 15  ;;  %p380_p12 = scmp.lt.s32.totalorder (!%p296_p9), %s1478_s21, 1 }
  0x28   : > { %p1189_p13 = scmp.ne.s32.totalorder (!%p296_p9), %s1474_s20, 0 }
  0x2c   : > { %s1765_s27 = smov (!%p360_p10, %s1183_s27), 127  ;;  %s1767_s29 = smov (!%p372_p11, %s1185_s29), 15 }
  0x2d   : > { %s1184_s30 = sshll.u32 %s1765_s27, 2  ;;  %s1769_s21 = smov (!%p380_p12, %s1478_s21), 1  ;;  %v1492_v16 = vmov (!%p1189_p13), 0.0  }
  0x2e   : > { %s1610_s9 = scalar_lea.vmem %s1747_s1, %s1184_s30  ;;  %s1186_s10 = sshll.u32 %s1767_s29, 3 }
  0x2f   : > { %s1616_s18 = scalar_lea.vmem %s1749_s3, %s1186_s10  ;;  %s1187_s13 = sshll.u32 %s1769_s21, 3 }
  0x30   : > { %s1621_s16 = scalar_lea.vmem %s1750_s4, %s1187_s13  ;;  %s1626_s7 = scalar_lea.vmem %s1751_s5, %s1187_s13  ;;  %399 = vst [vmem:[%s1616_s18] sm:$0xff] (!%p1189_p13), %v1492_v16  ;;  %400 = vst [vmem:[%s1616_s18 + $0x8] sm:$0xff] (!%p1189_p13), %v1492_v16 }
  0x31   : > { %s1628_s30 = scalar_lea.vmem [#allocation2], %s1182_s28  ;;  %398 = sbr.rel (%p1189_p13) target bundleno = 56 (0x38), region = 59  ;;  %401 = vst [vmem:[%s1616_s18 + $0x10] sm:$0xff] (!%p1189_p13), %v1492_v16  ;;  %402 = vst [vmem:[%s1616_s18 + $0x18] sm:$0xff] (!%p1189_p13), %v1492_v16 }
  0x32   : > { %403 = vst [vmem:[%s1616_s18 + $0x20] sm:$0xff] (!%p1189_p13), %v1492_v16  ;;  %404 = vst [vmem:[%s1616_s18 + $0x28] sm:$0xff] (!%p1189_p13), %v1492_v16 }
  0x33   : > { %405 = vst [vmem:[%s1616_s18 + $0x30] sm:$0xff] (!%p1189_p13), %v1492_v16  ;;  %406 = vst [vmem:[%s1616_s18 + $0x38] sm:$0xff] (!%p1189_p13), %v1492_v16 }
  0x38 PF: > { %v1380_v17 = vld [vmem:[%s1610_s9 + $0x40] sm:$0xff]   ;;  %v1384_v21 = vld [vmem:[%s1610_s9 + $0x48] sm:$0xff]   ;;  %v1388_v25 = vld [vmem:[%s1610_s9 + $0x50] sm:$0xff]   ;;  %p1238_p0 = scmp.ne.s32.totalorder %s1474_s20, 1 }
  0x39   : > { %v1381_v18 = vld [vmem:[%s1610_s9 + $0xc0] sm:$0xff]   ;;  %1243 = vmatprep.subr.bf16.mxu0 %v1380_v17  ;;  %v1385_v22 = vld [vmem:[%s1610_s9 + $0xc8] sm:$0xff]   ;;  %v1389_v26 = vld [vmem:[%s1610_s9 + $0xd0] sm:$0xff]  }
  0x3a   : > { %v1382_v19 = vld [vmem:[%s1610_s9] sm:$0xff]   ;;  %1283 = vmatprep.subr.bf16.mxu1 %v1381_v18  ;;  %v1386_v23 = vld [vmem:[%s1610_s9 + $0x8] sm:$0xff]   ;;  %v1390_v27 = vld [vmem:[%s1610_s9 + $0x10] sm:$0xff]  }
  0x3b   : > { %v1383_v20 = vld [vmem:[%s1610_s9 + $0x80] sm:$0xff]   ;;  %1244 = vmatpush3.bf16.msra.mxu0 %v1382_v19  ;;  %v1387_v24 = vld [vmem:[%s1610_s9 + $0x88] sm:$0xff]   ;;  %v1391_v28 = vld [vmem:[%s1610_s9 + $0x90] sm:$0xff]  }
  0x3c   : > { %1284 = vmatpush3.bf16.msra.mxu1 %v1383_v20  ;;  %1245 = vmatprep.subr.bf16.mxu0 %v1384_v21  ;;  %v1392_v29 = vld [vmem:[%s1610_s9 + $0x58] sm:$0xff]   ;;  %v1396_v33 = vld [vmem:[%s1610_s9 + $0x60] sm:$0xff]   ;;  %v1400_v37 = vld [vmem:[%s1610_s9 + $0x68] sm:$0xff]  }
  0x3d   : > { %1285 = vmatprep.subr.bf16.mxu1 %v1385_v22  ;;  %v1393_v30 = vld [vmem:[%s1610_s9 + $0xd8] sm:$0xff]   ;;  %v1397_v34 = vld [vmem:[%s1610_s9 + $0xe0] sm:$0xff]   ;;  %v1401_v38 = vld [vmem:[%s1610_s9 + $0xe8] sm:$0xff]  }
  0x3e   : > { %v1394_v31 = vld [vmem:[%s1610_s9 + $0x18] sm:$0xff]   ;;  %v1398_v35 = vld [vmem:[%s1610_s9 + $0x20] sm:$0xff]   ;;  %v1402_v39 = vld [vmem:[%s1610_s9 + $0x28] sm:$0xff]  }
  0x3f   : > { %1246 = vmatpush3.bf16.msra.mxu0 %v1386_v23  ;;  %v1395_v32 = vld [vmem:[%s1610_s9 + $0x98] sm:$0xff]   ;;  %v1399_v36 = vld [vmem:[%s1610_s9 + $0xa0] sm:$0xff]   ;;  %v1403_v40 = vld [vmem:[%s1610_s9 + $0xa8] sm:$0xff]  }
  0x40   : > { %1286 = vmatpush3.bf16.msra.mxu1 %v1387_v24  ;;  %1247 = vmatprep.subr.bf16.mxu0 %v1388_v25  ;;  %v1404_v41 = vld [vmem:[%s1610_s9 + $0x70] sm:$0xff]   ;;  %v1408_v45 = vld [vmem:[%s1610_s9 + $0x78] sm:$0xff]   ;;  %v407_v10 = vld [vmem:[%s1616_s18] sm:$0xff] }
  0x41   : > { %1287 = vmatprep.subr.bf16.mxu1 %v1389_v26  ;;  %v1405_v42 = vld [vmem:[%s1610_s9 + $0xf0] sm:$0xff]   ;;  %v1409_v46 = vld [vmem:[%s1610_s9 + $0xf8] sm:$0xff]   ;;  %v408_v15 = vld [vmem:[%s1616_s18 + $0x8] sm:$0xff] }
  0x42   : > { %v1406_v43 = vld [vmem:[%s1610_s9 + $0x30] sm:$0xff]   ;;  %v1410_v47 = vld [vmem:[%s1610_s9 + $0x38] sm:$0xff]  }
  0x43   : > { %1248 = vmatpush3.bf16.msra.mxu0 %v1390_v27  ;;  %v1407_v44 = vld [vmem:[%s1610_s9 + $0xb0] sm:$0xff]   ;;  %v1411_v48 = vld [vmem:[%s1610_s9 + $0xb8] sm:$0xff]  }
  0x44   : > { %1288 = vmatpush3.bf16.msra.mxu1 %v1391_v28  ;;  %1249 = vmatprep.subr.bf16.mxu0 %v1392_v29  ;;  %v1412_v49 = vld [vmem:[%s1628_s30] ss:$16 sps:$4 sm:$0xff]   ;;  %v1414_v50 = vld [vmem:[%s1628_s30 + $0x4] ss:$16 sps:$4 sm:$0xff]   ;;  %v1415_v51 = vld [vmem:[%s1628_s30 + $0x8] ss:$16 sps:$4 sm:$0xff]  }
  0x45   : > { %1289 = vmatprep.subr.bf16.mxu1 %v1393_v30  ;;  %v1417_v52 = vld [vmem:[%s1628_s30 + $0xc] ss:$16 sps:$4 sm:$0xff]   ;;  %799 = vmatprep.mubr.bf16.mxu0 %v1414_v50  ;;  %v1418_v53 = vld [vmem:[%s1628_s30 + $0x24] ss:$16 sps:$4 sm:$0xff]   ;;  %v1422_v55 = vld [vmem:[%s1628_s30 + $0x20] ss:$16 sps:$4 sm:$0xff]  }
  0x46   : > { %864 = vmatprep.mubr.bf16.mxu1 %v1417_v52  ;;  %v1420_v54 = vld [vmem:[%s1628_s30 + $0x2c] ss:$16 sps:$4 sm:$0xff]   ;;  %v1423_v56 = vld [vmem:[%s1628_s30 + $0x28] ss:$16 sps:$4 sm:$0xff]   ;;  %v1424_v57 = vld [vmem:[%s1628_s30 + $0x44] ss:$16 sps:$4 sm:$0xff]  }
  0x47   : > { %1250 = vmatpush3.bf16.msra.mxu0 %v1394_v31  ;;  %v1426_v58 = vld [vmem:[%s1628_s30 + $0x4c] ss:$16 sps:$4 sm:$0xff]   ;;  %v1428_v59 = vld [vmem:[%s1628_s30 + $0x40] ss:$16 sps:$4 sm:$0xff]   ;;  %v1429_v60 = vld [vmem:[%s1628_s30 + $0x48] ss:$16 sps:$4 sm:$0xff]  }
  0x48   : > { %1290 = vmatpush3.bf16.msra.mxu1 %v1395_v32  ;;  %1251 = vmatprep.subr.bf16.mxu0 %v1396_v33  ;;  %v1430_v61 = vld [vmem:[%s1628_s30 + $0x64] ss:$16 sps:$4 sm:$0xff]   ;;  %v1432_v62 = vld [vmem:[%s1628_s30 + $0x6c] ss:$16 sps:$4 sm:$0xff]   ;;  %v1434_v63 = vld [vmem:[%s1628_s30 + $0x60] ss:$16 sps:$4 sm:$0xff]  }
  0x49   : > { %1291 = vmatprep.subr.bf16.mxu1 %v1397_v34  ;;  %v1435_v0 = vld [vmem:[%s1628_s30 + $0x68] ss:$16 sps:$4 sm:$0xff]   ;;  %v409_v28 = vld [vmem:[%s1616_s18 + $0x10] sm:$0xff] }
  0x4a   : > { %v410_v33 = vld [vmem:[%s1616_s18 + $0x18] sm:$0xff] }
  0x4b   : > { %1252 = vmatpush3.bf16.msra.mxu0 %v1398_v35 }
  0x4c   : > { %1292 = vmatpush3.bf16.msra.mxu1 %v1399_v36  ;;  %1253 = vmatprep.subr.bf16.mxu0 %v1400_v37 }
  0x4d   : > { %1293 = vmatprep.subr.bf16.mxu1 %v1401_v38 }
  0x4f   : > { %1254 = vmatpush3.bf16.msra.mxu0 %v1402_v39 }
  0x50   : > { %1294 = vmatpush3.bf16.msra.mxu1 %v1403_v40  ;;  %1255 = vmatprep.subr.bf16.mxu0 %v1404_v41 }
  0x51   : > { %1295 = vmatprep.subr.bf16.mxu1 %v1405_v42 }
  0x53   : > { %1256 = vmatpush3.bf16.msra.mxu0 %v1406_v43 }
  0x54   : > { %1296 = vmatpush3.bf16.msra.mxu1 %v1407_v44  ;;  %1257 = vmatprep.subr.bf16.mxu0 %v1408_v45 }
  0x55   : > { %1297 = vmatprep.subr.bf16.mxu1 %v1409_v46  ;;  %v411_v46 = vld [vmem:[%s1616_s18 + $0x20] sm:$0xff] }
  0x57   : > { %1258 = vmatpush3.bf16.msra.mxu0 %v1410_v47 }
  0x58   : > { %1298 = vmatpush3.bf16.msra.mxu1 %v1411_v48 }
  0x5a   : > { %800 = vmatmul.mubr.bf16.vlgmr.msra.gmra.mrb[0].mxu0 %v1412_v49 }
  0x5b   : > { %865 = vmatmul.mubr.bf16.vlgmr.msra.gmra.mrb[0].mxu1 %v1415_v51  ;;  %807 = vmatprep.mubr.bf16.mxu0 %v1418_v53  ;;  %v412_v51 = vld [vmem:[%s1616_s18 + $0x28] sm:$0xff] }
  0x5c   : > { %872 = vmatprep.mubr.bf16.mxu1 %v1420_v54 }
  0x62   : > { %808 = vmatmul.mubr.bf16.gmra.mrb[4].mxu0 %v1422_v55 }
  0x63   : > { %873 = vmatmul.mubr.bf16.gmra.mrb[4].mxu1 %v1423_v56  ;;  %815 = vmatprep.mubr.bf16.mxu0 %v1424_v57 }
  0x64   : > { %880 = vmatprep.mubr.bf16.mxu1 %v1426_v58 }
  0x6a   : > { %816 = vmatmul.mubr.bf16.gmra.mrb[8].mxu0 %v1428_v59 }
  0x6b   : > { %881 = vmatmul.mubr.bf16.gmra.mrb[8].mxu1 %v1429_v60  ;;  %823 = vmatprep.mubr.bf16.mxu0 %v1430_v61 }
  0x6c   : > { %888 = vmatprep.mubr.bf16.mxu1 %v1432_v62 }
  0x72   : > { %824 = vmatmul.mubr.bf16.gmra.mrb[12].mxu0 %v1434_v63 }
  0x73   : > { %889 = vmatmul.mubr.bf16.gmra.mrb[12].mxu1 %v1435_v0  ;;  %v413_v0 = vld [vmem:[%s1616_s18 + $0x30] sm:$0xff] }
 0x12d   : > { %v1259_v1 = vpop.f32.mrb[0].mxu0 }
 0x12e   : > { %v1299_v2 = vpop.f32.mrb[0].mxu1  ;;  %v1260_v3 = vpop.f32.mrb[1].mxu0 }
 0x12f   : > { %v1261_v4 = vadd.f32 %v1260_v3, %v1259_v1  ;;  %v1300_v5 = vpop.f32.mrb[1].mxu1  ;;  %v1262_v6 = vpop.f32.mrb[2].mxu0 }
 0x130   : > { %v1301_v7 = vadd.f32 %v1300_v5, %v1299_v2  ;;  %v1302_v8 = vpop.f32.mrb[2].mxu1  ;;  %v1263_v9 = vpop.f32.mrb[3].mxu0  ;;  %v414_v5 = vld [vmem:[%s1616_s18 + $0x38] sm:$0xff] }
 0x131   : > { %v1264_v11 = vadd.f32 %v1263_v9, %v1262_v6  ;;  %v1303_v12 = vpop.f32.mrb[3].mxu1 }
 0x132   : > { %v867_v13 = vadd.f32 %v1301_v7, %v1261_v4  ;;  %v1304_v14 = vadd.f32 %v1303_v12, %v1302_v8 }
 0x134   : > { %v897_v16 = vadd.f32 %v867_v13, %v407_v10  ;;  %v870_v17 = vadd.f32 %v1304_v14, %v1264_v11 }
 0x135   : > { %v1265_v18 = vpop.f32.mrb[4].mxu0 }
 0x136   : > { %905 = vst [vmem:[%s1616_s18] sm:$0xff] %v897_v16  ;;  %v898_v19 = vadd.f32 %v870_v17, %v408_v15  ;;  %v1305_v20 = vpop.f32.mrb[4].mxu1  ;;  %v1266_v21 = vpop.f32.mrb[5].mxu0 }
 0x137   : > { %v1267_v22 = vadd.f32 %v1266_v21, %v1265_v18  ;;  %v1306_v23 = vpop.f32.mrb[5].mxu1  ;;  %v1268_v24 = vpop.f32.mrb[6].mxu0  ;;  %v1239_v18 = vld [vmem:[%s1748_s2] ss:$0 sm:$0xff] (!%p1238_p0) }
 0x138   : > { %906 = vst [vmem:[%s1616_s18 + $0x8] sm:$0xff] %v898_v19  ;;  %v1307_v25 = vadd.f32 %v1306_v23, %v1305_v20  ;;  %v1308_v26 = vpop.f32.mrb[6].mxu1  ;;  %v1269_v27 = vpop.f32.mrb[7].mxu0 }
 0x139   : > { %v1270_v29 = vadd.f32 %v1269_v27, %v1268_v24  ;;  %v1309_v30 = vpop.f32.mrb[7].mxu1 }
 0x13a   : > { %v875_v31 = vadd.f32 %v1307_v25, %v1267_v22  ;;  %v1310_v32 = vadd.f32 %v1309_v30, %v1308_v26 }
 0x13c   : > { %v899_v34 = vadd.f32 %v875_v31, %v409_v28  ;;  %v878_v35 = vadd.f32 %v1310_v32, %v1270_v29 }
 0x13d   : > { %v1271_v36 = vpop.f32.mrb[8].mxu0  ;;  %v917_v9 = vld [vmem:[%s1616_s18] sm:$0xff] (!%p1238_p0) }
 0x13e   : > { %907 = vst [vmem:[%s1616_s18 + $0x10] sm:$0xff] %v899_v34  ;;  %v900_v37 = vadd.f32 %v878_v35, %v410_v33  ;;  %v1311_v38 = vpop.f32.mrb[8].mxu1  ;;  %v1272_v39 = vpop.f32.mrb[9].mxu0  ;;  %v933_v15 = vmul.f32 (!%p1238_p0), %v917_v9, %v917_v9  ;;  %v956_v24 = vadd.f32 (!%p1238_p0), %v1239_v18, %v917_v9 }
 0x13f   : > { %v1273_v40 = vadd.f32 %v1272_v39, %v1271_v36  ;;  %v1312_v41 = vpop.f32.mrb[9].mxu1  ;;  %v1274_v42 = vpop.f32.mrb[10].mxu0  ;;  %v918_v10 = vld [vmem:[%s1616_s18 + $0x8] sm:$0xff] (!%p1238_p0) }
 0x140   : > { %908 = vst [vmem:[%s1616_s18 + $0x18] sm:$0xff] %v900_v37  ;;  %v1313_v43 = vadd.f32 %v1312_v41, %v1311_v38  ;;  %v1314_v44 = vpop.f32.mrb[10].mxu1  ;;  %v1275_v45 = vpop.f32.mrb[11].mxu0  ;;  %v925_v14 = vadd.f32 (!%p1238_p0), %v918_v10, %v917_v9  ;;  %v934_v16 = vmul.f32 (!%p1238_p0), %v918_v10, %v918_v10  ;;  %v957_v25 = vadd.f32 (!%p1238_p0), %v1239_v18, %v918_v10 }
 0x141   : > { %v1276_v47 = vadd.f32 %v1275_v45, %v1274_v42  ;;  %v1315_v48 = vpop.f32.mrb[11].mxu1  ;;  %964 = vst [vmem:[%s1616_s18] sm:$0xff] (!%p1238_p0), %v956_v24 }
 0x142   : > { %v883_v49 = vadd.f32 %v1313_v43, %v1273_v40  ;;  %v1316_v50 = vadd.f32 %v1315_v48, %v1314_v44  ;;  %v941_v22 = vadd.f32 (!%p1238_p0), %v934_v16, %v933_v15  ;;  %965 = vst [vmem:[%s1616_s18 + $0x8] sm:$0xff] (!%p1238_p0), %v957_v25 }
 0x144   : > { %v901_v52 = vadd.f32 %v883_v49, %v411_v46  ;;  %v886_v53 = vadd.f32 %v1316_v50, %v1276_v47 }
 0x145   : > { %v1277_v54 = vpop.f32.mrb[12].mxu0  ;;  %v919_v11 = vld [vmem:[%s1616_s18 + $0x10] sm:$0xff] (!%p1238_p0) }
 0x146   : > { %909 = vst [vmem:[%s1616_s18 + $0x20] sm:$0xff] %v901_v52  ;;  %v902_v55 = vadd.f32 %v886_v53, %v412_v51  ;;  %v1317_v56 = vpop.f32.mrb[12].mxu1  ;;  %v1278_v57 = vpop.f32.mrb[13].mxu0  ;;  %v935_v17 = vmul.f32 (!%p1238_p0), %v919_v11, %v919_v11  ;;  %v926_v19 = vadd.f32 (!%p1238_p0), %v925_v14, %v919_v11  ;;  %v958_v26 = vadd.f32 (!%p1238_p0), %v1239_v18, %v919_v11 }
 0x147   : > { %v1279_v58 = vadd.f32 %v1278_v57, %v1277_v54  ;;  %v1318_v59 = vpop.f32.mrb[13].mxu1  ;;  %v1280_v60 = vpop.f32.mrb[14].mxu0  ;;  %v920_v12 = vld [vmem:[%s1616_s18 + $0x18] sm:$0xff] (!%p1238_p0) }
 0x148   : > { %910 = vst [vmem:[%s1616_s18 + $0x28] sm:$0xff] %v902_v55  ;;  %v1319_v61 = vadd.f32 %v1318_v59, %v1317_v56  ;;  %v1320_v62 = vpop.f32.mrb[14].mxu1  ;;  %v1281_v63 = vpop.f32.mrb[15].mxu0  ;;  %v936_v20 = vmul.f32 (!%p1238_p0), %v920_v12, %v920_v12  ;;  %v959_v27 = vadd.f32 (!%p1238_p0), %v1239_v18, %v920_v12  ;;  %v927_v30 = vadd.f32 (!%p1238_p0), %v926_v19, %v920_v12 }
 0x149   : > { %v1282_v1 = vadd.f32 %v1281_v63, %v1280_v60  ;;  %v1321_v2 = vpop.f32.mrb[15].mxu1  ;;  %v942_v31 = vadd.f32 (!%p1238_p0), %v941_v22, %v935_v17  ;;  %966 = vst [vmem:[%s1616_s18 + $0x10] sm:$0xff] (!%p1238_p0), %v958_v26 }
 0x14a   : > { %v891_v3 = vadd.f32 %v1319_v61, %v1279_v58  ;;  %v1322_v4 = vadd.f32 %v1321_v2, %v1320_v62  ;;  %916 = sbr.rel (%p1238_p0) target bundleno = 349 (0x15d), region = 63  ;;  %967 = vst [vmem:[%s1616_s18 + $0x18] sm:$0xff] (!%p1238_p0), %v959_v27 }
 0x14b   : > { %v943_v38 = vadd.f32 (!%p1238_p0), %v942_v31, %v936_v20 }
 0x14c   : > { %v903_v6 = vadd.f32 %v891_v3, %v413_v0  ;;  %v894_v7 = vadd.f32 %v1322_v4, %v1282_v1 }
 0x14d   : > { %v921_v13 = vld [vmem:[%s1616_s18 + $0x20] sm:$0xff] (!%p1238_p0) }
 0x14e   : > { %911 = vst [vmem:[%s1616_s18 + $0x30] sm:$0xff] %v903_v6  ;;  %v904_v8 = vadd.f32 %v894_v7, %v414_v5  ;;  %v937_v21 = vmul.f32 (!%p1238_p0), %v921_v13, %v921_v13  ;;  %v960_v32 = vadd.f32 (!%p1238_p0), %v1239_v18, %v921_v13  ;;  %v928_v36 = vadd.f32 (!%p1238_p0), %v927_v30, %v921_v13 }
 0x14f   : > { %v922_v23 = vld [vmem:[%s1616_s18 + $0x28] sm:$0xff] (!%p1238_p0) }
 0x150   : > { %912 = vst [vmem:[%s1616_s18 + $0x38] sm:$0xff] %v904_v8  ;;  %v961_v33 = vadd.f32 (!%p1238_p0), %v1239_v18, %v922_v23  ;;  %v938_v37 = vmul.f32 (!%p1238_p0), %v922_v23, %v922_v23  ;;  %968 = vst [vmem:[%s1616_s18 + $0x20] sm:$0xff] (!%p1238_p0), %v960_v32  ;;  %v929_v39 = vadd.f32 (!%p1238_p0), %v928_v36, %v922_v23 }
 0x151   : > { %v944_v41 = vadd.f32 %v943_v38, %v937_v21 }
 0x152   : > { %969 = vst [vmem:[%s1616_s18 + $0x28] sm:$0xff] %v961_v33 }
 0x153   : > { %v945_v44 = vadd.f32 %v944_v41, %v938_v37 }
 0x155   : > { %v923_v28 = vld [vmem:[%s1616_s18 + $0x30] sm:$0xff] }
 0x156   : > { %v962_v34 = vadd.f32 %v1239_v18, %v923_v28  ;;  %v939_v40 = vmul.f32 %v923_v28, %v923_v28  ;;  %v930_v42 = vadd.f32 %v929_v39, %v923_v28 }
 0x157   : > { %v924_v29 = vld [vmem:[%s1616_s18 + $0x38] sm:$0xff] }
 0x158   : > { %v963_v35 = vadd.f32 %v1239_v18, %v924_v29  ;;  %970 = vst [vmem:[%s1616_s18 + $0x30] sm:$0xff] %v962_v34  ;;  %v940_v43 = vmul.f32 %v924_v29, %v924_v29  ;;  %v931_v45 = vadd.f32 %v930_v42, %v924_v29  ;;  %v946_v46 = vadd.f32 %v945_v44, %v939_v40 }
 0x15a   : > { %971 = vst [vmem:[%s1616_s18 + $0x38] sm:$0xff] %v963_v35  ;;  %932 = vst [vmem:[%s1621_s16] sm:$0xff] %v931_v45  ;;  %v947_v47 = vadd.f32 %v946_v46, %v940_v43 }
 0x15c   : > { %948 = vst [vmem:[%s1626_s7] sm:$0xff] %v947_v47 }
 0x15d PF: > { %s16_s24 = sadd.s32 1, %s1490_s24   ;;  %s1752_s18 = smov %s1470_s19 }
 0x15e   : > { %p13_p1 = scmp.ge.s32.totalorder %s16_s24, 6   ;;  %s1753_s19 = smov %s1574_s6 }
 0x15f   : > { %s1754_s20 = smov %s1482_s22  ;;  %s1755_s21 = smov %s1486_s23 }
 0x160   : > { %s1756_s22 = smov %s1759_s25  ;;  %s1757_s23 = smov %s1763_s26 }
 0x161   :  { %15 = sbr.rel (!%p13_p1) target bundleno = 4 (0x4), region = 128 }

// kernel: patchgan_discriminator.7
= control target key start
LH: loop header
LB: loop body
LE: loop exit
PB: predicated region body
PF: predicated region fallthrough
CT: control target
= control target key end

     0   :  { %s3107_s0 = inlined_call_operand.vmem [shape: bf16[32,2048], index: 0, kind: input, shape index: {}]   ;;  %s3108_s1 = inlined_call_operand.vmem [shape: bf16[2048,256], index: 1, kind: input, shape index: {}]   ;;  %s3109_s2 = inlined_call_operand.vmem [shape: f32[1,256], index: 2, kind: input, shape index: {}]   ;;  %s3110_s3 = inlined_call_operand.vmem [shape: f32[32,256], index: 3, kind: output, shape index: {0}]   ;;  %s3111_s4 = inlined_call_operand.vmem [shape: f32[8,256], index: 4, kind: output, shape index: {1}]   ;;  %s3112_s5 = inlined_call_operand.vmem [shape: f32[8,256], index: 5, kind: output, shape index: {2}]  }
   0x1   :  { %3117 = sst [smem:[#allocation9_spill]] %s3107_s0 }
   0x2   :  { %3118 = sst [smem:[#allocation10_spill]] %s3108_s1 }
   0x3   :  { %s2533_s18 = smov 0   ;;  %s2535_s19 = smov 0  }
   0x4   :  { %s2537_s20 = smov 0   ;;  %s2539_s21 = smov 0  }
   0x5   :  { %s2541_s22 = smov 0   ;;  %s2543_s23 = smov 0  }
   0x6   :  { %s2545_s24 = smov 0   ;;  %s2547_s25 = smov 0  }
   0x7   :  { %s2549_s26 = smov 0   ;;  %s2551_s27 = smov 0  }
   0x8   :  { %s2553_s28 = smov 0  }
   0x9 LB: > { %3119 = sst [smem:[#allocation5_spill]] %s2492_s26  ;;  %s2043_s29 = sadd.s32 4294967295, %s2500_s28   ;;  %s2500_s28 = sphi %s2553_s28, %s16_s28   ;;  %s2496_s27 = sphi %s2551_s27, %s3131_s27   ;;  %s2492_s26 = sphi %s2549_s26, %s3130_s26   ;;  %s2488_s25 = sphi %s2547_s25, %s3129_s25   ;;  %s2484_s24 = sphi %s2545_s24, %s3128_s24   ;;  %s2480_s23 = sphi %s2543_s23, %s3137_s23   ;;  %s2476_s22 = sphi %s2541_s22, %s3136_s22   ;;  %s2472_s21 = sphi %s2539_s21, %s3135_s21   ;;  %s2468_s20 = sphi %s2537_s20, %s3134_s20   ;;  %s2464_s19 = sphi %s2535_s19, %s3133_s19   ;;  %s2460_s18 = sphi %s2533_s18, %s3132_s18  }
   0xa   : > { %3120 = sst [smem:[#allocation6_spill]] %s2496_s27  ;;  %s28_s30 = sadd.s32 1, %s2492_s26 }
   0xb   : > { %p29_p0 = scmp.ge.s32.totalorder %s28_s30, 2  ;;  %s31_s6 = sadd.s32 1, %s2496_s27 }
   0xc   : > { %s44_s7 = sadd.s32 1, %s2480_s23  ;;  %p51_p1 = scmp.ne.s32.totalorder %s2480_s23, %s2476_s22 }
   0xd   : > { %s3139_s30 = smov (%p29_p0, %s28_s30), 0  ;;  %s3141_s6 = smov (!%p29_p0, %s31_s6), %s2496_s27 }
   0xe   : > { %3121 = sst [smem:[#allocation7_spill]] %s3139_s30  ;;  %s40_s8 = ssub.s32 %s2492_s26, %s3139_s30 }
   0xf   : > { %p52_p2 = scmp.eq.s32.totalorder %s2500_s28, 0  ;;  %p33_p3 = scmp.ge.s32.totalorder %s3141_s6, 2 }
  0x10   : > { %p42_p4 = scmp.eq.s32.totalorder %s40_s8, 0  ;;  %s72_s10 = sadd.s32 1, %s2472_s21 }
  0x11   : > { %p2600_p5 = por %p52_p2, %p51_p1  ;;  %s3143_s6 = smov (%p33_p3, %s3141_s6), 0 }
  0x12   : > { %3123 = sst [smem:[#allocation8_spill]] %s3143_s6  ;;  %s68_s12 = ssub.s32 %s2496_s27, %s3143_s6 }
  0x13   : > { %s2608_s11 = scalar_select %p42_p4, %s2480_s23, %s44_s7  }
  0x14   : > { %p79_p6 = scmp.ne.s32.totalorder %s2472_s21, %s2468_s20  ;;  %s69_s13 = sor.u32 %s68_s12, %s40_s8 }
  0x15   : > { %p124_p7 = scmp.eq.s32.totalorder %s68_s12, 0  ;;  %p70_p8 = scmp.eq.s32.totalorder %s69_s13, 0 }
  0x16   : > { %p2614_p9 = por %p79_p6, %p52_p2  ;;  %s126_s15 = sadd.s32 1, %s2464_s19 }
  0x17   : > { %p136_p10 = scmp.ne.s32.totalorder %s2464_s19, %s2460_s18  ;;  %p137_p11 = scmp.eq.s32.totalorder %s2043_s29, 3 }
  0x18   : > { %s2622_s16 = scalar_select %p70_p8, %s2472_s21, %s72_s10  }
  0x19   : > { %s2625_s17 = scalar_select %p124_p7, %s2464_s19, %s126_s15  }
  0x1a   : > { %p2627_p12 = por %p137_p11, %p136_p10  ;;  %p2046_p13 = scmp.ge.s32.totalorder %s2500_s28, 4 }
  0x1c   : > { %215 = sbr.rel (%p2046_p13) target bundleno = 148 (0x94), region = 16 }
  0x23   : > { %218 = sbr.rel (!%p2600_p5) target bundleno = 53 (0x35), region = 20  ;;  %s220_s7 = sand.u32 (%p2600_p5), 1, %s2480_s23  }
  0x24   : > { %s2147_s8 = sshll.u32 (%p2600_p5), %s2492_s26, 5  ;;  %s2047_s12 = sshll.u32 (%p2600_p5), %s220_s7, 7 }
  0x25   : > { %s3126_s0 = sld [smem:[#allocation9_spill]] (%p2600_p5)  ;;  %s222_s29 = scalar_lea.vmem (%p2600_p5), [#allocation2], %s2047_s12 }
  0x2b   : > { %s2639_s15 = scalar_lea.vmem %s3126_s0, %s2147_s8 }
  0x2c   : > { %v241_v0 = vld [vmem:[%s2639_s15] sm:$0xff]  ;;  %v243_v1 = vld [vmem:[%s2639_s15 + $0x8] sm:$0xff]  ;;  %v245_v2 = vld [vmem:[%s2639_s15 + $0x10] sm:$0xff] }
  0x2d   : > { %242 = vst [vmem:[%s222_s29] sm:$0xff] %v241_v0  ;;  %244 = vst [vmem:[%s222_s29 + $0x8] sm:$0xff] %v243_v1  ;;  %v247_v3 = vld [vmem:[%s2639_s15 + $0x18] sm:$0xff]  ;;  %v249_v4 = vld [vmem:[%s2639_s15 + $0x40] sm:$0xff] }
  0x2e   : > { %246 = vst [vmem:[%s222_s29 + $0x10] sm:$0xff] %v245_v2  ;;  %v251_v5 = vld [vmem:[%s2639_s15 + $0x48] sm:$0xff]  ;;  %248 = vst [vmem:[%s222_s29 + $0x18] sm:$0xff] %v247_v3  ;;  %v253_v6 = vld [vmem:[%s2639_s15 + $0x50] sm:$0xff] }
  0x2f   : > { %250 = vst [vmem:[%s222_s29 + $0x20] sm:$0xff] %v249_v4  ;;  %252 = vst [vmem:[%s222_s29 + $0x28] sm:$0xff] %v251_v5  ;;  %v255_v7 = vld [vmem:[%s2639_s15 + $0x58] sm:$0xff]  ;;  %v257_v8 = vld [vmem:[%s2639_s15 + $0x80] sm:$0xff] }
  0x30   : > { %254 = vst [vmem:[%s222_s29 + $0x30] sm:$0xff] %v253_v6  ;;  %256 = vst [vmem:[%s222_s29 + $0x38] sm:$0xff] %v255_v7  ;;  %v259_v9 = vld [vmem:[%s2639_s15 + $0x88] sm:$0xff]  ;;  %v261_v10 = vld [vmem:[%s2639_s15 + $0x90] sm:$0xff] }
  0x31   : > { %258 = vst [vmem:[%s222_s29 + $0x40] sm:$0xff] %v257_v8  ;;  %v263_v11 = vld [vmem:[%s2639_s15 + $0x98] sm:$0xff]  ;;  %260 = vst [vmem:[%s222_s29 + $0x48] sm:$0xff] %v259_v9  ;;  %v265_v12 = vld [vmem:[%s2639_s15 + $0xc0] sm:$0xff] }
  0x32   : > { %262 = vst [vmem:[%s222_s29 + $0x50] sm:$0xff] %v261_v10  ;;  %264 = vst [vmem:[%s222_s29 + $0x58] sm:$0xff] %v263_v11  ;;  %v267_v13 = vld [vmem:[%s2639_s15 + $0xc8] sm:$0xff]  ;;  %v269_v14 = vld [vmem:[%s2639_s15 + $0xd0] sm:$0xff] }
  0x33   : > { %266 = vst [vmem:[%s222_s29 + $0x60] sm:$0xff] %v265_v12  ;;  %268 = vst [vmem:[%s222_s29 + $0x68] sm:$0xff] %v267_v13  ;;  %v271_v15 = vld [vmem:[%s2639_s15 + $0xd8] sm:$0xff] }
  0x34   : > { %270 = vst [vmem:[%s222_s29 + $0x70] sm:$0xff] %v269_v14  ;;  %272 = vst [vmem:[%s222_s29 + $0x78] sm:$0xff] %v271_v15 }
  0x35 PF: > { %278 = sbr.rel (!%p2614_p9) target bundleno = 148 (0x94), region = 43  ;;  %s280_s9 = sand.u32 (%p2614_p9), 1, %s2472_s21  }
  0x36   : > { %s2148_s7 = sshll.u32 (%p2614_p9), %s2492_s26, 8  ;;  %s2050_s8 = sshll.u32 (%p2614_p9), %s280_s9, 9 }
  0x37   : > { %s285_s12 = sadd.s32 (%p2614_p9), %s2496_s27, %s2148_s7  ;;  %s3127_s1 = sld [smem:[#allocation10_spill]] (%p2614_p9) }
  0x38   : > { %s2053_s10 = sshll.u32 (%p2614_p9), %s285_s12, 2  ;;  %s2670_s14 = scalar_lea.vmem (%p2614_p9), [#allocation3], %s2050_s8 }
  0x3d   : > { %s2665_s6 = scalar_lea.vmem %s3127_s1, %s2053_s10 }
  0x3e   : > { %v303_v16 = vld [vmem:[%s2665_s6] sm:$0xf]  ;;  %v305_v17 = vld [vmem:[%s2665_s6 + $0x8] sm:$0xf]  ;;  %v307_v18 = vld [vmem:[%s2665_s6 + $0x10] sm:$0xf] }
  0x3f   : > { %304 = vst [vmem:[%s2670_s14] sm:$0xf] %v303_v16  ;;  %306 = vst [vmem:[%s2670_s14 + $0x4] sm:$0xf] %v305_v17  ;;  %v309_v19 = vld [vmem:[%s2665_s6 + $0x18] sm:$0xf] }
  0x40   : > { %308 = vst [vmem:[%s2670_s14 + $0x8] sm:$0xf] %v307_v18  ;;  %v311_v20 = vld [vmem:[%s2665_s6 + $0x20] sm:$0xf]  ;;  %v313_v21 = vld [vmem:[%s2665_s6 + $0x28] sm:$0xf] }
  0x41   : > { %310 = vst [vmem:[%s2670_s14 + $0xc] sm:$0xf] %v309_v19  ;;  %312 = vst [vmem:[%s2670_s14 + $0x10] sm:$0xf] %v311_v20  ;;  %v315_v22 = vld [vmem:[%s2665_s6 + $0x30] sm:$0xf] }
  0x42   : > { %314 = vst [vmem:[%s2670_s14 + $0x14] sm:$0xf] %v313_v21  ;;  %v317_v23 = vld [vmem:[%s2665_s6 + $0x38] sm:$0xf]  ;;  %v319_v24 = vld [vmem:[%s2665_s6 + $0x40] sm:$0xf] }
  0x43   : > { %316 = vst [vmem:[%s2670_s14 + $0x18] sm:$0xf] %v315_v22  ;;  %318 = vst [vmem:[%s2670_s14 + $0x1c] sm:$0xf] %v317_v23  ;;  %v321_v25 = vld [vmem:[%s2665_s6 + $0x48] sm:$0xf] }
  0x44   : > { %320 = vst [vmem:[%s2670_s14 + $0x20] sm:$0xf] %v319_v24  ;;  %v323_v26 = vld [vmem:[%s2665_s6 + $0x50] sm:$0xf]  ;;  %v325_v27 = vld [vmem:[%s2665_s6 + $0x58] sm:$0xf] }
  0x45   : > { %322 = vst [vmem:[%s2670_s14 + $0x24] sm:$0xf] %v321_v25  ;;  %324 = vst [vmem:[%s2670_s14 + $0x28] sm:$0xf] %v323_v26  ;;  %v327_v28 = vld [vmem:[%s2665_s6 + $0x60] sm:$0xf] }
  0x46   : > { %326 = vst [vmem:[%s2670_s14 + $0x2c] sm:$0xf] %v325_v27  ;;  %v329_v29 = vld [vmem:[%s2665_s6 + $0x68] sm:$0xf]  ;;  %v331_v30 = vld [vmem:[%s2665_s6 + $0x70] sm:$0xf] }
  0x47   : > { %328 = vst [vmem:[%s2670_s14 + $0x30] sm:$0xf] %v327_v28  ;;  %330 = vst [vmem:[%s2670_s14 + $0x34] sm:$0xf] %v329_v29  ;;  %v333_v31 = vld [vmem:[%s2665_s6 + $0x78] sm:$0xf] }
  0x48   : > { %332 = vst [vmem:[%s2670_s14 + $0x38] sm:$0xf] %v331_v30  ;;  %v335_v32 = vld [vmem:[%s2665_s6 + $0x80] sm:$0xf]  ;;  %v337_v33 = vld [vmem:[%s2665_s6 + $0x88] sm:$0xf] }
  0x49   : > { %334 = vst [vmem:[%s2670_s14 + $0x3c] sm:$0xf] %v333_v31  ;;  %336 = vst [vmem:[%s2670_s14 + $0x40] sm:$0xf] %v335_v32  ;;  %v339_v34 = vld [vmem:[%s2665_s6 + $0x90] sm:$0xf] }
  0x4a   : > { %338 = vst [vmem:[%s2670_s14 + $0x44] sm:$0xf] %v337_v33  ;;  %v341_v35 = vld [vmem:[%s2665_s6 + $0x98] sm:$0xf]  ;;  %v343_v36 = vld [vmem:[%s2665_s6 + $0xa0] sm:$0xf] }
  0x4b   : > { %340 = vst [vmem:[%s2670_s14 + $0x48] sm:$0xf] %v339_v34  ;;  %342 = vst [vmem:[%s2670_s14 + $0x4c] sm:$0xf] %v341_v35  ;;  %v345_v37 = vld [vmem:[%s2665_s6 + $0xa8] sm:$0xf] }
  0x4c   : > { %344 = vst [vmem:[%s2670_s14 + $0x50] sm:$0xf] %v343_v36  ;;  %v347_v38 = vld [vmem:[%s2665_s6 + $0xb0] sm:$0xf]  ;;  %v349_v39 = vld [vmem:[%s2665_s6 + $0xb8] sm:$0xf] }
  0x4d   : > { %346 = vst [vmem:[%s2670_s14 + $0x54] sm:$0xf] %v345_v37  ;;  %348 = vst [vmem:[%s2670_s14 + $0x58] sm:$0xf] %v347_v38  ;;  %v351_v40 = vld [vmem:[%s2665_s6 + $0xc0] sm:$0xf] }
  0x4e   : > { %350 = vst [vmem:[%s2670_s14 + $0x5c] sm:$0xf] %v349_v39  ;;  %v353_v41 = vld [vmem:[%s2665_s6 + $0xc8] sm:$0xf]  ;;  %v355_v42 = vld [vmem:[%s2665_s6 + $0xd0] sm:$0xf] }
  0x4f   : > { %352 = vst [vmem:[%s2670_s14 + $0x60] sm:$0xf] %v351_v40  ;;  %354 = vst [vmem:[%s2670_s14 + $0x64] sm:$0xf] %v353_v41  ;;  %v357_v43 = vld [vmem:[%s2665_s6 + $0xd8] sm:$0xf] }
  0x50   : > { %356 = vst [vmem:[%s2670_s14 + $0x68] sm:$0xf] %v355_v42  ;;  %v359_v44 = vld [vmem:[%s2665_s6 + $0xe0] sm:$0xf]  ;;  %v361_v45 = vld [vmem:[%s2665_s6 + $0xe8] sm:$0xf] }
  0x51   : > { %358 = vst [vmem:[%s2670_s14 + $0x6c] sm:$0xf] %v357_v43  ;;  %360 = vst [vmem:[%s2670_s14 + $0x70] sm:$0xf] %v359_v44  ;;  %v363_v46 = vld [vmem:[%s2665_s6 + $0xf0] sm:$0xf] }
  0x52   : > { %362 = vst [vmem:[%s2670_s14 + $0x74] sm:$0xf] %v361_v45  ;;  %v365_v47 = vld [vmem:[%s2665_s6 + $0xf8] sm:$0xf]  ;;  %v367_v48 = vld [vmem:[%s2665_s6 + $0x100] sm:$0xf] }
  0x53   : > { %364 = vst [vmem:[%s2670_s14 + $0x78] sm:$0xf] %v363_v46  ;;  %366 = vst [vmem:[%s2670_s14 + $0x7c] sm:$0xf] %v365_v47  ;;  %v369_v49 = vld [vmem:[%s2665_s6 + $0x108] sm:$0xf] }
  0x54   : > { %368 = vst [vmem:[%s2670_s14 + $0x80] sm:$0xf] %v367_v48  ;;  %v371_v50 = vld [vmem:[%s2665_s6 + $0x110] sm:$0xf]  ;;  %v373_v51 = vld [vmem:[%s2665_s6 + $0x118] sm:$0xf] }
  0x55   : > { %370 = vst [vmem:[%s2670_s14 + $0x84] sm:$0xf] %v369_v49  ;;  %372 = vst [vmem:[%s2670_s14 + $0x88] sm:$0xf] %v371_v50  ;;  %v375_v52 = vld [vmem:[%s2665_s6 + $0x120] sm:$0xf] }
  0x56   : > { %374 = vst [vmem:[%s2670_s14 + $0x8c] sm:$0xf] %v373_v51  ;;  %v377_v53 = vld [vmem:[%s2665_s6 + $0x128] sm:$0xf]  ;;  %v379_v54 = vld [vmem:[%s2665_s6 + $0x130] sm:$0xf] }
  0x57   : > { %376 = vst [vmem:[%s2670_s14 + $0x90] sm:$0xf] %v375_v52  ;;  %378 = vst [vmem:[%s2670_s14 + $0x94] sm:$0xf] %v377_v53  ;;  %v381_v55 = vld [vmem:[%s2665_s6 + $0x138] sm:$0xf] }
  0x58   : > { %380 = vst [vmem:[%s2670_s14 + $0x98] sm:$0xf] %v379_v54  ;;  %v383_v56 = vld [vmem:[%s2665_s6 + $0x140] sm:$0xf]  ;;  %v385_v57 = vld [vmem:[%s2665_s6 + $0x148] sm:$0xf] }
  0x59   : > { %382 = vst [vmem:[%s2670_s14 + $0x9c] sm:$0xf] %v381_v55  ;;  %384 = vst [vmem:[%s2670_s14 + $0xa0] sm:$0xf] %v383_v56  ;;  %v387_v58 = vld [vmem:[%s2665_s6 + $0x150] sm:$0xf] }
  0x5a   : > { %386 = vst [vmem:[%s2670_s14 + $0xa4] sm:$0xf] %v385_v57  ;;  %v389_v59 = vld [vmem:[%s2665_s6 + $0x158] sm:$0xf]  ;;  %v391_v60 = vld [vmem:[%s2665_s6 + $0x160] sm:$0xf] }
  0x5b   : > { %388 = vst [vmem:[%s2670_s14 + $0xa8] sm:$0xf] %v387_v58  ;;  %390 = vst [vmem:[%s2670_s14 + $0xac] sm:$0xf] %v389_v59  ;;  %v393_v61 = vld [vmem:[%s2665_s6 + $0x168] sm:$0xf] }
  0x5c   : > { %392 = vst [vmem:[%s2670_s14 + $0xb0] sm:$0xf] %v391_v60  ;;  %v395_v62 = vld [vmem:[%s2665_s6 + $0x170] sm:$0xf]  ;;  %v397_v63 = vld [vmem:[%s2665_s6 + $0x178] sm:$0xf] }
  0x5d   : > { %394 = vst [vmem:[%s2670_s14 + $0xb4] sm:$0xf] %v393_v61  ;;  %396 = vst [vmem:[%s2670_s14 + $0xb8] sm:$0xf] %v395_v62  ;;  %v399_v0 = vld [vmem:[%s2665_s6 + $0x180] sm:$0xf] }
  0x5e   : > { %398 = vst [vmem:[%s2670_s14 + $0xbc] sm:$0xf] %v397_v63  ;;  %v401_v1 = vld [vmem:[%s2665_s6 + $0x188] sm:$0xf]  ;;  %v403_v2 = vld [vmem:[%s2665_s6 + $0x190] sm:$0xf] }
  0x5f   : > { %400 = vst [vmem:[%s2670_s14 + $0xc0] sm:$0xf] %v399_v0  ;;  %402 = vst [vmem:[%s2670_s14 + $0xc4] sm:$0xf] %v401_v1  ;;  %v405_v3 = vld [vmem:[%s2665_s6 + $0x198] sm:$0xf] }
  0x60   : > { %404 = vst [vmem:[%s2670_s14 + $0xc8] sm:$0xf] %v403_v2  ;;  %v407_v4 = vld [vmem:[%s2665_s6 + $0x1a0] sm:$0xf]  ;;  %v409_v5 = vld [vmem:[%s2665_s6 + $0x1a8] sm:$0xf] }
  0x61   : > { %406 = vst [vmem:[%s2670_s14 + $0xcc] sm:$0xf] %v405_v3  ;;  %408 = vst [vmem:[%s2670_s14 + $0xd0] sm:$0xf] %v407_v4  ;;  %v411_v6 = vld [vmem:[%s2665_s6 + $0x1b0] sm:$0xf] }
  0x62   : > { %410 = vst [vmem:[%s2670_s14 + $0xd4] sm:$0xf] %v409_v5  ;;  %v413_v7 = vld [vmem:[%s2665_s6 + $0x1b8] sm:$0xf]  ;;  %v415_v8 = vld [vmem:[%s2665_s6 + $0x1c0] sm:$0xf] }
  0x63   : > { %412 = vst [vmem:[%s2670_s14 + $0xd8] sm:$0xf] %v411_v6  ;;  %414 = vst [vmem:[%s2670_s14 + $0xdc] sm:$0xf] %v413_v7  ;;  %v417_v9 = vld [vmem:[%s2665_s6 + $0x1c8] sm:$0xf] }
  0x64   : > { %416 = vst [vmem:[%s2670_s14 + $0xe0] sm:$0xf] %v415_v8  ;;  %v419_v10 = vld [vmem:[%s2665_s6 + $0x1d0] sm:$0xf]  ;;  %v421_v11 = vld [vmem:[%s2665_s6 + $0x1d8] sm:$0xf] }
  0x65   : > { %418 = vst [vmem:[%s2670_s14 + $0xe4] sm:$0xf] %v417_v9  ;;  %420 = vst [vmem:[%s2670_s14 + $0xe8] sm:$0xf] %v419_v10  ;;  %v423_v12 = vld [vmem:[%s2665_s6 + $0x1e0] sm:$0xf] }
  0x66   : > { %422 = vst [vmem:[%s2670_s14 + $0xec] sm:$0xf] %v421_v11  ;;  %v425_v13 = vld [vmem:[%s2665_s6 + $0x1e8] sm:$0xf]  ;;  %v427_v14 = vld [vmem:[%s2665_s6 + $0x1f0] sm:$0xf] }
  0x67   : > { %424 = vst [vmem:[%s2670_s14 + $0xf0] sm:$0xf] %v423_v12  ;;  %426 = vst [vmem:[%s2670_s14 + $0xf4] sm:$0xf] %v425_v13  ;;  %v429_v15 = vld [vmem:[%s2665_s6 + $0x1f8] sm:$0xf] }
  0x68   : > { %428 = vst [vmem:[%s2670_s14 + $0xf8] sm:$0xf] %v427_v14  ;;  %v431_v16 = vld [vmem:[%s2665_s6 + $0x200] sm:$0xf]  ;;  %v433_v17 = vld [vmem:[%s2665_s6 + $0x208] sm:$0xf] }
  0x69   : > { %430 = vst [vmem:[%s2670_s14 + $0xfc] sm:$0xf] %v429_v15  ;;  %432 = vst [vmem:[%s2670_s14 + $0x100] sm:$0xf] %v431_v16  ;;  %v435_v18 = vld [vmem:[%s2665_s6 + $0x210] sm:$0xf] }
  0x6a   : > { %434 = vst [vmem:[%s2670_s14 + $0x104] sm:$0xf] %v433_v17  ;;  %v437_v19 = vld [vmem:[%s2665_s6 + $0x218] sm:$0xf]  ;;  %v439_v20 = vld [vmem:[%s2665_s6 + $0x220] sm:$0xf] }
  0x6b   : > { %436 = vst [vmem:[%s2670_s14 + $0x108] sm:$0xf] %v435_v18  ;;  %438 = vst [vmem:[%s2670_s14 + $0x10c] sm:$0xf] %v437_v19  ;;  %v441_v21 = vld [vmem:[%s2665_s6 + $0x228] sm:$0xf] }
  0x6c   : > { %440 = vst [vmem:[%s2670_s14 + $0x110] sm:$0xf] %v439_v20  ;;  %v443_v22 = vld [vmem:[%s2665_s6 + $0x230] sm:$0xf]  ;;  %v445_v23 = vld [vmem:[%s2665_s6 + $0x238] sm:$0xf] }
  0x6d   : > { %442 = vst [vmem:[%s2670_s14 + $0x114] sm:$0xf] %v441_v21  ;;  %444 = vst [vmem:[%s2670_s14 + $0x118] sm:$0xf] %v443_v22  ;;  %v447_v24 = vld [vmem:[%s2665_s6 + $0x240] sm:$0xf] }
  0x6e   : > { %446 = vst [vmem:[%s2670_s14 + $0x11c] sm:$0xf] %v445_v23  ;;  %v449_v25 = vld [vmem:[%s2665_s6 + $0x248] sm:$0xf]  ;;  %v451_v26 = vld [vmem:[%s2665_s6 + $0x250] sm:$0xf] }
  0x6f   : > { %448 = vst [vmem:[%s2670_s14 + $0x120] sm:$0xf] %v447_v24  ;;  %450 = vst [vmem:[%s2670_s14 + $0x124] sm:$0xf] %v449_v25  ;;  %v453_v27 = vld [vmem:[%s2665_s6 + $0x258] sm:$0xf] }
  0x70   : > { %452 = vst [vmem:[%s2670_s14 + $0x128] sm:$0xf] %v451_v26  ;;  %v455_v28 = vld [vmem:[%s2665_s6 + $0x260] sm:$0xf]  ;;  %v457_v29 = vld [vmem:[%s2665_s6 + $0x268] sm:$0xf] }
  0x71   : > { %454 = vst [vmem:[%s2670_s14 + $0x12c] sm:$0xf] %v453_v27  ;;  %456 = vst [vmem:[%s2670_s14 + $0x130] sm:$0xf] %v455_v28  ;;  %v459_v30 = vld [vmem:[%s2665_s6 + $0x270] sm:$0xf] }
  0x72   : > { %458 = vst [vmem:[%s2670_s14 + $0x134] sm:$0xf] %v457_v29  ;;  %v461_v31 = vld [vmem:[%s2665_s6 + $0x278] sm:$0xf]  ;;  %v463_v32 = vld [vmem:[%s2665_s6 + $0x280] sm:$0xf] }
  0x73   : > { %460 = vst [vmem:[%s2670_s14 + $0x138] sm:$0xf] %v459_v30  ;;  %462 = vst [vmem:[%s2670_s14 + $0x13c] sm:$0xf] %v461_v31  ;;  %v465_v33 = vld [vmem:[%s2665_s6 + $0x288] sm:$0xf] }
  0x74   : > { %464 = vst [vmem:[%s2670_s14 + $0x140] sm:$0xf] %v463_v32  ;;  %v467_v34 = vld [vmem:[%s2665_s6 + $0x290] sm:$0xf]  ;;  %v469_v35 = vld [vmem:[%s2665_s6 + $0x298] sm:$0xf] }
  0x75   : > { %466 = vst [vmem:[%s2670_s14 + $0x144] sm:$0xf] %v465_v33  ;;  %468 = vst [vmem:[%s2670_s14 + $0x148] sm:$0xf] %v467_v34  ;;  %v471_v36 = vld [vmem:[%s2665_s6 + $0x2a0] sm:$0xf] }
  0x76   : > { %470 = vst [vmem:[%s2670_s14 + $0x14c] sm:$0xf] %v469_v35  ;;  %v473_v37 = vld [vmem:[%s2665_s6 + $0x2a8] sm:$0xf]  ;;  %v475_v38 = vld [vmem:[%s2665_s6 + $0x2b0] sm:$0xf] }
  0x77   : > { %472 = vst [vmem:[%s2670_s14 + $0x150] sm:$0xf] %v471_v36  ;;  %474 = vst [vmem:[%s2670_s14 + $0x154] sm:$0xf] %v473_v37  ;;  %v477_v39 = vld [vmem:[%s2665_s6 + $0x2b8] sm:$0xf] }
  0x78   : > { %476 = vst [vmem:[%s2670_s14 + $0x158] sm:$0xf] %v475_v38  ;;  %v479_v40 = vld [vmem:[%s2665_s6 + $0x2c0] sm:$0xf]  ;;  %v481_v41 = vld [vmem:[%s2665_s6 + $0x2c8] sm:$0xf] }
  0x79   : > { %478 = vst [vmem:[%s2670_s14 + $0x15c] sm:$0xf] %v477_v39  ;;  %480 = vst [vmem:[%s2670_s14 + $0x160] sm:$0xf] %v479_v40  ;;  %v483_v42 = vld [vmem:[%s2665_s6 + $0x2d0] sm:$0xf] }
  0x7a   : > { %482 = vst [vmem:[%s2670_s14 + $0x164] sm:$0xf] %v481_v41  ;;  %v485_v43 = vld [vmem:[%s2665_s6 + $0x2d8] sm:$0xf]  ;;  %v487_v44 = vld [vmem:[%s2665_s6 + $0x2e0] sm:$0xf] }
  0x7b   : > { %484 = vst [vmem:[%s2670_s14 + $0x168] sm:$0xf] %v483_v42  ;;  %486 = vst [vmem:[%s2670_s14 + $0x16c] sm:$0xf] %v485_v43  ;;  %v489_v45 = vld [vmem:[%s2665_s6 + $0x2e8] sm:$0xf] }
  0x7c   : > { %488 = vst [vmem:[%s2670_s14 + $0x170] sm:$0xf] %v487_v44  ;;  %v491_v46 = vld [vmem:[%s2665_s6 + $0x2f0] sm:$0xf]  ;;  %v493_v47 = vld [vmem:[%s2665_s6 + $0x2f8] sm:$0xf] }
  0x7d   : > { %490 = vst [vmem:[%s2670_s14 + $0x174] sm:$0xf] %v489_v45  ;;  %492 = vst [vmem:[%s2670_s14 + $0x178] sm:$0xf] %v491_v46  ;;  %v495_v48 = vld [vmem:[%s2665_s6 + $0x300] sm:$0xf] }
  0x7e   : > { %494 = vst [vmem:[%s2670_s14 + $0x17c] sm:$0xf] %v493_v47  ;;  %v497_v49 = vld [vmem:[%s2665_s6 + $0x308] sm:$0xf]  ;;  %v499_v50 = vld [vmem:[%s2665_s6 + $0x310] sm:$0xf] }
  0x7f   : > { %496 = vst [vmem:[%s2670_s14 + $0x180] sm:$0xf] %v495_v48  ;;  %498 = vst [vmem:[%s2670_s14 + $0x184] sm:$0xf] %v497_v49  ;;  %v501_v51 = vld [vmem:[%s2665_s6 + $0x318] sm:$0xf] }
  0x80   : > { %500 = vst [vmem:[%s2670_s14 + $0x188] sm:$0xf] %v499_v50  ;;  %v503_v52 = vld [vmem:[%s2665_s6 + $0x320] sm:$0xf]  ;;  %v505_v53 = vld [vmem:[%s2665_s6 + $0x328] sm:$0xf] }
  0x81   : > { %502 = vst [vmem:[%s2670_s14 + $0x18c] sm:$0xf] %v501_v51  ;;  %504 = vst [vmem:[%s2670_s14 + $0x190] sm:$0xf] %v503_v52  ;;  %v507_v54 = vld [vmem:[%s2665_s6 + $0x330] sm:$0xf] }
  0x82   : > { %506 = vst [vmem:[%s2670_s14 + $0x194] sm:$0xf] %v505_v53  ;;  %v509_v55 = vld [vmem:[%s2665_s6 + $0x338] sm:$0xf]  ;;  %v511_v56 = vld [vmem:[%s2665_s6 + $0x340] sm:$0xf] }
  0x83   : > { %508 = vst [vmem:[%s2670_s14 + $0x198] sm:$0xf] %v507_v54  ;;  %510 = vst [vmem:[%s2670_s14 + $0x19c] sm:$0xf] %v509_v55  ;;  %v513_v57 = vld [vmem:[%s2665_s6 + $0x348] sm:$0xf] }
  0x84   : > { %512 = vst [vmem:[%s2670_s14 + $0x1a0] sm:$0xf] %v511_v56  ;;  %v515_v58 = vld [vmem:[%s2665_s6 + $0x350] sm:$0xf]  ;;  %v517_v59 = vld [vmem:[%s2665_s6 + $0x358] sm:$0xf] }
  0x85   : > { %514 = vst [vmem:[%s2670_s14 + $0x1a4] sm:$0xf] %v513_v57  ;;  %516 = vst [vmem:[%s2670_s14 + $0x1a8] sm:$0xf] %v515_v58  ;;  %v519_v60 = vld [vmem:[%s2665_s6 + $0x360] sm:$0xf] }
  0x86   : > { %518 = vst [vmem:[%s2670_s14 + $0x1ac] sm:$0xf] %v517_v59  ;;  %v521_v61 = vld [vmem:[%s2665_s6 + $0x368] sm:$0xf]  ;;  %v523_v62 = vld [vmem:[%s2665_s6 + $0x370] sm:$0xf] }
  0x87   : > { %520 = vst [vmem:[%s2670_s14 + $0x1b0] sm:$0xf] %v519_v60  ;;  %522 = vst [vmem:[%s2670_s14 + $0x1b4] sm:$0xf] %v521_v61  ;;  %v525_v63 = vld [vmem:[%s2665_s6 + $0x378] sm:$0xf] }
  0x88   : > { %524 = vst [vmem:[%s2670_s14 + $0x1b8] sm:$0xf] %v523_v62  ;;  %v527_v0 = vld [vmem:[%s2665_s6 + $0x380] sm:$0xf]  ;;  %v529_v1 = vld [vmem:[%s2665_s6 + $0x388] sm:$0xf] }
  0x89   : > { %526 = vst [vmem:[%s2670_s14 + $0x1bc] sm:$0xf] %v525_v63  ;;  %528 = vst [vmem:[%s2670_s14 + $0x1c0] sm:$0xf] %v527_v0  ;;  %v531_v2 = vld [vmem:[%s2665_s6 + $0x390] sm:$0xf] }
  0x8a   : > { %530 = vst [vmem:[%s2670_s14 + $0x1c4] sm:$0xf] %v529_v1  ;;  %v533_v3 = vld [vmem:[%s2665_s6 + $0x398] sm:$0xf]  ;;  %v535_v4 = vld [vmem:[%s2665_s6 + $0x3a0] sm:$0xf] }
  0x8b   : > { %532 = vst [vmem:[%s2670_s14 + $0x1c8] sm:$0xf] %v531_v2  ;;  %534 = vst [vmem:[%s2670_s14 + $0x1cc] sm:$0xf] %v533_v3  ;;  %v537_v5 = vld [vmem:[%s2665_s6 + $0x3a8] sm:$0xf] }
  0x8c   : > { %536 = vst [vmem:[%s2670_s14 + $0x1d0] sm:$0xf] %v535_v4  ;;  %v539_v6 = vld [vmem:[%s2665_s6 + $0x3b0] sm:$0xf]  ;;  %v541_v7 = vld [vmem:[%s2665_s6 + $0x3b8] sm:$0xf] }
  0x8d   : > { %538 = vst [vmem:[%s2670_s14 + $0x1d4] sm:$0xf] %v537_v5  ;;  %540 = vst [vmem:[%s2670_s14 + $0x1d8] sm:$0xf] %v539_v6  ;;  %v543_v8 = vld [vmem:[%s2665_s6 + $0x3c0] sm:$0xf] }
  0x8e   : > { %542 = vst [vmem:[%s2670_s14 + $0x1dc] sm:$0xf] %v541_v7  ;;  %v545_v9 = vld [vmem:[%s2665_s6 + $0x3c8] sm:$0xf]  ;;  %v547_v10 = vld [vmem:[%s2665_s6 + $0x3d0] sm:$0xf] }
  0x8f   : > { %544 = vst [vmem:[%s2670_s14 + $0x1e0] sm:$0xf] %v543_v8  ;;  %546 = vst [vmem:[%s2670_s14 + $0x1e4] sm:$0xf] %v545_v9  ;;  %v549_v11 = vld [vmem:[%s2665_s6 + $0x3d8] sm:$0xf] }
  0x90   : > { %548 = vst [vmem:[%s2670_s14 + $0x1e8] sm:$0xf] %v547_v10  ;;  %v551_v12 = vld [vmem:[%s2665_s6 + $0x3e0] sm:$0xf]  ;;  %v553_v13 = vld [vmem:[%s2665_s6 + $0x3e8] sm:$0xf] }
  0x91   : > { %550 = vst [vmem:[%s2670_s14 + $0x1ec] sm:$0xf] %v549_v11  ;;  %552 = vst [vmem:[%s2670_s14 + $0x1f0] sm:$0xf] %v551_v12  ;;  %v555_v14 = vld [vmem:[%s2665_s6 + $0x3f0] sm:$0xf] }
  0x92   : > { %554 = vst [vmem:[%s2670_s14 + $0x1f4] sm:$0xf] %v553_v13  ;;  %v557_v15 = vld [vmem:[%s2665_s6 + $0x3f8] sm:$0xf]  ;;  %556 = vst [vmem:[%s2670_s14 + $0x1f8] sm:$0xf] %v555_v14 }
  0x93   : > { %558 = vst [vmem:[%s2670_s14 + $0x1fc] sm:$0xf] %v557_v15 }
  0x94 PF: > { %p2054_p0 = scmp.ge.s32.totalorder %s2500_s28, 1  ;;  %p842_p1 = scmp.lt.s32.totalorder %s2500_s28, 5 }
  0x96   : > { %p843_p2 = pnand %p2054_p0, %p842_p1 }
  0x97   : > { %s849_s0 = sand.u32 (!%p843_p2), 1, %s2476_s22   ;;  %s856_s15 = sand.u32 (!%p843_p2), 1, %s2468_s20  }
  0x98   : > { %846 = sbr.rel (%p843_p2) target bundleno = 485 (0x1e5), region = 88  ;;  %s2055_s29 = sshll.u32 (!%p843_p2), %s849_s0, 7 }
  0x99   : > { %s2056_s9 = sshll.u32 (!%p843_p2), %s856_s15, 9  ;;  %s882_s6 = sand.u32 (!%p843_p2), 1, %s2460_s18  }
  0x9a   : > { %p908_p3 = scmp.lt.s32.totalorder (!%p843_p2), %s2488_s25, 1  ;;  %s2057_s7 = sshll.u32 (!%p843_p2), %s882_s6, 5 }
  0x9b   : > { %s2949_s0 = scalar_lea.vmem (!%p843_p2), [#allocation2], %s2055_s29  ;;  %s2951_s15 = scalar_lea.vmem (!%p843_p2), [#allocation3], %s2056_s9 }
  0x9c   : > { %s2953_s6 = scalar_lea.vmem (!%p843_p2), [#allocation4], %s2057_s7  ;;  %p2060_p4 = scmp.ne.s32.totalorder (!%p843_p2), %s2484_s24, 0 }
  0x9f   : > { %s2932_s8 = scalar_select %p908_p3, %s2488_s25, 1 }
  0xa0   : > { %932 = sbr.rel (%p2060_p4) target bundleno = 167 (0xa7), region = 100  ;;  %v2502_v16 = vmov (!%p2060_p4), 0.0  }
  0xa1   : > { %s910_s13 = scalar_lea.vmem %s3109_s2, %s2932_s8  ;;  %s2058_s14 = sshll.u32 %s2932_s8, 3  ;;  %933 = vst [vmem:[%s2953_s6] sm:$0xff] (!%p2060_p4), %v2502_v16  ;;  %934 = vst [vmem:[%s2953_s6 + $0x8] sm:$0xff] (!%p2060_p4), %v2502_v16 }
  0xa2   : > { %s2942_s26 = scalar_lea.vmem %s3111_s4, %s2058_s14  ;;  %s2947_s18 = scalar_lea.vmem %s3112_s5, %s2058_s14  ;;  %935 = vst [vmem:[%s2953_s6 + $0x10] sm:$0xff] (!%p2060_p4), %v2502_v16  ;;  %936 = vst [vmem:[%s2953_s6 + $0x18] sm:$0xff] (!%p2060_p4), %v2502_v16 }
  0xa7 PF: > { %v2350_v17 = vld [vmem:[%s2951_s15 + $0x40] sm:$0xff]   ;;  %v2354_v21 = vld [vmem:[%s2951_s15 + $0x48] sm:$0xff]   ;;  %v2358_v25 = vld [vmem:[%s2951_s15 + $0x50] sm:$0xff]   ;;  %p2141_p5 = scmp.ne.s32.totalorder %s2484_s24, 1 }
  0xa8   : > { %v2351_v18 = vld [vmem:[%s2951_s15 + $0xc0] sm:$0xff]   ;;  %2149 = vmatprep.subr.bf16.mxu0 %v2350_v17  ;;  %v2355_v22 = vld [vmem:[%s2951_s15 + $0xc8] sm:$0xff]   ;;  %v2359_v26 = vld [vmem:[%s2951_s15 + $0xd0] sm:$0xff]  }
  0xa9   : > { %v2352_v19 = vld [vmem:[%s2951_s15] sm:$0xff]   ;;  %2177 = vmatprep.subr.bf16.mxu1 %v2351_v18  ;;  %v2356_v23 = vld [vmem:[%s2951_s15 + $0x8] sm:$0xff]   ;;  %v2360_v27 = vld [vmem:[%s2951_s15 + $0x10] sm:$0xff]  }
  0xaa   : > { %v2353_v20 = vld [vmem:[%s2951_s15 + $0x80] sm:$0xff]   ;;  %2150 = vmatpush3.bf16.msra.mxu0 %v2352_v19  ;;  %v2357_v24 = vld [vmem:[%s2951_s15 + $0x88] sm:$0xff]   ;;  %v2361_v28 = vld [vmem:[%s2951_s15 + $0x90] sm:$0xff]  }
  0xab   : > { %2178 = vmatpush3.bf16.msra.mxu1 %v2353_v20  ;;  %2151 = vmatprep.subr.bf16.mxu0 %v2354_v21  ;;  %v2362_v29 = vld [vmem:[%s2951_s15 + $0x58] sm:$0xff]   ;;  %v2366_v33 = vld [vmem:[%s2951_s15 + $0x60] sm:$0xff]   ;;  %v2370_v37 = vld [vmem:[%s2951_s15 + $0x68] sm:$0xff]  }
  0xac   : > { %2179 = vmatprep.subr.bf16.mxu1 %v2355_v22  ;;  %v2363_v30 = vld [vmem:[%s2951_s15 + $0xd8] sm:$0xff]   ;;  %v2367_v34 = vld [vmem:[%s2951_s15 + $0xe0] sm:$0xff]   ;;  %v2371_v38 = vld [vmem:[%s2951_s15 + $0xe8] sm:$0xff]  }
  0xad   : > { %v2364_v31 = vld [vmem:[%s2951_s15 + $0x18] sm:$0xff]   ;;  %v2368_v35 = vld [vmem:[%s2951_s15 + $0x20] sm:$0xff]   ;;  %v2372_v39 = vld [vmem:[%s2951_s15 + $0x28] sm:$0xff]  }
  0xae   : > { %2152 = vmatpush3.bf16.msra.mxu0 %v2356_v23  ;;  %v2365_v32 = vld [vmem:[%s2951_s15 + $0x98] sm:$0xff]   ;;  %v2369_v36 = vld [vmem:[%s2951_s15 + $0xa0] sm:$0xff]   ;;  %v2373_v40 = vld [vmem:[%s2951_s15 + $0xa8] sm:$0xff]  }
  0xaf   : > { %2180 = vmatpush3.bf16.msra.mxu1 %v2357_v24  ;;  %2153 = vmatprep.subr.bf16.mxu0 %v2358_v25  ;;  %v2374_v41 = vld [vmem:[%s2951_s15 + $0x70] sm:$0xff]   ;;  %v2378_v45 = vld [vmem:[%s2951_s15 + $0x78] sm:$0xff]   ;;  %v941_v49 = vld [vmem:[%s2949_s0] sm:$0xff] }
  0xb0   : > { %2181 = vmatprep.subr.bf16.mxu1 %v2359_v26  ;;  %v2375_v42 = vld [vmem:[%s2951_s15 + $0xf0] sm:$0xff]   ;;  %v2379_v46 = vld [vmem:[%s2951_s15 + $0xf8] sm:$0xff]   ;;  %v945_v50 = vld [vmem:[%s2949_s0 + $0x20] sm:$0xff] }
  0xb1   : > { %v2376_v43 = vld [vmem:[%s2951_s15 + $0x30] sm:$0xff]   ;;  %v2380_v47 = vld [vmem:[%s2951_s15 + $0x38] sm:$0xff]   ;;  %v942_v51 = vld [vmem:[%s2949_s0 + $0x8] sm:$0xff]  ;;  %v2061_v52 = vcombine.low %v941_v49, %v945_v50  ;;  %v2062_v53 = vcombine.high %v941_v49, %v945_v50 }
  0xb2   : > { %2154 = vmatpush3.bf16.msra.mxu0 %v2360_v27  ;;  %v2377_v44 = vld [vmem:[%s2951_s15 + $0xb0] sm:$0xff]   ;;  %v2381_v48 = vld [vmem:[%s2951_s15 + $0xb8] sm:$0xff]   ;;  %v946_v54 = vld [vmem:[%s2949_s0 + $0x28] sm:$0xff] }
  0xb3   : > { %2182 = vmatpush3.bf16.msra.mxu1 %v2361_v28  ;;  %2155 = vmatprep.subr.bf16.mxu0 %v2362_v29  ;;  %v2063_v55 = vcombine.low %v942_v51, %v946_v54  ;;  %v2064_v56 = vcombine.high %v942_v51, %v946_v54  ;;  %v2382_v57 = vld [vmem:[%s2951_s15 + $0x140] sm:$0xff]   ;;  %v2386_v61 = vld [vmem:[%s2951_s15 + $0x148] sm:$0xff]   ;;  %v2390_v1 = vld [vmem:[%s2951_s15 + $0x150] sm:$0xff]  }
  0xb4   : > { %2183 = vmatprep.subr.bf16.mxu1 %v2363_v30  ;;  %1581 = vmatprep.mubr.bf16.mxu0 %v2062_v53  ;;  %v2383_v58 = vld [vmem:[%s2951_s15 + $0x1c0] sm:$0xff]   ;;  %v2387_v62 = vld [vmem:[%s2951_s15 + $0x1c8] sm:$0xff]   ;;  %v2391_v2 = vld [vmem:[%s2951_s15 + $0x1d0] sm:$0xff]  }
  0xb5   : > { %1630 = vmatprep.mubr.bf16.mxu1 %v2064_v56  ;;  %v2384_v59 = vld [vmem:[%s2951_s15 + $0x100] sm:$0xff]   ;;  %v2388_v63 = vld [vmem:[%s2951_s15 + $0x108] sm:$0xff]   ;;  %v2392_v3 = vld [vmem:[%s2951_s15 + $0x110] sm:$0xff]  }
  0xb6   : > { %2156 = vmatpush3.bf16.msra.mxu0 %v2364_v31  ;;  %v2385_v60 = vld [vmem:[%s2951_s15 + $0x180] sm:$0xff]   ;;  %v2389_v0 = vld [vmem:[%s2951_s15 + $0x188] sm:$0xff]   ;;  %v2393_v4 = vld [vmem:[%s2951_s15 + $0x190] sm:$0xff]  }
  0xb7   : > { %2184 = vmatpush3.bf16.msra.mxu1 %v2365_v32  ;;  %2157 = vmatprep.subr.bf16.mxu0 %v2366_v33  ;;  %v2394_v5 = vld [vmem:[%s2951_s15 + $0x158] sm:$0xff]   ;;  %v2398_v9 = vld [vmem:[%s2951_s15 + $0x160] sm:$0xff]   ;;  %v950_v16 = vld [vmem:[%s2949_s0 + $0x48] sm:$0xff] }
  0xb8   : > { %2185 = vmatprep.subr.bf16.mxu1 %v2367_v34  ;;  %v2395_v6 = vld [vmem:[%s2951_s15 + $0x1d8] sm:$0xff]   ;;  %v2399_v10 = vld [vmem:[%s2951_s15 + $0x1e0] sm:$0xff]   ;;  %v954_v17 = vld [vmem:[%s2949_s0 + $0x68] sm:$0xff] }
  0xb9   : > { %v2396_v7 = vld [vmem:[%s2951_s15 + $0x118] sm:$0xff]   ;;  %v2400_v11 = vld [vmem:[%s2951_s15 + $0x120] sm:$0xff]   ;;  %v2072_v19 = vcombine.high %v950_v16, %v954_v17  ;;  %v2402_v20 = vld [vmem:[%s2951_s15 + $0x168] sm:$0xff]   ;;  %v2071_v21 = vcombine.low %v950_v16, %v954_v17 }
  0xba   : > { %2158 = vmatpush3.bf16.msra.mxu0 %v2368_v35  ;;  %v2397_v8 = vld [vmem:[%s2951_s15 + $0x198] sm:$0xff]   ;;  %v2401_v12 = vld [vmem:[%s2951_s15 + $0x1a0] sm:$0xff]   ;;  %v2403_v22 = vld [vmem:[%s2951_s15 + $0x1e8] sm:$0xff]  }
  0xbb   : > { %2186 = vmatpush3.bf16.msra.mxu1 %v2369_v36  ;;  %2159 = vmatprep.subr.bf16.mxu0 %v2370_v37  ;;  %v949_v13 = vld [vmem:[%s2949_s0 + $0x40] sm:$0xff]  ;;  %v2404_v23 = vld [vmem:[%s2951_s15 + $0x128] sm:$0xff]   ;;  %v2406_v25 = vld [vmem:[%s2951_s15 + $0x170] sm:$0xff]  }
  0xbc   : > { %2187 = vmatprep.subr.bf16.mxu1 %v2371_v38  ;;  %v953_v14 = vld [vmem:[%s2949_s0 + $0x60] sm:$0xff]  ;;  %v2405_v24 = vld [vmem:[%s2951_s15 + $0x1a8] sm:$0xff]   ;;  %v2407_v26 = vld [vmem:[%s2951_s15 + $0x1f0] sm:$0xff]  }
  0xbd   : > { %v2070_v15 = vcombine.high %v949_v13, %v953_v14  ;;  %v2069_v18 = vcombine.low %v949_v13, %v953_v14  ;;  %v2408_v27 = vld [vmem:[%s2951_s15 + $0x130] sm:$0xff]   ;;  %v2410_v29 = vld [vmem:[%s2951_s15 + $0x178] sm:$0xff]  }
  0xbe   : > { %2160 = vmatpush3.bf16.msra.mxu0 %v2372_v39  ;;  %v2409_v28 = vld [vmem:[%s2951_s15 + $0x1b0] sm:$0xff]   ;;  %v2411_v30 = vld [vmem:[%s2951_s15 + $0x1f8] sm:$0xff]  }
  0xbf   : > { %2188 = vmatpush3.bf16.msra.mxu1 %v2373_v40  ;;  %2161 = vmatprep.subr.bf16.mxu0 %v2374_v41  ;;  %v2412_v31 = vld [vmem:[%s2951_s15 + $0x138] sm:$0xff]   ;;  %v943_v33 = vld [vmem:[%s2949_s0 + $0x10] sm:$0xff] }
  0xc0   : > { %2189 = vmatprep.subr.bf16.mxu1 %v2375_v42  ;;  %v2413_v32 = vld [vmem:[%s2951_s15 + $0x1b8] sm:$0xff]   ;;  %v947_v34 = vld [vmem:[%s2949_s0 + $0x30] sm:$0xff] }
  0xc1   : > { %v944_v35 = vld [vmem:[%s2949_s0 + $0x18] sm:$0xff]  ;;  %v2065_v37 = vcombine.low %v943_v33, %v947_v34  ;;  %v2066_v38 = vcombine.high %v943_v33, %v947_v34  ;;  %v951_v41 = vld [vmem:[%s2949_s0 + $0x50] sm:$0xff] }
  0xc2   : > { %2162 = vmatpush3.bf16.msra.mxu0 %v2376_v43  ;;  %v948_v36 = vld [vmem:[%s2949_s0 + $0x38] sm:$0xff]  ;;  %v955_v42 = vld [vmem:[%s2949_s0 + $0x70] sm:$0xff] }
  0xc3   : > { %2190 = vmatpush3.bf16.msra.mxu1 %v2377_v44  ;;  %2163 = vmatprep.subr.bf16.mxu0 %v2378_v45  ;;  %v2067_v39 = vcombine.low %v944_v35, %v948_v36  ;;  %v2068_v40 = vcombine.high %v944_v35, %v948_v36  ;;  %v952_v43 = vld [vmem:[%s2949_s0 + $0x58] sm:$0xff]  ;;  %v2074_v44 = vcombine.high %v951_v41, %v955_v42 }
  0xc4   : > { %2191 = vmatprep.subr.bf16.mxu1 %v2379_v46  ;;  %v956_v45 = vld [vmem:[%s2949_s0 + $0x78] sm:$0xff] }
  0xc5   : > { %v2076_v46 = vcombine.high %v952_v43, %v956_v45 }
  0xc6   : > { %2164 = vmatpush3.bf16.msra.mxu0 %v2380_v47  ;;  %v2073_v47 = vcombine.low %v951_v41, %v955_v42 }
  0xc7   : > { %2192 = vmatpush3.bf16.msra.mxu1 %v2381_v48  ;;  %2205 = vmatprep.subr.bf16.mxu0 %v2382_v57  ;;  %v2075_v48 = vcombine.low %v952_v43, %v956_v45 }
  0xc8   : > { %2233 = vmatprep.subr.bf16.mxu1 %v2383_v58 }
  0xc9   : > { %1582 = vmatmul.mubr.bf16.vlgmr.msra.gmra.mrb[0].mxu0 %v2061_v52 }
  0xca   : > { %1631 = vmatmul.mubr.bf16.vlgmr.msra.gmra.mrb[0].mxu1 %v2063_v55  ;;  %2206 = vmatpush3.bf16.msra.mxu0 %v2384_v59 }
  0xcb   : > { %2234 = vmatpush3.bf16.msra.mxu1 %v2385_v60  ;;  %2207 = vmatprep.subr.bf16.mxu0 %v2386_v61 }
  0xcc   : > { %2235 = vmatprep.subr.bf16.mxu1 %v2387_v62  ;;  %1589 = vmatprep.mubr.bf16.mxu0 %v2070_v15 }
  0xcd   : > { %1638 = vmatprep.mubr.bf16.mxu1 %v2072_v19 }
  0xce   : > { %2208 = vmatpush3.bf16.msra.mxu0 %v2388_v63 }
  0xcf   : > { %2236 = vmatpush3.bf16.msra.mxu1 %v2389_v0  ;;  %2209 = vmatprep.subr.bf16.mxu0 %v2390_v1 }
  0xd0   : > { %2237 = vmatprep.subr.bf16.mxu1 %v2391_v2 }
  0xd1   : > { %1590 = vmatmul.mubr.bf16.gmra.mrb[4].mxu0 %v2069_v18 }
  0xd2   : > { %2210 = vmatpush3.bf16.msra.mxu0 %v2392_v3  ;;  %1639 = vmatmul.mubr.bf16.gmra.mrb[4].mxu1 %v2071_v21 }
  0xd3   : > { %2238 = vmatpush3.bf16.msra.mxu1 %v2393_v4  ;;  %2211 = vmatprep.subr.bf16.mxu0 %v2394_v5 }
  0xd4   : > { %2239 = vmatprep.subr.bf16.mxu1 %v2395_v6  ;;  %1679 = vmatprep.mubr.bf16.mxu0 %v2066_v38 }
  0xd5   : > { %1728 = vmatprep.mubr.bf16.mxu1 %v2068_v40 }
  0xd6   : > { %2212 = vmatpush3.bf16.msra.mxu0 %v2396_v7 }
  0xd7   : > { %2240 = vmatpush3.bf16.msra.mxu1 %v2397_v8  ;;  %2213 = vmatprep.subr.bf16.mxu0 %v2398_v9 }
  0xd8   : > { %2241 = vmatprep.subr.bf16.mxu1 %v2399_v10 }
  0xda   : > { %2214 = vmatpush3.bf16.msra.mxu0 %v2400_v11 }
  0xdb   : > { %2242 = vmatpush3.bf16.msra.mxu1 %v2401_v12  ;;  %2215 = vmatprep.subr.bf16.mxu0 %v2402_v20 }
  0xdc   : > { %2243 = vmatprep.subr.bf16.mxu1 %v2403_v22 }
  0xde   : > { %2216 = vmatpush3.bf16.msra.mxu0 %v2404_v23 }
  0xdf   : > { %2244 = vmatpush3.bf16.msra.mxu1 %v2405_v24  ;;  %2217 = vmatprep.subr.bf16.mxu0 %v2406_v25 }
  0xe0   : > { %2245 = vmatprep.subr.bf16.mxu1 %v2407_v26  ;;  %v937_v26 = vld [vmem:[%s2953_s6] sm:$0xff] }
  0xe2   : > { %2218 = vmatpush3.bf16.msra.mxu0 %v2408_v27 }
  0xe3   : > { %2246 = vmatpush3.bf16.msra.mxu1 %v2409_v28  ;;  %2219 = vmatprep.subr.bf16.mxu0 %v2410_v29  ;;  %v938_v29 = vld [vmem:[%s2953_s6 + $0x8] sm:$0xff] }
  0xe4   : > { %2247 = vmatprep.subr.bf16.mxu1 %v2411_v30 }
  0xe6   : > { %2220 = vmatpush3.bf16.msra.mxu0 %v2412_v31 }
  0xe7   : > { %2248 = vmatpush3.bf16.msra.mxu1 %v2413_v32 }
  0xe9   : > { %1680 = vmatmul.mubr.bf16.vlgmr.msra.gmra.mrb[8].mxu0 %v2065_v37 }
  0xea   : > { %1729 = vmatmul.mubr.bf16.vlgmr.msra.gmra.mrb[8].mxu1 %v2067_v39  ;;  %1687 = vmatprep.mubr.bf16.mxu0 %v2074_v44 }
  0xeb   : > { %1736 = vmatprep.mubr.bf16.mxu1 %v2076_v46  ;;  %v939_v46 = vld [vmem:[%s2953_s6 + $0x10] sm:$0xff] }
  0xf1   : > { %1688 = vmatmul.mubr.bf16.gmra.mrb[12].mxu0 %v2073_v47 }
  0xf2   : > { %1737 = vmatmul.mubr.bf16.gmra.mrb[12].mxu1 %v2075_v48 }
 0x19c   : > { %v2165_v49 = vpop.f32.mrb[0].mxu0 }
 0x19d   : > { %v2193_v50 = vpop.f32.mrb[0].mxu1  ;;  %v2166_v51 = vpop.f32.mrb[1].mxu0 }
 0x19e   : > { %v2167_v52 = vadd.f32 %v2166_v51, %v2165_v49  ;;  %v2194_v53 = vpop.f32.mrb[1].mxu1  ;;  %v2168_v54 = vpop.f32.mrb[2].mxu0  ;;  %v940_v49 = vld [vmem:[%s2953_s6 + $0x18] sm:$0xff] }
 0x19f   : > { %v2195_v55 = vadd.f32 %v2194_v53, %v2193_v50  ;;  %v2196_v56 = vpop.f32.mrb[2].mxu1  ;;  %v2169_v57 = vpop.f32.mrb[3].mxu0 }
 0x1a0   : > { %v2170_v58 = vadd.f32 %v2169_v57, %v2168_v54  ;;  %v2197_v59 = vpop.f32.mrb[3].mxu1 }
 0x1a1   : > { %v1633_v60 = vadd.f32 %v2195_v55, %v2167_v52  ;;  %v2198_v61 = vadd.f32 %v2197_v59, %v2196_v56 }
 0x1a3   : > { %v1636_v62 = vadd.f32 %v2198_v61, %v2170_v58  ;;  %v2142_v61 = vld [vmem:[%s910_s13] ss:$0 sm:$0xff] (!%p2141_p5) }
 0x1a4   : > { %v2171_v63 = vpop.f32.mrb[4].mxu0 }
 0x1a5   : > { %v2199_v0 = vpop.f32.mrb[4].mxu1  ;;  %v2172_v1 = vpop.f32.mrb[5].mxu0 }
 0x1a6   : > { %v2173_v2 = vadd.f32 %v2172_v1, %v2171_v63  ;;  %v2200_v3 = vpop.f32.mrb[5].mxu1  ;;  %v2174_v4 = vpop.f32.mrb[6].mxu0 }
 0x1a7   : > { %v2201_v5 = vadd.f32 %v2200_v3, %v2199_v0  ;;  %v2202_v6 = vpop.f32.mrb[6].mxu1  ;;  %v2175_v7 = vpop.f32.mrb[7].mxu0 }
 0x1a8   : > { %v2176_v8 = vadd.f32 %v2175_v7, %v2174_v4  ;;  %v2203_v9 = vpop.f32.mrb[7].mxu1 }
 0x1a9   : > { %v1641_v10 = vadd.f32 %v2201_v5, %v2173_v2  ;;  %v2204_v11 = vadd.f32 %v2203_v9, %v2202_v6 }
 0x1ab   : > { %v1644_v12 = vadd.f32 %v2204_v11, %v2176_v8 }
 0x1bc   : > { %v2221_v13 = vpop.f32.mrb[8].mxu0 }
 0x1bd   : > { %v2249_v14 = vpop.f32.mrb[8].mxu1  ;;  %v2222_v15 = vpop.f32.mrb[9].mxu0 }
 0x1be   : > { %v2250_v16 = vpop.f32.mrb[9].mxu1  ;;  %v2223_v17 = vadd.f32 %v2222_v15, %v2221_v13  ;;  %v2224_v19 = vpop.f32.mrb[10].mxu0 }
 0x1bf   : > { %v2251_v18 = vadd.f32 %v2250_v16, %v2249_v14  ;;  %v2252_v20 = vpop.f32.mrb[10].mxu1  ;;  %v2225_v21 = vpop.f32.mrb[11].mxu0 }
 0x1c0   : > { %v2253_v22 = vpop.f32.mrb[11].mxu1  ;;  %v1682_v23 = vadd.f32 %v2223_v17, %v1633_v60  ;;  %v2226_v24 = vadd.f32 %v2225_v21, %v2224_v19 }
 0x1c1   : > { %v2254_v25 = vadd.f32 %v2253_v22, %v2252_v20 }
 0x1c2   : > { %v1731_v27 = vadd.f32 %v2251_v18, %v1682_v23  ;;  %v1685_v28 = vadd.f32 %v2226_v24, %v1636_v62 }
 0x1c4   : > { %v1745_v30 = vadd.f32 %v1731_v27, %v937_v26  ;;  %v1734_v31 = vadd.f32 %v2254_v25, %v1685_v28  ;;  %v2227_v32 = vpop.f32.mrb[12].mxu0 }
 0x1c5   : > { %v2255_v33 = vpop.f32.mrb[12].mxu1  ;;  %v2228_v34 = vpop.f32.mrb[13].mxu0 }
 0x1c6   : > { %v2256_v35 = vpop.f32.mrb[13].mxu1  ;;  %1749 = vst [vmem:[%s2953_s6] sm:$0xff] %v1745_v30  ;;  %v1746_v36 = vadd.f32 %v1734_v31, %v938_v29  ;;  %v2229_v37 = vadd.f32 %v2228_v34, %v2227_v32  ;;  %v2230_v39 = vpop.f32.mrb[14].mxu0 }
 0x1c7   : > { %v2257_v38 = vadd.f32 %v2256_v35, %v2255_v33  ;;  %v2258_v40 = vpop.f32.mrb[14].mxu1  ;;  %v2231_v41 = vpop.f32.mrb[15].mxu0 }
 0x1c8   : > { %v2259_v42 = vpop.f32.mrb[15].mxu1  ;;  %1750 = vst [vmem:[%s2953_s6 + $0x8] sm:$0xff] %v1746_v36  ;;  %v1690_v43 = vadd.f32 %v2229_v37, %v1641_v10  ;;  %v2232_v44 = vadd.f32 %v2231_v41, %v2230_v39 }
 0x1c9   : > { %v2260_v45 = vadd.f32 %v2259_v42, %v2258_v40 }
 0x1ca   : > { %v1739_v47 = vadd.f32 %v2257_v38, %v1690_v43  ;;  %v1693_v48 = vadd.f32 %v2232_v44, %v1644_v12  ;;  %1756 = sbr.rel (%p2141_p5) target bundleno = 477 (0x1dd), region = 104 }
 0x1cc   : > { %v1747_v50 = vadd.f32 %v1739_v47, %v939_v46  ;;  %v1742_v51 = vadd.f32 %v2260_v45, %v1693_v48 }
 0x1cd   : > { %v1757_v53 = vld [vmem:[%s2953_s6] sm:$0xff] (!%p2141_p5) }
 0x1ce   : > { %1751 = vst [vmem:[%s2953_s6 + $0x10] sm:$0xff] %v1747_v50  ;;  %v1748_v52 = vadd.f32 %v1742_v51, %v940_v49  ;;  %v1765_v58 = vmul.f32 (!%p2141_p5), %v1757_v53, %v1757_v53  ;;  %v1780_v62 = vadd.f32 (!%p2141_p5), %v2142_v61, %v1757_v53 }
 0x1cf   : > { %v1758_v54 = vld [vmem:[%s2953_s6 + $0x8] sm:$0xff] (!%p2141_p5) }
 0x1d0   : > { %1752 = vst [vmem:[%s2953_s6 + $0x18] sm:$0xff] %v1748_v52  ;;  %v1761_v57 = vadd.f32 (!%p2141_p5), %v1758_v54, %v1757_v53  ;;  %v1766_v59 = vmul.f32 (!%p2141_p5), %v1758_v54, %v1758_v54  ;;  %v1781_v63 = vadd.f32 (!%p2141_p5), %v2142_v61, %v1758_v54  ;;  %1784 = vst [vmem:[%s2953_s6] sm:$0xff] (!%p2141_p5), %v1780_v62 }
 0x1d2   : > { %v1769_v3 = vadd.f32 %v1766_v59, %v1765_v58  ;;  %1785 = vst [vmem:[%s2953_s6 + $0x8] sm:$0xff] %v1781_v63 }
 0x1d5   : > { %v1759_v55 = vld [vmem:[%s2953_s6 + $0x10] sm:$0xff] }
 0x1d6   : > { %v1767_v60 = vmul.f32 %v1759_v55, %v1759_v55  ;;  %v1782_v0 = vadd.f32 %v2142_v61, %v1759_v55  ;;  %v1762_v1 = vadd.f32 %v1761_v57, %v1759_v55 }
 0x1d7   : > { %v1760_v56 = vld [vmem:[%s2953_s6 + $0x18] sm:$0xff] }
 0x1d8   : > { %v1768_v2 = vmul.f32 %v1760_v56, %v1760_v56  ;;  %v1783_v4 = vadd.f32 %v2142_v61, %v1760_v56  ;;  %1786 = vst [vmem:[%s2953_s6 + $0x10] sm:$0xff] %v1782_v0  ;;  %v1763_v5 = vadd.f32 %v1762_v1, %v1760_v56  ;;  %v1770_v6 = vadd.f32 %v1769_v3, %v1767_v60 }
 0x1da   : > { %1787 = vst [vmem:[%s2953_s6 + $0x18] sm:$0xff] %v1783_v4  ;;  %1764 = vst [vmem:[%s2942_s26] sm:$0xff] %v1763_v5  ;;  %v1771_v7 = vadd.f32 %v1770_v6, %v1768_v2 }
 0x1dc   : > { %1772 = vst [vmem:[%s2947_s18] sm:$0xff] %v1771_v7 }
 0x1dd PF: > { %1810 = sbr.rel (!%p2627_p12) target bundleno = 485 (0x1e5), region = 108  ;;  %s2144_s27 = sshll.u32 (%p2627_p12), %s2488_s25, 3  ;;  %v1851_v9 = vld [vmem:[%s2953_s6 + $0x8] sm:$0xff] (%p2627_p12) }
 0x1de   : > { %s1815_s7 = scalar_lea.vmem (%p2627_p12), %s3110_s3, %s2144_s27 }
 0x1df   : > { %1852 = vst [vmem:[%s1815_s7 + $0x10] sm:$0xff] (%p2627_p12), %v1851_v9 }
 0x1e1   : > { %v1853_v10 = vld [vmem:[%s2953_s6 + $0x10] sm:$0xff] (%p2627_p12) }
 0x1e2   : > { %1854 = vst [vmem:[%s1815_s7 + $0x20] sm:$0xff] (%p2627_p12), %v1853_v10 }
 0x1e3   : > { %v1849_v8 = vld [vmem:[%s2953_s6] sm:$0xff] (%p2627_p12)  ;;  %v1855_v11 = vld [vmem:[%s2953_s6 + $0x18] sm:$0xff] (%p2627_p12) }
 0x1e4   : > { %1850 = vst [vmem:[%s1815_s7] sm:$0xff] %v1849_v8  ;;  %1856 = vst [vmem:[%s1815_s7 + $0x30] sm:$0xff] %v1855_v11 }
 0x1e5 PF: > { %s16_s28 = sadd.s32 1, %s2500_s28   ;;  %s3128_s24 = sld [smem:[#allocation5_spill]] }
 0x1e6   : > { %p13_p6 = scmp.ge.s32.totalorder %s16_s28, 6   ;;  %s3129_s25 = sld [smem:[#allocation6_spill]] }
 0x1e7   : > { %s3130_s26 = sld [smem:[#allocation7_spill]]  ;;  %s3131_s27 = sld [smem:[#allocation8_spill]] }
 0x1e8   : > { %s3132_s18 = smov %s2464_s19  ;;  %s3133_s19 = smov %s2625_s17 }
 0x1e9   : > { %s3134_s20 = smov %s2472_s21  ;;  %s3135_s21 = smov %s2622_s16 }
 0x1ea   : > { %s3136_s22 = smov %s2480_s23  ;;  %s3137_s23 = smov %s2608_s11 }
 0x1eb   :  { %15 = sbr.rel (!%p13_p6) target bundleno = 9 (0x9), region = 212 }

// kernel: patchgan_discriminator.8
= control target key start
LH: loop header
LB: loop body
LE: loop exit
PB: predicated region body
PF: predicated region fallthrough
CT: control target
= control target key end

     0   :  { %s3418_s0 = inlined_call_operand.vmem [shape: bf16[16,4096], index: 0, kind: input, shape index: {}]   ;;  %s3419_s1 = inlined_call_operand.vmem [shape: bf16[4096,512], index: 1, kind: input, shape index: {}]   ;;  %s3420_s2 = inlined_call_operand.vmem [shape: f32[1,512], index: 2, kind: input, shape index: {}]   ;;  %s3421_s3 = inlined_call_operand.vmem [shape: f32[16,512], index: 3, kind: output, shape index: {0}]   ;;  %s3422_s4 = inlined_call_operand.vmem [shape: f32[8,512], index: 4, kind: output, shape index: {1}]   ;;  %s3423_s5 = inlined_call_operand.vmem [shape: f32[8,512], index: 5, kind: output, shape index: {2}]  }
   0x1   :  { %3427 = sst [smem:[#allocation9_spill]] %s3418_s0 }
   0x2   :  { %3428 = sst [smem:[#allocation10_spill]] %s3419_s1 }
   0x3   :  { %s2789_s18 = smov 0   ;;  %s2791_s19 = smov 0  }
   0x4   :  { %s2793_s20 = smov 0   ;;  %s2795_s21 = smov 0  }
   0x5   :  { %s2797_s22 = smov 0   ;;  %s2799_s23 = smov 0  }
   0x6   :  { %s2801_s24 = smov 0   ;;  %s2803_s25 = smov 0  }
   0x7   :  { %s2805_s26 = smov 0   ;;  %s2807_s27 = smov 0  }
   0x8   :  { %s2809_s28 = smov 0  }
   0x9 LB: > { %3429 = sst [smem:[#allocation5_spill]] %s2752_s27  ;;  %s2210_s29 = sadd.s32 4294967295, %s2756_s28   ;;  %s2756_s28 = sphi %s2809_s28, %s16_s28   ;;  %s2752_s27 = sphi %s2807_s27, %s3441_s27   ;;  %s2748_s26 = sphi %s2805_s26, %s3450_s26   ;;  %s2744_s25 = sphi %s2803_s25, %s3449_s25   ;;  %s2740_s24 = sphi %s2801_s24, %s3448_s24   ;;  %s2736_s23 = sphi %s2799_s23, %s3447_s23   ;;  %s2732_s22 = sphi %s2797_s22, %s3446_s22   ;;  %s2728_s21 = sphi %s2795_s21, %s3445_s21   ;;  %s2724_s20 = sphi %s2793_s20, %s3444_s20   ;;  %s2720_s19 = sphi %s2791_s19, %s3443_s19   ;;  %s2716_s18 = sphi %s2789_s18, %s3442_s18  }
   0xa   : > { %s28_s30 = sadd.s32 1, %s2748_s26  ;;  %s31_s6 = sadd.s32 1, %s2752_s27 }
   0xb   : > { %p29_p0 = scmp.ge.s32.totalorder %s28_s30, 4  ;;  %s44_s7 = sadd.s32 1, %s2736_s23 }
   0xc   : > { %p51_p1 = scmp.ne.s32.totalorder %s2736_s23, %s2732_s22  ;;  %p52_p2 = scmp.eq.s32.totalorder %s2756_s28, 0 }
   0xd   : > { %s3452_s30 = smov (%p29_p0, %s28_s30), 0  ;;  %s3454_s6 = smov (!%p29_p0, %s31_s6), %s2752_s27 }
   0xe   : > { %3430 = sst [smem:[#allocation6_spill]] %s3452_s30  ;;  %s40_s8 = ssub.s32 %s2748_s26, %s3452_s30 }
   0xf   : > { %p33_p3 = scmp.ge.s32.totalorder %s3454_s6, 2  ;;  %p42_p4 = scmp.eq.s32.totalorder %s40_s8, 0 }
  0x10   : > { %p2856_p5 = por %p52_p2, %p51_p1  ;;  %s72_s10 = sadd.s32 1, %s2728_s21 }
  0x11   : > { %s3456_s6 = smov (%p33_p3, %s3454_s6), 0  ;;  %p79_p6 = scmp.ne.s32.totalorder %s2728_s21, %s2724_s20 }
  0x12   : > { %3432 = sst [smem:[#allocation7_spill]] %s3456_s6  ;;  %s68_s12 = ssub.s32 %s2752_s27, %s3456_s6 }
  0x13   : > { %s2864_s11 = scalar_select %p42_p4, %s2736_s23, %s44_s7  }
  0x14   : > { %s69_s13 = sor.u32 %s68_s12, %s40_s8  ;;  %p124_p7 = scmp.eq.s32.totalorder %s68_s12, 0 }
  0x15   : > { %3433 = sst [smem:[#allocation8_spill]] %s2864_s11  ;;  %p70_p8 = scmp.eq.s32.totalorder %s69_s13, 0 }
  0x16   : > { %p2870_p9 = por %p79_p6, %p52_p2  ;;  %s126_s15 = sadd.s32 1, %s2720_s19 }
  0x17   : > { %p136_p10 = scmp.ne.s32.totalorder %s2720_s19, %s2716_s18  ;;  %p137_p11 = scmp.eq.s32.totalorder %s2210_s29, 7 }
  0x18   : > { %s2878_s16 = scalar_select %p70_p8, %s2728_s21, %s72_s10  }
  0x19   : > { %s2881_s17 = scalar_select %p124_p7, %s2720_s19, %s126_s15  }
  0x1a   : > { %p2883_p12 = por %p137_p11, %p136_p10  ;;  %p2213_p13 = scmp.ge.s32.totalorder %s2756_s28, 8 }
  0x1c   : > { %215 = sbr.rel (%p2213_p13) target bundleno = 123 (0x7b), region = 16 }
  0x23   : > { %218 = sbr.rel (!%p2856_p5) target bundleno = 49 (0x31), region = 20  ;;  %s220_s7 = sand.u32 (%p2856_p5), 1, %s2736_s23  }
  0x24   : > { %s2374_s8 = sshll.u32 (%p2856_p5), %s2748_s26, 5  ;;  %s2214_s12 = sshll.u32 (%p2856_p5), %s220_s7, 6 }
  0x25   : > { %s3436_s0 = sld [smem:[#allocation9_spill]] (%p2856_p5)  ;;  %s222_s29 = scalar_lea.vmem (%p2856_p5), [#allocation2], %s2214_s12 }
  0x2b   : > { %s228_s15 = scalar_lea.vmem %s3436_s0, %s2374_s8 }
  0x2c   : > { %v241_v0 = vld [vmem:[%s228_s15] sm:$0xff]  ;;  %v243_v1 = vld [vmem:[%s228_s15 + $0x8] sm:$0xff]  ;;  %v245_v2 = vld [vmem:[%s228_s15 + $0x10] sm:$0xff] }
  0x2d   : > { %242 = vst [vmem:[%s222_s29] sm:$0xff] %v241_v0  ;;  %244 = vst [vmem:[%s222_s29 + $0x8] sm:$0xff] %v243_v1  ;;  %v247_v3 = vld [vmem:[%s228_s15 + $0x18] sm:$0xff]  ;;  %v249_v4 = vld [vmem:[%s228_s15 + $0x80] sm:$0xff] }
  0x2e   : > { %246 = vst [vmem:[%s222_s29 + $0x10] sm:$0xff] %v245_v2  ;;  %v251_v5 = vld [vmem:[%s228_s15 + $0x88] sm:$0xff]  ;;  %248 = vst [vmem:[%s222_s29 + $0x18] sm:$0xff] %v247_v3  ;;  %v253_v6 = vld [vmem:[%s228_s15 + $0x90] sm:$0xff] }
  0x2f   : > { %250 = vst [vmem:[%s222_s29 + $0x20] sm:$0xff] %v249_v4  ;;  %252 = vst [vmem:[%s222_s29 + $0x28] sm:$0xff] %v251_v5  ;;  %v255_v7 = vld [vmem:[%s228_s15 + $0x98] sm:$0xff] }
  0x30   : > { %254 = vst [vmem:[%s222_s29 + $0x30] sm:$0xff] %v253_v6  ;;  %256 = vst [vmem:[%s222_s29 + $0x38] sm:$0xff] %v255_v7 }
  0x31 PF: > { %262 = sbr.rel (!%p2870_p9) target bundleno = 123 (0x7b), region = 43  ;;  %s264_s9 = sand.u32 (%p2870_p9), 1, %s2728_s21  }
  0x32   : > { %s2219_s7 = sshll.u32 (%p2870_p9), %s2752_s27, 1  ;;  %s2217_s8 = sshll.u32 (%p2870_p9), %s264_s9, 10 }
  0x33   : > { %s2375_s12 = sshll.u32 (%p2870_p9), %s2748_s26, 9  ;;  %s3437_s1 = sld [smem:[#allocation10_spill]] (%p2870_p9) }
  0x34   : > { %s270_s10 = sadd.s32 (%p2870_p9), %s2375_s12, %s2219_s7  ;;  %s2908_s14 = scalar_lea.vmem (%p2870_p9), [#allocation3], %s2217_s8 }
  0x35   : > { %s2221_s13 = sshll.u32 (%p2870_p9), %s270_s10, 2 }
  0x39   : > { %s2903_s11 = scalar_lea.vmem %s3437_s1, %s2221_s13 }
  0x3a   : > { %v554_v8 = vld [vmem:[%s2903_s11] sm:$0xff]  ;;  %v556_v9 = vld [vmem:[%s2903_s11 + $0x10] sm:$0xff] }
  0x3b   : > { %v558_v10 = vld [vmem:[%s2903_s11 + $0x20] sm:$0xff]  ;;  %555 = vst [vmem:[%s2908_s14] sm:$0xff] %v554_v8  ;;  %557 = vst [vmem:[%s2908_s14 + $0x8] sm:$0xff] %v556_v9  ;;  %v560_v11 = vld [vmem:[%s2903_s11 + $0x30] sm:$0xff] }
  0x3c   : > { %559 = vst [vmem:[%s2908_s14 + $0x10] sm:$0xff] %v558_v10  ;;  %v562_v12 = vld [vmem:[%s2903_s11 + $0x40] sm:$0xff]  ;;  %v564_v13 = vld [vmem:[%s2903_s11 + $0x50] sm:$0xff]  ;;  %561 = vst [vmem:[%s2908_s14 + $0x18] sm:$0xff] %v560_v11 }
  0x3d   : > { %563 = vst [vmem:[%s2908_s14 + $0x20] sm:$0xff] %v562_v12  ;;  %565 = vst [vmem:[%s2908_s14 + $0x28] sm:$0xff] %v564_v13  ;;  %v566_v14 = vld [vmem:[%s2903_s11 + $0x60] sm:$0xff]  ;;  %v568_v15 = vld [vmem:[%s2903_s11 + $0x70] sm:$0xff] }
  0x3e   : > { %v570_v16 = vld [vmem:[%s2903_s11 + $0x80] sm:$0xff]  ;;  %567 = vst [vmem:[%s2908_s14 + $0x30] sm:$0xff] %v566_v14  ;;  %569 = vst [vmem:[%s2908_s14 + $0x38] sm:$0xff] %v568_v15  ;;  %v572_v17 = vld [vmem:[%s2903_s11 + $0x90] sm:$0xff] }
  0x3f   : > { %571 = vst [vmem:[%s2908_s14 + $0x40] sm:$0xff] %v570_v16  ;;  %v574_v18 = vld [vmem:[%s2903_s11 + $0xa0] sm:$0xff]  ;;  %v576_v19 = vld [vmem:[%s2903_s11 + $0xb0] sm:$0xff]  ;;  %573 = vst [vmem:[%s2908_s14 + $0x48] sm:$0xff] %v572_v17 }
  0x40   : > { %575 = vst [vmem:[%s2908_s14 + $0x50] sm:$0xff] %v574_v18  ;;  %577 = vst [vmem:[%s2908_s14 + $0x58] sm:$0xff] %v576_v19  ;;  %v578_v20 = vld [vmem:[%s2903_s11 + $0xc0] sm:$0xff]  ;;  %v580_v21 = vld [vmem:[%s2903_s11 + $0xd0] sm:$0xff] }
  0x41   : > { %v582_v22 = vld [vmem:[%s2903_s11 + $0xe0] sm:$0xff]  ;;  %579 = vst [vmem:[%s2908_s14 + $0x60] sm:$0xff] %v578_v20  ;;  %581 = vst [vmem:[%s2908_s14 + $0x68] sm:$0xff] %v580_v21  ;;  %v584_v23 = vld [vmem:[%s2903_s11 + $0xf0] sm:$0xff] }
  0x42   : > { %583 = vst [vmem:[%s2908_s14 + $0x70] sm:$0xff] %v582_v22  ;;  %v586_v24 = vld [vmem:[%s2903_s11 + $0x100] sm:$0xff]  ;;  %v588_v25 = vld [vmem:[%s2903_s11 + $0x110] sm:$0xff]  ;;  %585 = vst [vmem:[%s2908_s14 + $0x78] sm:$0xff] %v584_v23 }
  0x43   : > { %587 = vst [vmem:[%s2908_s14 + $0x80] sm:$0xff] %v586_v24  ;;  %589 = vst [vmem:[%s2908_s14 + $0x88] sm:$0xff] %v588_v25  ;;  %v590_v26 = vld [vmem:[%s2903_s11 + $0x120] sm:$0xff]  ;;  %v592_v27 = vld [vmem:[%s2903_s11 + $0x130] sm:$0xff] }
  0x44   : > { %v594_v28 = vld [vmem:[%s2903_s11 + $0x140] sm:$0xff]  ;;  %591 = vst [vmem:[%s2908_s14 + $0x90] sm:$0xff] %v590_v26  ;;  %593 = vst [vmem:[%s2908_s14 + $0x98] sm:$0xff] %v592_v27  ;;  %v596_v29 = vld [vmem:[%s2903_s11 + $0x150] sm:$0xff] }
  0x45   : > { %595 = vst [vmem:[%s2908_s14 + $0xa0] sm:$0xff] %v594_v28  ;;  %v598_v30 = vld [vmem:[%s2903_s11 + $0x160] sm:$0xff]  ;;  %v600_v31 = vld [vmem:[%s2903_s11 + $0x170] sm:$0xff]  ;;  %597 = vst [vmem:[%s2908_s14 + $0xa8] sm:$0xff] %v596_v29 }
  0x46   : > { %599 = vst [vmem:[%s2908_s14 + $0xb0] sm:$0xff] %v598_v30  ;;  %601 = vst [vmem:[%s2908_s14 + $0xb8] sm:$0xff] %v600_v31  ;;  %v602_v32 = vld [vmem:[%s2903_s11 + $0x180] sm:$0xff]  ;;  %v604_v33 = vld [vmem:[%s2903_s11 + $0x190] sm:$0xff] }
  0x47   : > { %v606_v34 = vld [vmem:[%s2903_s11 + $0x1a0] sm:$0xff]  ;;  %603 = vst [vmem:[%s2908_s14 + $0xc0] sm:$0xff] %v602_v32  ;;  %605 = vst [vmem:[%s2908_s14 + $0xc8] sm:$0xff] %v604_v33  ;;  %v608_v35 = vld [vmem:[%s2903_s11 + $0x1b0] sm:$0xff] }
  0x48   : > { %607 = vst [vmem:[%s2908_s14 + $0xd0] sm:$0xff] %v606_v34  ;;  %v610_v36 = vld [vmem:[%s2903_s11 + $0x1c0] sm:$0xff]  ;;  %v612_v37 = vld [vmem:[%s2903_s11 + $0x1d0] sm:$0xff]  ;;  %609 = vst [vmem:[%s2908_s14 + $0xd8] sm:$0xff] %v608_v35 }
  0x49   : > { %611 = vst [vmem:[%s2908_s14 + $0xe0] sm:$0xff] %v610_v36  ;;  %613 = vst [vmem:[%s2908_s14 + $0xe8] sm:$0xff] %v612_v37  ;;  %v614_v38 = vld [vmem:[%s2903_s11 + $0x1e0] sm:$0xff]  ;;  %v616_v39 = vld [vmem:[%s2903_s11 + $0x1f0] sm:$0xff] }
  0x4a   : > { %v618_v40 = vld [vmem:[%s2903_s11 + $0x200] sm:$0xff]  ;;  %615 = vst [vmem:[%s2908_s14 + $0xf0] sm:$0xff] %v614_v38  ;;  %617 = vst [vmem:[%s2908_s14 + $0xf8] sm:$0xff] %v616_v39  ;;  %v620_v41 = vld [vmem:[%s2903_s11 + $0x210] sm:$0xff] }
  0x4b   : > { %619 = vst [vmem:[%s2908_s14 + $0x100] sm:$0xff] %v618_v40  ;;  %v622_v42 = vld [vmem:[%s2903_s11 + $0x220] sm:$0xff]  ;;  %v624_v43 = vld [vmem:[%s2903_s11 + $0x230] sm:$0xff]  ;;  %621 = vst [vmem:[%s2908_s14 + $0x108] sm:$0xff] %v620_v41 }
  0x4c   : > { %623 = vst [vmem:[%s2908_s14 + $0x110] sm:$0xff] %v622_v42  ;;  %625 = vst [vmem:[%s2908_s14 + $0x118] sm:$0xff] %v624_v43  ;;  %v626_v44 = vld [vmem:[%s2903_s11 + $0x240] sm:$0xff]  ;;  %v628_v45 = vld [vmem:[%s2903_s11 + $0x250] sm:$0xff] }
  0x4d   : > { %v630_v46 = vld [vmem:[%s2903_s11 + $0x260] sm:$0xff]  ;;  %627 = vst [vmem:[%s2908_s14 + $0x120] sm:$0xff] %v626_v44  ;;  %629 = vst [vmem:[%s2908_s14 + $0x128] sm:$0xff] %v628_v45  ;;  %v632_v47 = vld [vmem:[%s2903_s11 + $0x270] sm:$0xff] }
  0x4e   : > { %631 = vst [vmem:[%s2908_s14 + $0x130] sm:$0xff] %v630_v46  ;;  %v634_v48 = vld [vmem:[%s2903_s11 + $0x280] sm:$0xff]  ;;  %v636_v49 = vld [vmem:[%s2903_s11 + $0x290] sm:$0xff]  ;;  %633 = vst [vmem:[%s2908_s14 + $0x138] sm:$0xff] %v632_v47 }
  0x4f   : > { %635 = vst [vmem:[%s2908_s14 + $0x140] sm:$0xff] %v634_v48  ;;  %637 = vst [vmem:[%s2908_s14 + $0x148] sm:$0xff] %v636_v49  ;;  %v638_v50 = vld [vmem:[%s2903_s11 + $0x2a0] sm:$0xff]  ;;  %v640_v51 = vld [vmem:[%s2903_s11 + $0x2b0] sm:$0xff] }
  0x50   : > { %v642_v52 = vld [vmem:[%s2903_s11 + $0x2c0] sm:$0xff]  ;;  %639 = vst [vmem:[%s2908_s14 + $0x150] sm:$0xff] %v638_v50  ;;  %641 = vst [vmem:[%s2908_s14 + $0x158] sm:$0xff] %v640_v51  ;;  %v644_v53 = vld [vmem:[%s2903_s11 + $0x2d0] sm:$0xff] }
  0x51   : > { %643 = vst [vmem:[%s2908_s14 + $0x160] sm:$0xff] %v642_v52  ;;  %v646_v54 = vld [vmem:[%s2903_s11 + $0x2e0] sm:$0xff]  ;;  %v648_v55 = vld [vmem:[%s2903_s11 + $0x2f0] sm:$0xff]  ;;  %645 = vst [vmem:[%s2908_s14 + $0x168] sm:$0xff] %v644_v53 }
  0x52   : > { %647 = vst [vmem:[%s2908_s14 + $0x170] sm:$0xff] %v646_v54  ;;  %649 = vst [vmem:[%s2908_s14 + $0x178] sm:$0xff] %v648_v55  ;;  %v650_v56 = vld [vmem:[%s2903_s11 + $0x300] sm:$0xff]  ;;  %v652_v57 = vld [vmem:[%s2903_s11 + $0x310] sm:$0xff] }
  0x53   : > { %v654_v58 = vld [vmem:[%s2903_s11 + $0x320] sm:$0xff]  ;;  %651 = vst [vmem:[%s2908_s14 + $0x180] sm:$0xff] %v650_v56  ;;  %653 = vst [vmem:[%s2908_s14 + $0x188] sm:$0xff] %v652_v57  ;;  %v656_v59 = vld [vmem:[%s2903_s11 + $0x330] sm:$0xff] }
  0x54   : > { %655 = vst [vmem:[%s2908_s14 + $0x190] sm:$0xff] %v654_v58  ;;  %v658_v60 = vld [vmem:[%s2903_s11 + $0x340] sm:$0xff]  ;;  %v660_v61 = vld [vmem:[%s2903_s11 + $0x350] sm:$0xff]  ;;  %657 = vst [vmem:[%s2908_s14 + $0x198] sm:$0xff] %v656_v59 }
  0x55   : > { %659 = vst [vmem:[%s2908_s14 + $0x1a0] sm:$0xff] %v658_v60  ;;  %661 = vst [vmem:[%s2908_s14 + $0x1a8] sm:$0xff] %v660_v61  ;;  %v662_v62 = vld [vmem:[%s2903_s11 + $0x360] sm:$0xff]  ;;  %v664_v63 = vld [vmem:[%s2903_s11 + $0x370] sm:$0xff] }
  0x56   : > { %v666_v0 = vld [vmem:[%s2903_s11 + $0x380] sm:$0xff]  ;;  %663 = vst [vmem:[%s2908_s14 + $0x1b0] sm:$0xff] %v662_v62  ;;  %665 = vst [vmem:[%s2908_s14 + $0x1b8] sm:$0xff] %v664_v63  ;;  %v668_v1 = vld [vmem:[%s2903_s11 + $0x390] sm:$0xff] }
  0x57   : > { %667 = vst [vmem:[%s2908_s14 + $0x1c0] sm:$0xff] %v666_v0  ;;  %v670_v2 = vld [vmem:[%s2903_s11 + $0x3a0] sm:$0xff]  ;;  %v672_v3 = vld [vmem:[%s2903_s11 + $0x3b0] sm:$0xff]  ;;  %669 = vst [vmem:[%s2908_s14 + $0x1c8] sm:$0xff] %v668_v1 }
  0x58   : > { %671 = vst [vmem:[%s2908_s14 + $0x1d0] sm:$0xff] %v670_v2  ;;  %673 = vst [vmem:[%s2908_s14 + $0x1d8] sm:$0xff] %v672_v3  ;;  %v674_v4 = vld [vmem:[%s2903_s11 + $0x3c0] sm:$0xff]  ;;  %v676_v5 = vld [vmem:[%s2903_s11 + $0x3d0] sm:$0xff] }
  0x59   : > { %v678_v6 = vld [vmem:[%s2903_s11 + $0x3e0] sm:$0xff]  ;;  %675 = vst [vmem:[%s2908_s14 + $0x1e0] sm:$0xff] %v674_v4  ;;  %677 = vst [vmem:[%s2908_s14 + $0x1e8] sm:$0xff] %v676_v5  ;;  %v680_v7 = vld [vmem:[%s2903_s11 + $0x3f0] sm:$0xff] }
  0x5a   : > { %679 = vst [vmem:[%s2908_s14 + $0x1f0] sm:$0xff] %v678_v6  ;;  %v682_v8 = vld [vmem:[%s2903_s11 + $0x400] sm:$0xff]  ;;  %v684_v9 = vld [vmem:[%s2903_s11 + $0x410] sm:$0xff]  ;;  %681 = vst [vmem:[%s2908_s14 + $0x1f8] sm:$0xff] %v680_v7 }
  0x5b   : > { %683 = vst [vmem:[%s2908_s14 + $0x200] sm:$0xff] %v682_v8  ;;  %685 = vst [vmem:[%s2908_s14 + $0x208] sm:$0xff] %v684_v9  ;;  %v686_v10 = vld [vmem:[%s2903_s11 + $0x420] sm:$0xff]  ;;  %v688_v11 = vld [vmem:[%s2903_s11 + $0x430] sm:$0xff] }
  0x5c   : > { %v690_v12 = vld [vmem:[%s2903_s11 + $0x440] sm:$0xff]  ;;  %687 = vst [vmem:[%s2908_s14 + $0x210] sm:$0xff] %v686_v10  ;;  %689 = vst [vmem:[%s2908_s14 + $0x218] sm:$0xff] %v688_v11  ;;  %v692_v13 = vld [vmem:[%s2903_s11 + $0x450] sm:$0xff] }
  0x5d   : > { %691 = vst [vmem:[%s2908_s14 + $0x220] sm:$0xff] %v690_v12  ;;  %v694_v14 = vld [vmem:[%s2903_s11 + $0x460] sm:$0xff]  ;;  %v696_v15 = vld [vmem:[%s2903_s11 + $0x470] sm:$0xff]  ;;  %693 = vst [vmem:[%s2908_s14 + $0x228] sm:$0xff] %v692_v13 }
  0x5e   : > { %695 = vst [vmem:[%s2908_s14 + $0x230] sm:$0xff] %v694_v14  ;;  %697 = vst [vmem:[%s2908_s14 + $0x238] sm:$0xff] %v696_v15  ;;  %v698_v16 = vld [vmem:[%s2903_s11 + $0x480] sm:$0xff]  ;;  %v700_v17 = vld [vmem:[%s2903_s11 + $0x490] sm:$0xff] }
  0x5f   : > { %v702_v18 = vld [vmem:[%s2903_s11 + $0x4a0] sm:$0xff]  ;;  %699 = vst [vmem:[%s2908_s14 + $0x240] sm:$0xff] %v698_v16  ;;  %701 = vst [vmem:[%s2908_s14 + $0x248] sm:$0xff] %v700_v17  ;;  %v704_v19 = vld [vmem:[%s2903_s11 + $0x4b0] sm:$0xff] }
  0x60   : > { %703 = vst [vmem:[%s2908_s14 + $0x250] sm:$0xff] %v702_v18  ;;  %v706_v20 = vld [vmem:[%s2903_s11 + $0x4c0] sm:$0xff]  ;;  %v708_v21 = vld [vmem:[%s2903_s11 + $0x4d0] sm:$0xff]  ;;  %705 = vst [vmem:[%s2908_s14 + $0x258] sm:$0xff] %v704_v19 }
  0x61   : > { %707 = vst [vmem:[%s2908_s14 + $0x260] sm:$0xff] %v706_v20  ;;  %709 = vst [vmem:[%s2908_s14 + $0x268] sm:$0xff] %v708_v21  ;;  %v710_v22 = vld [vmem:[%s2903_s11 + $0x4e0] sm:$0xff]  ;;  %v712_v23 = vld [vmem:[%s2903_s11 + $0x4f0] sm:$0xff] }
  0x62   : > { %v714_v24 = vld [vmem:[%s2903_s11 + $0x500] sm:$0xff]  ;;  %711 = vst [vmem:[%s2908_s14 + $0x270] sm:$0xff] %v710_v22  ;;  %713 = vst [vmem:[%s2908_s14 + $0x278] sm:$0xff] %v712_v23  ;;  %v716_v25 = vld [vmem:[%s2903_s11 + $0x510] sm:$0xff] }
  0x63   : > { %715 = vst [vmem:[%s2908_s14 + $0x280] sm:$0xff] %v714_v24  ;;  %v718_v26 = vld [vmem:[%s2903_s11 + $0x520] sm:$0xff]  ;;  %v720_v27 = vld [vmem:[%s2903_s11 + $0x530] sm:$0xff]  ;;  %717 = vst [vmem:[%s2908_s14 + $0x288] sm:$0xff] %v716_v25 }
  0x64   : > { %719 = vst [vmem:[%s2908_s14 + $0x290] sm:$0xff] %v718_v26  ;;  %721 = vst [vmem:[%s2908_s14 + $0x298] sm:$0xff] %v720_v27  ;;  %v722_v28 = vld [vmem:[%s2903_s11 + $0x540] sm:$0xff]  ;;  %v724_v29 = vld [vmem:[%s2903_s11 + $0x550] sm:$0xff] }
  0x65   : > { %v726_v30 = vld [vmem:[%s2903_s11 + $0x560] sm:$0xff]  ;;  %723 = vst [vmem:[%s2908_s14 + $0x2a0] sm:$0xff] %v722_v28  ;;  %725 = vst [vmem:[%s2908_s14 + $0x2a8] sm:$0xff] %v724_v29  ;;  %v728_v31 = vld [vmem:[%s2903_s11 + $0x570] sm:$0xff] }
  0x66   : > { %727 = vst [vmem:[%s2908_s14 + $0x2b0] sm:$0xff] %v726_v30  ;;  %v730_v32 = vld [vmem:[%s2903_s11 + $0x580] sm:$0xff]  ;;  %v732_v33 = vld [vmem:[%s2903_s11 + $0x590] sm:$0xff]  ;;  %729 = vst [vmem:[%s2908_s14 + $0x2b8] sm:$0xff] %v728_v31 }
  0x67   : > { %731 = vst [vmem:[%s2908_s14 + $0x2c0] sm:$0xff] %v730_v32  ;;  %733 = vst [vmem:[%s2908_s14 + $0x2c8] sm:$0xff] %v732_v33  ;;  %v734_v34 = vld [vmem:[%s2903_s11 + $0x5a0] sm:$0xff]  ;;  %v736_v35 = vld [vmem:[%s2903_s11 + $0x5b0] sm:$0xff] }
  0x68   : > { %v738_v36 = vld [vmem:[%s2903_s11 + $0x5c0] sm:$0xff]  ;;  %735 = vst [vmem:[%s2908_s14 + $0x2d0] sm:$0xff] %v734_v34  ;;  %737 = vst [vmem:[%s2908_s14 + $0x2d8] sm:$0xff] %v736_v35  ;;  %v740_v37 = vld [vmem:[%s2903_s11 + $0x5d0] sm:$0xff] }
  0x69   : > { %739 = vst [vmem:[%s2908_s14 + $0x2e0] sm:$0xff] %v738_v36  ;;  %v742_v38 = vld [vmem:[%s2903_s11 + $0x5e0] sm:$0xff]  ;;  %v744_v39 = vld [vmem:[%s2903_s11 + $0x5f0] sm:$0xff]  ;;  %741 = vst [vmem:[%s2908_s14 + $0x2e8] sm:$0xff] %v740_v37 }
  0x6a   : > { %743 = vst [vmem:[%s2908_s14 + $0x2f0] sm:$0xff] %v742_v38  ;;  %745 = vst [vmem:[%s2908_s14 + $0x2f8] sm:$0xff] %v744_v39  ;;  %v746_v40 = vld [vmem:[%s2903_s11 + $0x600] sm:$0xff]  ;;  %v748_v41 = vld [vmem:[%s2903_s11 + $0x610] sm:$0xff] }
  0x6b   : > { %v750_v42 = vld [vmem:[%s2903_s11 + $0x620] sm:$0xff]  ;;  %747 = vst [vmem:[%s2908_s14 + $0x300] sm:$0xff] %v746_v40  ;;  %749 = vst [vmem:[%s2908_s14 + $0x308] sm:$0xff] %v748_v41  ;;  %v752_v43 = vld [vmem:[%s2903_s11 + $0x630] sm:$0xff] }
  0x6c   : > { %751 = vst [vmem:[%s2908_s14 + $0x310] sm:$0xff] %v750_v42  ;;  %v754_v44 = vld [vmem:[%s2903_s11 + $0x640] sm:$0xff]  ;;  %v756_v45 = vld [vmem:[%s2903_s11 + $0x650] sm:$0xff]  ;;  %753 = vst [vmem:[%s2908_s14 + $0x318] sm:$0xff] %v752_v43 }
  0x6d   : > { %755 = vst [vmem:[%s2908_s14 + $0x320] sm:$0xff] %v754_v44  ;;  %757 = vst [vmem:[%s2908_s14 + $0x328] sm:$0xff] %v756_v45  ;;  %v758_v46 = vld [vmem:[%s2903_s11 + $0x660] sm:$0xff]  ;;  %v760_v47 = vld [vmem:[%s2903_s11 + $0x670] sm:$0xff] }
  0x6e   : > { %v762_v48 = vld [vmem:[%s2903_s11 + $0x680] sm:$0xff]  ;;  %759 = vst [vmem:[%s2908_s14 + $0x330] sm:$0xff] %v758_v46  ;;  %761 = vst [vmem:[%s2908_s14 + $0x338] sm:$0xff] %v760_v47  ;;  %v764_v49 = vld [vmem:[%s2903_s11 + $0x690] sm:$0xff] }
  0x6f   : > { %763 = vst [vmem:[%s2908_s14 + $0x340] sm:$0xff] %v762_v48  ;;  %v766_v50 = vld [vmem:[%s2903_s11 + $0x6a0] sm:$0xff]  ;;  %v768_v51 = vld [vmem:[%s2903_s11 + $0x6b0] sm:$0xff]  ;;  %765 = vst [vmem:[%s2908_s14 + $0x348] sm:$0xff] %v764_v49 }
  0x70   : > { %767 = vst [vmem:[%s2908_s14 + $0x350] sm:$0xff] %v766_v50  ;;  %769 = vst [vmem:[%s2908_s14 + $0x358] sm:$0xff] %v768_v51  ;;  %v770_v52 = vld [vmem:[%s2903_s11 + $0x6c0] sm:$0xff]  ;;  %v772_v53 = vld [vmem:[%s2903_s11 + $0x6d0] sm:$0xff] }
  0x71   : > { %v774_v54 = vld [vmem:[%s2903_s11 + $0x6e0] sm:$0xff]  ;;  %771 = vst [vmem:[%s2908_s14 + $0x360] sm:$0xff] %v770_v52  ;;  %773 = vst [vmem:[%s2908_s14 + $0x368] sm:$0xff] %v772_v53  ;;  %v776_v55 = vld [vmem:[%s2903_s11 + $0x6f0] sm:$0xff] }
  0x72   : > { %775 = vst [vmem:[%s2908_s14 + $0x370] sm:$0xff] %v774_v54  ;;  %v778_v56 = vld [vmem:[%s2903_s11 + $0x700] sm:$0xff]  ;;  %v780_v57 = vld [vmem:[%s2903_s11 + $0x710] sm:$0xff]  ;;  %777 = vst [vmem:[%s2908_s14 + $0x378] sm:$0xff] %v776_v55 }
  0x73   : > { %779 = vst [vmem:[%s2908_s14 + $0x380] sm:$0xff] %v778_v56  ;;  %781 = vst [vmem:[%s2908_s14 + $0x388] sm:$0xff] %v780_v57  ;;  %v782_v58 = vld [vmem:[%s2903_s11 + $0x720] sm:$0xff]  ;;  %v784_v59 = vld [vmem:[%s2903_s11 + $0x730] sm:$0xff] }
  0x74   : > { %v786_v60 = vld [vmem:[%s2903_s11 + $0x740] sm:$0xff]  ;;  %783 = vst [vmem:[%s2908_s14 + $0x390] sm:$0xff] %v782_v58  ;;  %785 = vst [vmem:[%s2908_s14 + $0x398] sm:$0xff] %v784_v59  ;;  %v788_v61 = vld [vmem:[%s2903_s11 + $0x750] sm:$0xff] }
  0x75   : > { %787 = vst [vmem:[%s2908_s14 + $0x3a0] sm:$0xff] %v786_v60  ;;  %v790_v62 = vld [vmem:[%s2903_s11 + $0x760] sm:$0xff]  ;;  %v792_v63 = vld [vmem:[%s2903_s11 + $0x770] sm:$0xff]  ;;  %789 = vst [vmem:[%s2908_s14 + $0x3a8] sm:$0xff] %v788_v61 }
  0x76   : > { %791 = vst [vmem:[%s2908_s14 + $0x3b0] sm:$0xff] %v790_v62  ;;  %793 = vst [vmem:[%s2908_s14 + $0x3b8] sm:$0xff] %v792_v63  ;;  %v794_v0 = vld [vmem:[%s2903_s11 + $0x780] sm:$0xff]  ;;  %v796_v1 = vld [vmem:[%s2903_s11 + $0x790] sm:$0xff] }
  0x77   : > { %v798_v2 = vld [vmem:[%s2903_s11 + $0x7a0] sm:$0xff]  ;;  %795 = vst [vmem:[%s2908_s14 + $0x3c0] sm:$0xff] %v794_v0  ;;  %797 = vst [vmem:[%s2908_s14 + $0x3c8] sm:$0xff] %v796_v1  ;;  %v800_v3 = vld [vmem:[%s2903_s11 + $0x7b0] sm:$0xff] }
  0x78   : > { %799 = vst [vmem:[%s2908_s14 + $0x3d0] sm:$0xff] %v798_v2  ;;  %v802_v4 = vld [vmem:[%s2903_s11 + $0x7c0] sm:$0xff]  ;;  %v804_v5 = vld [vmem:[%s2903_s11 + $0x7d0] sm:$0xff]  ;;  %801 = vst [vmem:[%s2908_s14 + $0x3d8] sm:$0xff] %v800_v3 }
  0x79   : > { %803 = vst [vmem:[%s2908_s14 + $0x3e0] sm:$0xff] %v802_v4  ;;  %805 = vst [vmem:[%s2908_s14 + $0x3e8] sm:$0xff] %v804_v5  ;;  %v806_v6 = vld [vmem:[%s2903_s11 + $0x7e0] sm:$0xff]  ;;  %v808_v7 = vld [vmem:[%s2903_s11 + $0x7f0] sm:$0xff] }
  0x7a   : > { %807 = vst [vmem:[%s2908_s14 + $0x3f0] sm:$0xff] %v806_v6  ;;  %809 = vst [vmem:[%s2908_s14 + $0x3f8] sm:$0xff] %v808_v7 }
  0x7b PF: > { %p2222_p0 = scmp.ge.s32.totalorder %s2756_s28, 1  ;;  %p822_p1 = scmp.lt.s32.totalorder %s2756_s28, 9 }
  0x7d   : > { %p823_p2 = pnand %p2222_p0, %p822_p1 }
  0x7e   : > { %s829_s0 = sand.u32 (!%p823_p2), 1, %s2732_s22   ;;  %s836_s6 = sand.u32 (!%p823_p2), 1, %s2724_s20  }
  0x7f   : > { %826 = sbr.rel (%p823_p2) target bundleno = 511 (0x1ff), region = 85  ;;  %s2223_s15 = sshll.u32 (!%p823_p2), %s829_s0, 6 }
  0x80   : > { %s2224_s29 = sshll.u32 (!%p823_p2), %s836_s6, 10  ;;  %s863_s9 = sand.u32 (!%p823_p2), 1, %s2716_s18  }
  0x81   : > { %s2226_s11 = sshll.u32 (!%p823_p2), %s2744_s25, 1  ;;  %s2225_s7 = sshll.u32 (!%p823_p2), %s863_s9, 5 }
  0x82   : > { %p893_p3 = scmp.lt.s32.totalorder (!%p823_p2), %s2226_s11, 3  ;;  %s3186_s6 = scalar_lea.vmem (!%p823_p2), [#allocation2], %s2223_s15 }
  0x83   : > { %s3188_s9 = scalar_lea.vmem (!%p823_p2), [#allocation3], %s2224_s29  ;;  %s3190_s27 = scalar_lea.vmem (!%p823_p2), [#allocation4], %s2225_s7 }
  0x84   : > { %p2231_p4 = scmp.ne.s32.totalorder (!%p823_p2), %s2740_s24, 0 }
  0x86   : > { %s3458_s11 = smov (!%p893_p3, %s2226_s11), 3  ;;  %922 = sbr.rel (%p2231_p4) target bundleno = 141 (0x8d), region = 97 }
  0x87   : > { %s895_s10 = scalar_lea.vmem %s3420_s2, %s3458_s11  ;;  %s2228_s13 = sshll.u32 %s3458_s11, 3  ;;  %v2758_v8 = vmov (!%p2231_p4), 0.0  }
  0x88   : > { %s3179_s22 = scalar_lea.vmem %s3422_s4, %s2228_s13  ;;  %s3184_s18 = scalar_lea.vmem %s3423_s5, %s2228_s13  ;;  %923 = vst [vmem:[%s3190_s27] sm:$0xff] (!%p2231_p4), %v2758_v8  ;;  %924 = vst [vmem:[%s3190_s27 + $0x8] sm:$0xff] (!%p2231_p4), %v2758_v8 }
  0x89   : > { %925 = vst [vmem:[%s3190_s27 + $0x10] sm:$0xff] (!%p2231_p4), %v2758_v8  ;;  %926 = vst [vmem:[%s3190_s27 + $0x18] sm:$0xff] (!%p2231_p4), %v2758_v8 }
  0x8d PF: > { %v2478_v9 = vld [vmem:[%s3188_s9 + $0x4] ss:$8 sps:$4 sm:$0xff]   ;;  %v2482_v11 = vld [vmem:[%s3188_s9] ss:$8 sps:$4 sm:$0xff]   ;;  %v2484_v13 = vld [vmem:[%s3188_s9 + $0x14] ss:$8 sps:$4 sm:$0xff]  }
  0x8e   : > { %v2480_v10 = vld [vmem:[%s3188_s9 + $0x204] ss:$8 sps:$4 sm:$0xff]   ;;  %1747 = vmatprep.subr.bf16.mxu1 %v2478_v9  ;;  %v2483_v12 = vld [vmem:[%s3188_s9 + $0x200] ss:$8 sps:$4 sm:$0xff]   ;;  %v2486_v14 = vld [vmem:[%s3188_s9 + $0x214] ss:$8 sps:$4 sm:$0xff]  }
  0x8f   : > { %1833 = vmatprep.subr.bf16.mxu0 %v2480_v10  ;;  %1748 = vmatpush1.bf16.msra.mxu1 %v2482_v11  ;;  %v2488_v15 = vld [vmem:[%s3188_s9 + $0x10] ss:$8 sps:$4 sm:$0xff]   ;;  %v2490_v17 = vld [vmem:[%s3188_s9 + $0x24] ss:$8 sps:$4 sm:$0xff]   ;;  %v2494_v19 = vld [vmem:[%s3188_s9 + $0x20] ss:$8 sps:$4 sm:$0xff]  }
  0x90   : > { %1834 = vmatpush1.bf16.msra.mxu0 %v2483_v12  ;;  %1749 = vmatprep.subr.bf16.mxu1 %v2484_v13  ;;  %v2489_v16 = vld [vmem:[%s3188_s9 + $0x210] ss:$8 sps:$4 sm:$0xff]   ;;  %v2492_v18 = vld [vmem:[%s3188_s9 + $0x224] ss:$8 sps:$4 sm:$0xff]   ;;  %v2495_v20 = vld [vmem:[%s3188_s9 + $0x220] ss:$8 sps:$4 sm:$0xff]  }
  0x91   : > { %1835 = vmatprep.subr.bf16.mxu0 %v2486_v14  ;;  %v2496_v21 = vld [vmem:[%s3188_s9 + $0x34] ss:$8 sps:$4 sm:$0xff]   ;;  %v2500_v23 = vld [vmem:[%s3188_s9 + $0x30] ss:$8 sps:$4 sm:$0xff]   ;;  %v2502_v25 = vld [vmem:[%s3188_s9 + $0x44] ss:$8 sps:$4 sm:$0xff]  }
  0x92   : > { %v2498_v22 = vld [vmem:[%s3188_s9 + $0x234] ss:$8 sps:$4 sm:$0xff]   ;;  %v2501_v24 = vld [vmem:[%s3188_s9 + $0x230] ss:$8 sps:$4 sm:$0xff]   ;;  %v2504_v26 = vld [vmem:[%s3188_s9 + $0x244] ss:$8 sps:$4 sm:$0xff]  }
  0x93   : > { %1750 = vmatpush1.bf16.msra.mxu1 %v2488_v15  ;;  %v2506_v27 = vld [vmem:[%s3188_s9 + $0x40] ss:$8 sps:$4 sm:$0xff]   ;;  %v2508_v29 = vld [vmem:[%s3188_s9 + $0x54] ss:$8 sps:$4 sm:$0xff]   ;;  %v2512_v31 = vld [vmem:[%s3188_s9 + $0x50] ss:$8 sps:$4 sm:$0xff]  }
  0x94   : > { %1836 = vmatpush1.bf16.msra.mxu0 %v2489_v16  ;;  %1751 = vmatprep.subr.bf16.mxu1 %v2490_v17  ;;  %v2507_v28 = vld [vmem:[%s3188_s9 + $0x240] ss:$8 sps:$4 sm:$0xff]   ;;  %v2510_v30 = vld [vmem:[%s3188_s9 + $0x254] ss:$8 sps:$4 sm:$0xff]   ;;  %v2513_v32 = vld [vmem:[%s3188_s9 + $0x250] ss:$8 sps:$4 sm:$0xff]  }
  0x95   : > { %1837 = vmatprep.subr.bf16.mxu0 %v2492_v18  ;;  %v2514_v33 = vld [vmem:[%s3188_s9 + $0x64] ss:$8 sps:$4 sm:$0xff]   ;;  %v2518_v35 = vld [vmem:[%s3188_s9 + $0x60] ss:$8 sps:$4 sm:$0xff]   ;;  %v2520_v37 = vld [vmem:[%s3188_s9 + $0x74] ss:$8 sps:$4 sm:$0xff]  }
  0x96   : > { %v2516_v34 = vld [vmem:[%s3188_s9 + $0x264] ss:$8 sps:$4 sm:$0xff]   ;;  %v2519_v36 = vld [vmem:[%s3188_s9 + $0x260] ss:$8 sps:$4 sm:$0xff]   ;;  %v2522_v38 = vld [vmem:[%s3188_s9 + $0x274] ss:$8 sps:$4 sm:$0xff]  }
  0x97   : > { %1752 = vmatpush1.bf16.msra.mxu1 %v2494_v19  ;;  %v2524_v39 = vld [vmem:[%s3188_s9 + $0x70] ss:$8 sps:$4 sm:$0xff]   ;;  %v2526_v41 = vld [vmem:[%s3188_s9 + $0x84] ss:$8 sps:$4 sm:$0xff]   ;;  %v2530_v43 = vld [vmem:[%s3188_s9 + $0x80] ss:$8 sps:$4 sm:$0xff]  }
  0x98   : > { %1838 = vmatpush1.bf16.msra.mxu0 %v2495_v20  ;;  %1753 = vmatprep.subr.bf16.mxu1 %v2496_v21  ;;  %v2525_v40 = vld [vmem:[%s3188_s9 + $0x270] ss:$8 sps:$4 sm:$0xff]   ;;  %v2528_v42 = vld [vmem:[%s3188_s9 + $0x284] ss:$8 sps:$4 sm:$0xff]   ;;  %v2531_v44 = vld [vmem:[%s3188_s9 + $0x280] ss:$8 sps:$4 sm:$0xff]  }
  0x99   : > { %1839 = vmatprep.subr.bf16.mxu0 %v2498_v22  ;;  %v2532_v45 = vld [vmem:[%s3188_s9 + $0x94] ss:$8 sps:$4 sm:$0xff]   ;;  %v2536_v47 = vld [vmem:[%s3188_s9 + $0x90] ss:$8 sps:$4 sm:$0xff]   ;;  %v2538_v49 = vld [vmem:[%s3188_s9 + $0xa4] ss:$8 sps:$4 sm:$0xff]  }
  0x9a   : > { %v2534_v46 = vld [vmem:[%s3188_s9 + $0x294] ss:$8 sps:$4 sm:$0xff]   ;;  %v2537_v48 = vld [vmem:[%s3188_s9 + $0x290] ss:$8 sps:$4 sm:$0xff]   ;;  %v2540_v50 = vld [vmem:[%s3188_s9 + $0x2a4] ss:$8 sps:$4 sm:$0xff]  }
  0x9b   : > { %1754 = vmatpush1.bf16.msra.mxu1 %v2500_v23  ;;  %v2542_v51 = vld [vmem:[%s3188_s9 + $0xa0] ss:$8 sps:$4 sm:$0xff]   ;;  %v2544_v53 = vld [vmem:[%s3188_s9 + $0xb4] ss:$8 sps:$4 sm:$0xff]   ;;  %v2548_v55 = vld [vmem:[%s3188_s9 + $0xb0] ss:$8 sps:$4 sm:$0xff]  }
  0x9c   : > { %1840 = vmatpush1.bf16.msra.mxu0 %v2501_v24  ;;  %1755 = vmatprep.subr.bf16.mxu1 %v2502_v25  ;;  %v2543_v52 = vld [vmem:[%s3188_s9 + $0x2a0] ss:$8 sps:$4 sm:$0xff]   ;;  %v2546_v54 = vld [vmem:[%s3188_s9 + $0x2b4] ss:$8 sps:$4 sm:$0xff]   ;;  %v2549_v56 = vld [vmem:[%s3188_s9 + $0x2b0] ss:$8 sps:$4 sm:$0xff]  }
  0x9d   : > { %1841 = vmatprep.subr.bf16.mxu0 %v2504_v26  ;;  %v931_v57 = vld [vmem:[%s3186_s6] sm:$0xff]  ;;  %v933_v62 = vld [vmem:[%s3186_s6 + $0x10] sm:$0xff]  ;;  %p2368_p5 = scmp.ne.s32.totalorder %s2740_s24, 3 }
  0x9e   : > { %v935_v58 = vld [vmem:[%s3186_s6 + $0x20] sm:$0xff]  ;;  %v937_v63 = vld [vmem:[%s3186_s6 + $0x30] sm:$0xff] }
  0x9f   : > { %1756 = vmatpush1.bf16.msra.mxu1 %v2506_v27  ;;  %v2550_v59 = vld [vmem:[%s3188_s9 + $0xc4] ss:$8 sps:$4 sm:$0xff]   ;;  %v2233_v61 = vcombine.high %v931_v57, %v935_v58  ;;  %v2237_v0 = vcombine.high %v933_v62, %v937_v63  ;;  %v2554_v1 = vld [vmem:[%s3188_s9 + $0xc0] ss:$8 sps:$4 sm:$0xff]   ;;  %v2556_v3 = vld [vmem:[%s3188_s9 + $0xd4] ss:$8 sps:$4 sm:$0xff]   ;;  %v2232_v17 = vcombine.low %v931_v57, %v935_v58  ;;  %v2236_v19 = vcombine.low %v933_v62, %v937_v63 }
  0xa0   : > { %1842 = vmatpush1.bf16.msra.mxu0 %v2507_v28  ;;  %1757 = vmatprep.subr.bf16.mxu1 %v2508_v29  ;;  %v2552_v60 = vld [vmem:[%s3188_s9 + $0x2c4] ss:$8 sps:$4 sm:$0xff]   ;;  %v2555_v2 = vld [vmem:[%s3188_s9 + $0x2c0] ss:$8 sps:$4 sm:$0xff]   ;;  %v2558_v4 = vld [vmem:[%s3188_s9 + $0x2d4] ss:$8 sps:$4 sm:$0xff]  }
  0xa1   : > { %1843 = vmatprep.subr.bf16.mxu0 %v2510_v30  ;;  %1779 = vmatprep.mubr.bf16.mxu1 %v2233_v61  ;;  %v2560_v5 = vld [vmem:[%s3188_s9 + $0xd0] ss:$8 sps:$4 sm:$0xff]   ;;  %v2562_v7 = vld [vmem:[%s3188_s9 + $0xe4] ss:$8 sps:$4 sm:$0xff]   ;;  %v2566_v9 = vld [vmem:[%s3188_s9 + $0xe0] ss:$8 sps:$4 sm:$0xff]  }
  0xa2   : > { %1865 = vmatprep.mubr.bf16.mxu0 %v2237_v0  ;;  %v2561_v6 = vld [vmem:[%s3188_s9 + $0x2d0] ss:$8 sps:$4 sm:$0xff]   ;;  %v2564_v8 = vld [vmem:[%s3188_s9 + $0x2e4] ss:$8 sps:$4 sm:$0xff]   ;;  %v2567_v10 = vld [vmem:[%s3188_s9 + $0x2e0] ss:$8 sps:$4 sm:$0xff]  }
  0xa3   : > { %1758 = vmatpush1.bf16.msra.mxu1 %v2512_v31  ;;  %v2568_v11 = vld [vmem:[%s3188_s9 + $0xf4] ss:$8 sps:$4 sm:$0xff]   ;;  %v2572_v13 = vld [vmem:[%s3188_s9 + $0xf0] ss:$8 sps:$4 sm:$0xff]   ;;  %v2576_v15 = vld [vmem:[%s3188_s9 + $0x104] ss:$8 sps:$4 sm:$0xff]  }
  0xa4   : > { %1844 = vmatpush1.bf16.msra.mxu0 %v2513_v32  ;;  %1759 = vmatprep.subr.bf16.mxu1 %v2514_v33  ;;  %v2570_v12 = vld [vmem:[%s3188_s9 + $0x2f4] ss:$8 sps:$4 sm:$0xff]   ;;  %v2573_v14 = vld [vmem:[%s3188_s9 + $0x2f0] ss:$8 sps:$4 sm:$0xff]   ;;  %v2579_v16 = vld [vmem:[%s3188_s9 + $0x304] ss:$8 sps:$4 sm:$0xff]  }
  0xa5   : > { %1845 = vmatprep.subr.bf16.mxu0 %v2516_v34  ;;  %v2574_v18 = vld [vmem:[%s3188_s9 + $0x100] ss:$8 sps:$4 sm:$0xff]   ;;  %v2582_v21 = vld [vmem:[%s3188_s9 + $0x114] ss:$8 sps:$4 sm:$0xff]   ;;  %v2580_v23 = vld [vmem:[%s3188_s9 + $0x110] ss:$8 sps:$4 sm:$0xff]  }
  0xa6   : > { %v2577_v20 = vld [vmem:[%s3188_s9 + $0x300] ss:$8 sps:$4 sm:$0xff]   ;;  %v2585_v22 = vld [vmem:[%s3188_s9 + $0x314] ss:$8 sps:$4 sm:$0xff]   ;;  %v2583_v24 = vld [vmem:[%s3188_s9 + $0x310] ss:$8 sps:$4 sm:$0xff]  }
  0xa7   : > { %1760 = vmatpush1.bf16.msra.mxu1 %v2518_v35  ;;  %v2588_v25 = vld [vmem:[%s3188_s9 + $0x124] ss:$8 sps:$4 sm:$0xff]   ;;  %v2586_v27 = vld [vmem:[%s3188_s9 + $0x120] ss:$8 sps:$4 sm:$0xff]   ;;  %v2594_v29 = vld [vmem:[%s3188_s9 + $0x134] ss:$8 sps:$4 sm:$0xff]  }
  0xa8   : > { %1846 = vmatpush1.bf16.msra.mxu0 %v2519_v36  ;;  %1761 = vmatprep.subr.bf16.mxu1 %v2520_v37  ;;  %v2591_v26 = vld [vmem:[%s3188_s9 + $0x324] ss:$8 sps:$4 sm:$0xff]   ;;  %v2589_v28 = vld [vmem:[%s3188_s9 + $0x320] ss:$8 sps:$4 sm:$0xff]   ;;  %v2597_v30 = vld [vmem:[%s3188_s9 + $0x334] ss:$8 sps:$4 sm:$0xff]  }
  0xa9   : > { %1847 = vmatprep.subr.bf16.mxu0 %v2522_v38  ;;  %v2592_v31 = vld [vmem:[%s3188_s9 + $0x130] ss:$8 sps:$4 sm:$0xff]   ;;  %v2600_v33 = vld [vmem:[%s3188_s9 + $0x144] ss:$8 sps:$4 sm:$0xff]   ;;  %v2598_v35 = vld [vmem:[%s3188_s9 + $0x140] ss:$8 sps:$4 sm:$0xff]  }
  0xaa   : > { %v2595_v32 = vld [vmem:[%s3188_s9 + $0x330] ss:$8 sps:$4 sm:$0xff]   ;;  %v2603_v34 = vld [vmem:[%s3188_s9 + $0x344] ss:$8 sps:$4 sm:$0xff]   ;;  %v2601_v36 = vld [vmem:[%s3188_s9 + $0x340] ss:$8 sps:$4 sm:$0xff]  }
  0xab   : > { %1762 = vmatpush1.bf16.msra.mxu1 %v2524_v39  ;;  %v2606_v37 = vld [vmem:[%s3188_s9 + $0x154] ss:$8 sps:$4 sm:$0xff]   ;;  %v2604_v39 = vld [vmem:[%s3188_s9 + $0x150] ss:$8 sps:$4 sm:$0xff]   ;;  %v2622_v57 = vld [vmem:[%s3188_s9 + $0x180] ss:$8 sps:$4 sm:$0xff]  }
  0xac   : > { %1848 = vmatpush1.bf16.msra.mxu0 %v2525_v40  ;;  %1763 = vmatprep.subr.bf16.mxu1 %v2526_v41  ;;  %v2609_v38 = vld [vmem:[%s3188_s9 + $0x354] ss:$8 sps:$4 sm:$0xff]   ;;  %v2607_v40 = vld [vmem:[%s3188_s9 + $0x350] ss:$8 sps:$4 sm:$0xff]   ;;  %v2612_v41 = vld [vmem:[%s3188_s9 + $0x164] ss:$8 sps:$4 sm:$0xff]  }
  0xad   : > { %1849 = vmatprep.subr.bf16.mxu0 %v2528_v42  ;;  %v2615_v42 = vld [vmem:[%s3188_s9 + $0x364] ss:$8 sps:$4 sm:$0xff]   ;;  %v2625_v58 = vld [vmem:[%s3188_s9 + $0x380] ss:$8 sps:$4 sm:$0xff]   ;;  %v2628_v61 = vld [vmem:[%s3188_s9 + $0x190] ss:$8 sps:$4 sm:$0xff]  }
  0xae   : > { %v2631_v62 = vld [vmem:[%s3188_s9 + $0x390] ss:$8 sps:$4 sm:$0xff]   ;;  %v2636_v63 = vld [vmem:[%s3188_s9 + $0x1a4] ss:$8 sps:$4 sm:$0xff]  }
  0xaf   : > { %1764 = vmatpush1.bf16.msra.mxu1 %v2530_v43  ;;  %v3292_v43 = vld [vmem:[%s3186_s6 + $0x8] sm:$0xff] }
  0xb0   : > { %1850 = vmatpush1.bf16.msra.mxu0 %v2531_v44  ;;  %1765 = vmatprep.subr.bf16.mxu1 %v2532_v45  ;;  %v3295_v44 = vld [vmem:[%s3186_s6 + $0x28] sm:$0xff]  ;;  %v3298_v45 = vld [vmem:[%s3186_s6 + $0x18] sm:$0xff] }
  0xb1   : > { %1851 = vmatprep.subr.bf16.mxu0 %v2534_v46  ;;  %v3301_v46 = vld [vmem:[%s3186_s6 + $0x38] sm:$0xff]  ;;  %v2639_v0 = vld [vmem:[%s3188_s9 + $0x3a4] ss:$8 sps:$4 sm:$0xff]  }
  0xb3   : > { %1766 = vmatpush1.bf16.msra.mxu1 %v2536_v47  ;;  %v2610_v47 = vld [vmem:[%s3188_s9 + $0x160] ss:$8 sps:$4 sm:$0xff]  }
  0xb4   : > { %1852 = vmatpush1.bf16.msra.mxu0 %v2537_v48  ;;  %1767 = vmatprep.subr.bf16.mxu1 %v2538_v49  ;;  %v2613_v48 = vld [vmem:[%s3188_s9 + $0x360] ss:$8 sps:$4 sm:$0xff]   ;;  %v2235_v49 = vcombine.high %v3292_v43, %v3295_v44 }
  0xb5   : > { %1853 = vmatprep.subr.bf16.mxu0 %v2540_v50  ;;  %v2618_v50 = vld [vmem:[%s3188_s9 + $0x174] ss:$8 sps:$4 sm:$0xff]  }
  0xb7   : > { %1768 = vmatpush1.bf16.msra.mxu1 %v2542_v51  ;;  %v2621_v51 = vld [vmem:[%s3188_s9 + $0x374] ss:$8 sps:$4 sm:$0xff]  }
  0xb8   : > { %1854 = vmatpush1.bf16.msra.mxu0 %v2543_v52  ;;  %1769 = vmatprep.subr.bf16.mxu1 %v2544_v53  ;;  %v2239_v52 = vcombine.high %v3298_v45, %v3301_v46  ;;  %v2616_v53 = vld [vmem:[%s3188_s9 + $0x170] ss:$8 sps:$4 sm:$0xff]  }
  0xb9   : > { %1855 = vmatprep.subr.bf16.mxu0 %v2546_v54  ;;  %v2619_v54 = vld [vmem:[%s3188_s9 + $0x370] ss:$8 sps:$4 sm:$0xff]  }
  0xbb   : > { %1770 = vmatpush1.bf16.msra.mxu1 %v2548_v55  ;;  %v2624_v55 = vld [vmem:[%s3188_s9 + $0x184] ss:$8 sps:$4 sm:$0xff]  }
  0xbc   : > { %1856 = vmatpush1.bf16.msra.mxu0 %v2549_v56  ;;  %1771 = vmatprep.subr.bf16.mxu1 %v2550_v59  ;;  %v2627_v56 = vld [vmem:[%s3188_s9 + $0x384] ss:$8 sps:$4 sm:$0xff]   ;;  %v2630_v59 = vld [vmem:[%s3188_s9 + $0x194] ss:$8 sps:$4 sm:$0xff]  }
  0xbd   : > { %1857 = vmatprep.subr.bf16.mxu0 %v2552_v60  ;;  %v2633_v60 = vld [vmem:[%s3188_s9 + $0x394] ss:$8 sps:$4 sm:$0xff]  }
  0xbf   : > { %1772 = vmatpush1.bf16.msra.mxu1 %v2554_v1  ;;  %v2634_v1 = vld [vmem:[%s3188_s9 + $0x1a0] ss:$8 sps:$4 sm:$0xff]  }
  0xc0   : > { %1858 = vmatpush1.bf16.msra.mxu0 %v2555_v2  ;;  %1773 = vmatprep.subr.bf16.mxu1 %v2556_v3  ;;  %v2637_v2 = vld [vmem:[%s3188_s9 + $0x3a0] ss:$8 sps:$4 sm:$0xff]   ;;  %v2642_v3 = vld [vmem:[%s3188_s9 + $0x1b4] ss:$8 sps:$4 sm:$0xff]  }
  0xc1   : > { %1859 = vmatprep.subr.bf16.mxu0 %v2558_v4  ;;  %v2645_v4 = vld [vmem:[%s3188_s9 + $0x3b4] ss:$8 sps:$4 sm:$0xff]  }
  0xc3   : > { %1774 = vmatpush1.bf16.msra.mxu1 %v2560_v5  ;;  %v2640_v5 = vld [vmem:[%s3188_s9 + $0x1b0] ss:$8 sps:$4 sm:$0xff]  }
  0xc4   : > { %1860 = vmatpush1.bf16.msra.mxu0 %v2561_v6  ;;  %1775 = vmatprep.subr.bf16.mxu1 %v2562_v7  ;;  %v2643_v6 = vld [vmem:[%s3188_s9 + $0x3b0] ss:$8 sps:$4 sm:$0xff]   ;;  %v2648_v7 = vld [vmem:[%s3188_s9 + $0x1c4] ss:$8 sps:$4 sm:$0xff]  }
  0xc5   : > { %1861 = vmatprep.subr.bf16.mxu0 %v2564_v8  ;;  %v2651_v8 = vld [vmem:[%s3188_s9 + $0x3c4] ss:$8 sps:$4 sm:$0xff]  }
  0xc7   : > { %1776 = vmatpush1.bf16.msra.mxu1 %v2566_v9  ;;  %v2646_v9 = vld [vmem:[%s3188_s9 + $0x1c0] ss:$8 sps:$4 sm:$0xff]  }
  0xc8   : > { %1862 = vmatpush1.bf16.msra.mxu0 %v2567_v10  ;;  %1777 = vmatprep.subr.bf16.mxu1 %v2568_v11  ;;  %v2649_v10 = vld [vmem:[%s3188_s9 + $0x3c0] ss:$8 sps:$4 sm:$0xff]   ;;  %v2654_v11 = vld [vmem:[%s3188_s9 + $0x1d4] ss:$8 sps:$4 sm:$0xff]  }
  0xc9   : > { %1863 = vmatprep.subr.bf16.mxu0 %v2570_v12  ;;  %v2657_v12 = vld [vmem:[%s3188_s9 + $0x3d4] ss:$8 sps:$4 sm:$0xff]  }
  0xcb   : > { %1778 = vmatpush1.bf16.msra.mxu1 %v2572_v13  ;;  %v2652_v13 = vld [vmem:[%s3188_s9 + $0x1d0] ss:$8 sps:$4 sm:$0xff]  }
  0xcc   : > { %1864 = vmatpush1.bf16.msra.mxu0 %v2573_v14  ;;  %1790 = vmatprep.subr.bf16.mxu1 %v2576_v15  ;;  %v2655_v14 = vld [vmem:[%s3188_s9 + $0x3d0] ss:$8 sps:$4 sm:$0xff]   ;;  %v2660_v15 = vld [vmem:[%s3188_s9 + $0x1e4] ss:$8 sps:$4 sm:$0xff]  }
  0xcd   : > { %1876 = vmatprep.subr.bf16.mxu0 %v2579_v16  ;;  %v2663_v16 = vld [vmem:[%s3188_s9 + $0x3e4] ss:$8 sps:$4 sm:$0xff]  }
  0xce   : > { %1780 = vmatmul.mubr.bf16.vlgmr.msra.gmra.mrb[0].mxu1 %v2232_v17  ;;  %v2658_v17 = vld [vmem:[%s3188_s9 + $0x1e0] ss:$8 sps:$4 sm:$0xff]  }
  0xcf   : > { %1866 = vmatmul.mubr.bf16.vlgmr.msra.gmra.mrb[0].mxu0 %v2236_v19  ;;  %1791 = vmatpush1.bf16.msra.mxu1 %v2574_v18  ;;  %v2661_v18 = vld [vmem:[%s3188_s9 + $0x3e0] ss:$8 sps:$4 sm:$0xff]   ;;  %v2666_v19 = vld [vmem:[%s3188_s9 + $0x1f4] ss:$8 sps:$4 sm:$0xff]  }
  0xd0   : > { %1877 = vmatpush1.bf16.msra.mxu0 %v2577_v20  ;;  %1792 = vmatprep.subr.bf16.mxu1 %v2582_v21  ;;  %v2669_v20 = vld [vmem:[%s3188_s9 + $0x3f4] ss:$8 sps:$4 sm:$0xff]   ;;  %v2664_v21 = vld [vmem:[%s3188_s9 + $0x1f0] ss:$8 sps:$4 sm:$0xff]  }
  0xd1   : > { %1878 = vmatprep.subr.bf16.mxu0 %v2585_v22  ;;  %1822 = vmatprep.mubr.bf16.mxu1 %v2235_v49  ;;  %v2667_v22 = vld [vmem:[%s3188_s9 + $0x3f0] ss:$8 sps:$4 sm:$0xff]  }
  0xd2   : > { %1908 = vmatprep.mubr.bf16.mxu0 %v2239_v52 }
  0xd3   : > { %1793 = vmatpush1.bf16.msra.mxu1 %v2580_v23  ;;  %v2234_v23 = vcombine.low %v3292_v43, %v3295_v44 }
  0xd4   : > { %1879 = vmatpush1.bf16.msra.mxu0 %v2583_v24  ;;  %1794 = vmatprep.subr.bf16.mxu1 %v2588_v25  ;;  %v2238_v24 = vcombine.low %v3298_v45, %v3301_v46 }
  0xd5   : > { %1880 = vmatprep.subr.bf16.mxu0 %v2591_v26  ;;  %v927_v26 = vld [vmem:[%s3190_s27] sm:$0xff] }
  0xd7   : > { %1795 = vmatpush1.bf16.msra.mxu1 %v2586_v27 }
  0xd8   : > { %1881 = vmatpush1.bf16.msra.mxu0 %v2589_v28  ;;  %1796 = vmatprep.subr.bf16.mxu1 %v2594_v29 }
  0xd9   : > { %1882 = vmatprep.subr.bf16.mxu0 %v2597_v30  ;;  %v928_v30 = vld [vmem:[%s3190_s27 + $0x8] sm:$0xff] }
  0xdb   : > { %1797 = vmatpush1.bf16.msra.mxu1 %v2592_v31 }
  0xdc   : > { %1883 = vmatpush1.bf16.msra.mxu0 %v2595_v32  ;;  %1798 = vmatprep.subr.bf16.mxu1 %v2600_v33 }
  0xdd   : > { %1884 = vmatprep.subr.bf16.mxu0 %v2603_v34  ;;  %v929_v34 = vld [vmem:[%s3190_s27 + $0x10] sm:$0xff] }
  0xdf   : > { %1799 = vmatpush1.bf16.msra.mxu1 %v2598_v35 }
  0xe0   : > { %1885 = vmatpush1.bf16.msra.mxu0 %v2601_v36  ;;  %1800 = vmatprep.subr.bf16.mxu1 %v2606_v37 }
  0xe1   : > { %1886 = vmatprep.subr.bf16.mxu0 %v2609_v38 }
  0xe3   : > { %1801 = vmatpush1.bf16.msra.mxu1 %v2604_v39  ;;  %v930_v39 = vld [vmem:[%s3190_s27 + $0x18] sm:$0xff] }
  0xe4   : > { %1887 = vmatpush1.bf16.msra.mxu0 %v2607_v40  ;;  %1802 = vmatprep.subr.bf16.mxu1 %v2612_v41 }
  0xe5   : > { %1888 = vmatprep.subr.bf16.mxu0 %v2615_v42 }
  0xe7   : > { %1803 = vmatpush1.bf16.msra.mxu1 %v2610_v47 }
  0xe8   : > { %1889 = vmatpush1.bf16.msra.mxu0 %v2613_v48  ;;  %1804 = vmatprep.subr.bf16.mxu1 %v2618_v50  ;;  %v1949_v48 = vlaneseq (!%p2368_p5) }
  0xe9   : > { %1890 = vmatprep.subr.bf16.mxu0 %v2621_v51 }
  0xeb   : > { %1805 = vmatpush1.bf16.msra.mxu1 %v2616_v53 }
  0xec   : > { %1891 = vmatpush1.bf16.msra.mxu0 %v2619_v54  ;;  %1806 = vmatprep.subr.bf16.mxu1 %v2624_v55 }
  0xed   : > { %1892 = vmatprep.subr.bf16.mxu0 %v2627_v56  ;;  %v1950_v56 = vshrl.u32 (!%p2368_p5), %v1949_v48, 7 }
  0xef   : > { %1807 = vmatpush1.bf16.msra.mxu1 %v2622_v57 }
  0xf0   : > { %1893 = vmatpush1.bf16.msra.mxu0 %v2625_v58  ;;  %1808 = vmatprep.subr.bf16.mxu1 %v2630_v59  ;;  %v1947_v58 = vld [vmem:[%s895_s10] sm:$0x3] (!%p2368_p5) }
  0xf1   : > { %1894 = vmatprep.subr.bf16.mxu0 %v2633_v60  ;;  %v1951_v60 = vsub.s32 (!%p2368_p5), 0, %v1950_v56 }
  0xf3   : > { %1809 = vmatpush1.bf16.msra.mxu1 %v2628_v61  ;;  %v1955_v61 = vsub.s32 (!%p2368_p5), 1, %v1950_v56 }
  0xf4   : > { %1895 = vmatpush1.bf16.msra.mxu0 %v2631_v62  ;;  %1810 = vmatprep.subr.bf16.mxu1 %v2636_v63  ;;  %v1952_v62 = vrot.slane (!%p2368_p5), %v1947_v58, %v1951_v60 }
  0xf5   : > { %1896 = vmatprep.subr.bf16.mxu0 %v2639_v0  ;;  %v1956_v63 = vrot.slane (!%p2368_p5), %v1947_v58, %v1955_v61 }
  0xf7   : > { %1811 = vmatpush1.bf16.msra.mxu1 %v2634_v1 }
  0xf8   : > { %1897 = vmatpush1.bf16.msra.mxu0 %v2637_v2  ;;  %1812 = vmatprep.subr.bf16.mxu1 %v2642_v3 }
  0xf9   : > { %1898 = vmatprep.subr.bf16.mxu0 %v2645_v4 }
  0xfb   : > { %1813 = vmatpush1.bf16.msra.mxu1 %v2640_v5 }
  0xfc   : > { %1899 = vmatpush1.bf16.msra.mxu0 %v2643_v6  ;;  %1814 = vmatprep.subr.bf16.mxu1 %v2648_v7 }
  0xfd   : > { %1900 = vmatprep.subr.bf16.mxu0 %v2651_v8 }
  0xff   : > { %1815 = vmatpush1.bf16.msra.mxu1 %v2646_v9 }
 0x100   : > { %1901 = vmatpush1.bf16.msra.mxu0 %v2649_v10  ;;  %1816 = vmatprep.subr.bf16.mxu1 %v2654_v11 }
 0x101   : > { %1902 = vmatprep.subr.bf16.mxu0 %v2657_v12 }
 0x103   : > { %1817 = vmatpush1.bf16.msra.mxu1 %v2652_v13 }
 0x104   : > { %1903 = vmatpush1.bf16.msra.mxu0 %v2655_v14  ;;  %1818 = vmatprep.subr.bf16.mxu1 %v2660_v15 }
 0x105   : > { %1904 = vmatprep.subr.bf16.mxu0 %v2663_v16 }
 0x107   : > { %1819 = vmatpush1.bf16.msra.mxu1 %v2658_v17 }
 0x108   : > { %1905 = vmatpush1.bf16.msra.mxu0 %v2661_v18  ;;  %1820 = vmatprep.subr.bf16.mxu1 %v2666_v19 }
 0x109   : > { %1906 = vmatprep.subr.bf16.mxu0 %v2669_v20 }
 0x10b   : > { %1821 = vmatpush1.bf16.msra.mxu1 %v2664_v21 }
 0x10c   : > { %1907 = vmatpush1.bf16.msra.mxu0 %v2667_v22 }
 0x10e   : > { %1823 = vmatmul.mubr.bf16.vlgmr.msra.gmra.mrb[0].mxu1 %v2234_v23 }
 0x10f   : > { %1909 = vmatmul.mubr.bf16.vlgmr.msra.gmra.mrb[0].mxu0 %v2238_v24 }
 0x1e1   : > { %v1824_v25 = vpop.f32.mrb[0].mxu1 }
 0x1e2   : > { %v1910_v27 = vpop.f32.mrb[0].mxu0  ;;  %v1826_v29 = vpop.f32.mrb[1].mxu1 }
 0x1e3   : > { %v2377_v28 = vadd.f32 %v1910_v27, %v1824_v25  ;;  %v1912_v31 = vpop.f32.mrb[1].mxu0  ;;  %v1828_v33 = vpop.f32.mrb[2].mxu1 }
 0x1e4   : > { %v2378_v32 = vadd.f32 %v1912_v31, %v1826_v29  ;;  %v1914_v35 = vpop.f32.mrb[2].mxu0  ;;  %v1830_v38 = vpop.f32.mrb[3].mxu1  ;;  %1930 = sbr.rel (%p2368_p5) target bundleno = 503 (0x1f7), region = 101 }
 0x1e5   : > { %v1919_v36 = vadd.f32 %v2377_v28, %v927_v26  ;;  %v2379_v37 = vadd.f32 %v1914_v35, %v1828_v33  ;;  %v1916_v40 = vpop.f32.mrb[3].mxu0 }
 0x1e6   : > { %v1920_v41 = vadd.f32 %v2378_v32, %v928_v30  ;;  %v2380_v42 = vadd.f32 %v1916_v40, %v1830_v38 }
 0x1e7   : > { %1923 = vst [vmem:[%s3190_s27] sm:$0xff] %v1919_v36  ;;  %v1921_v43 = vadd.f32 %v2379_v37, %v929_v34 }
 0x1e8   : > { %1924 = vst [vmem:[%s3190_s27 + $0x8] sm:$0xff] %v1920_v41  ;;  %v1922_v44 = vadd.f32 %v2380_v42, %v930_v39 }
 0x1e9   : > { %1925 = vst [vmem:[%s3190_s27 + $0x10] sm:$0xff] %v1921_v43 }
 0x1ea   : > { %1926 = vst [vmem:[%s3190_s27 + $0x18] sm:$0xff] %v1922_v44 }
 0x1ee   : > { %v1931_v45 = vld [vmem:[%s3190_s27] sm:$0xff] }
 0x1ef   : > { %v1932_v47 = vld [vmem:[%s3190_s27 + $0x8] sm:$0xff]  ;;  %v1939_v50 = vmul.f32 %v1931_v45, %v1931_v45  ;;  %v1959_v0 = vadd.f32 %v1952_v62, %v1931_v45 }
 0x1f0   : > { %v1933_v46 = vld [vmem:[%s3190_s27 + $0x10] sm:$0xff]  ;;  %v1940_v53 = vmul.f32 %v1932_v47, %v1932_v47  ;;  %v1960_v1 = vadd.f32 %v1956_v63, %v1932_v47 }
 0x1f1   : > { %v1935_v49 = vadd.f32 %v1933_v46, %v1931_v45  ;;  %v1941_v51 = vmul.f32 %v1933_v46, %v1933_v46  ;;  %v1934_v52 = vld [vmem:[%s3190_s27 + $0x18] sm:$0xff]  ;;  %v1961_v2 = vadd.f32 %v1952_v62, %v1933_v46  ;;  %1963 = vst [vmem:[%s3190_s27] sm:$0xff] %v1959_v0 }
 0x1f2   : > { %v1936_v54 = vadd.f32 %v1934_v52, %v1932_v47  ;;  %v1942_v55 = vmul.f32 %v1934_v52, %v1934_v52  ;;  %v1962_v3 = vadd.f32 %v1956_v63, %v1934_v52  ;;  %1964 = vst [vmem:[%s3190_s27 + $0x8] sm:$0xff] %v1960_v1 }
 0x1f3   : > { %1937 = vst [vmem:[%s3179_s22] sm:$0xff] %v1935_v49  ;;  %v1943_v57 = vadd.f32 %v1941_v51, %v1939_v50  ;;  %1965 = vst [vmem:[%s3190_s27 + $0x10] sm:$0xff] %v1961_v2 }
 0x1f4   : > { %1938 = vst [vmem:[%s3179_s22 + $0x8] sm:$0xff] %v1936_v54  ;;  %v1944_v59 = vadd.f32 %v1942_v55, %v1940_v53  ;;  %1966 = vst [vmem:[%s3190_s27 + $0x18] sm:$0xff] %v1962_v3 }
 0x1f5   : > { %1945 = vst [vmem:[%s3184_s18] sm:$0xff] %v1943_v57 }
 0x1f6   : > { %1946 = vst [vmem:[%s3184_s18 + $0x8] sm:$0xff] %v1944_v59 }
 0x1f7 PF: > { %1991 = sbr.rel (!%p2883_p12) target bundleno = 511 (0x1ff), region = 105  ;;  %s2376_s15 = sshll.u32 (%p2883_p12), %s2744_s25, 4 }
 0x1f8   : > { %s1997_s7 = scalar_lea.vmem (%p2883_p12), %s3421_s3, %s2376_s15 }
 0x1fa   : > { %v2010_v4 = vld [vmem:[%s3190_s27] sm:$0xff] (%p2883_p12) }
 0x1fb   : > { %v2012_v5 = vld [vmem:[%s3190_s27 + $0x8] sm:$0xff] (%p2883_p12)  ;;  %2011 = vst [vmem:[%s1997_s7] sm:$0xff] (%p2883_p12), %v2010_v4 }
 0x1fc   : > { %v2014_v6 = vld [vmem:[%s3190_s27 + $0x10] sm:$0xff] (%p2883_p12)  ;;  %2013 = vst [vmem:[%s1997_s7 + $0x8] sm:$0xff] (%p2883_p12), %v2012_v5 }
 0x1fd   : > { %v2016_v7 = vld [vmem:[%s3190_s27 + $0x18] sm:$0xff] (%p2883_p12)  ;;  %2015 = vst [vmem:[%s1997_s7 + $0x20] sm:$0xff] (%p2883_p12), %v2014_v6 }
 0x1fe   : > { %2017 = vst [vmem:[%s1997_s7 + $0x28] sm:$0xff] %v2016_v7 }
 0x1ff PF: > { %s16_s28 = sadd.s32 1, %s2756_s28   ;;  %s3438_s25 = sld [smem:[#allocation8_spill]] }
 0x200   : > { %p13_p6 = scmp.ge.s32.totalorder %s16_s28, 10   ;;  %s3439_s30 = sld [smem:[#allocation5_spill]] }
 0x201   : > { %s3440_s8 = sld [smem:[#allocation6_spill]]  ;;  %s3441_s27 = sld [smem:[#allocation7_spill]] }
 0x202   : > { %s3442_s18 = smov %s2720_s19  ;;  %s3443_s19 = smov %s2881_s17 }
 0x203   : > { %s3444_s20 = smov %s2728_s21  ;;  %s3445_s21 = smov %s2878_s16 }
 0x204   : > { %s3446_s22 = smov %s2736_s23  ;;  %s3448_s24 = smov %s2748_s26 }
 0x205   : > { %s3447_s23 = smov %s3438_s25  ;;  %15 = sbr.rel (!%p13_p6) target bundleno = 9 (0x9), region = 194 }
 0x206   : > { %s3449_s25 = smov %s3439_s30 }
 0x207   : > { %s3450_s26 = smov %s3440_s8 }

// kernel: patchgan_discriminator.9
= control target key start
LH: loop header
LB: loop body
LE: loop exit
PB: predicated region body
PF: predicated region fallthrough
CT: control target
= control target key end

     0   :  { %s1519_s12 = smov 0   ;;  %s1521_s13 = smov 0   ;;  %s1695_s0 = inlined_call_operand.vmem [shape: bf16[16,8192], index: 0, kind: input, shape index: {}]   ;;  %s1696_s1 = inlined_call_operand.vmem [shape: bf16[8192,128], index: 1, kind: input, shape index: {}]   ;;  %s1697_s2 = inlined_call_operand.vmem [shape: f32[1,128], index: 2, kind: input, shape index: {}]   ;;  %s1698_s3 = inlined_call_operand.vmem [shape: f32[16,128], index: 3, kind: output, shape index: {}]  }
   0x1   :  { %s1523_s14 = smov 0   ;;  %s1525_s15 = smov 0  }
   0x2   :  { %s1527_s16 = smov 0  }
   0x3 LB: > { %s25_s17 = sadd.s32 1, %s1492_s15  ;;  %p48_p1 = scmp.ne.s32.totalorder %s1484_s13, %s1480_s12  ;;  %s1496_s16 = sphi %s1527_s16, %s13_s16   ;;  %s1492_s15 = sphi %s1525_s15, %s1702_s15   ;;  %s1488_s14 = sphi %s1523_s14, %s1701_s14   ;;  %s1484_s13 = sphi %s1521_s13, %s1700_s13   ;;  %s1480_s12 = sphi %s1519_s12, %s1699_s12  }
   0x4   : > { %p26_p0 = scmp.ge.s32.totalorder %s25_s17, 8  ;;  %p49_p2 = scmp.eq.s32.totalorder %s1496_s16, 0 }
   0x5   : > { %s41_s19 = sadd.s32 1, %s1484_s13  ;;  %p1167_p5 = scmp.ge.s32.totalorder %s1496_s16, 8 }
   0x6   : > { %s1704_s17 = smov (%p26_p0, %s25_s17), 0  ;;  %p50_p3 = por %p49_p2, %p48_p1 }
   0x7   : > { %s37_s18 = ssub.s32 %s1492_s15, %s1704_s17  ;;  %162 = sbr.rel (%p1167_p5) target bundleno = 22 (0x16), region = 20 }
   0x8   : > { %p39_p4 = scmp.eq.s32.totalorder %s37_s18, 0 }
   0xa   : > { %s1554_s20 = scalar_select %p39_p4, %s1484_s13, %s41_s19  }
   0xe   : > { %165 = sbr.rel (!%p50_p3) target bundleno = 22 (0x16), region = 24  ;;  %s167_s21 = sand.u32 (%p50_p3), 1, %s1484_s13  }
   0xf   : > { %s1256_s22 = sshll.u32 (%p50_p3), %s1492_s15, 5  ;;  %s1168_s23 = sshll.u32 (%p50_p3), %s167_s21, 6 }
  0x10   : > { %s175_s26 = scalar_lea.vmem (%p50_p3), %s1695_s0, %s1256_s22  ;;  %s169_s27 = scalar_lea.vmem (%p50_p3), [#allocation2], %s1168_s23 }
  0x11   : > { %v188_v0 = vld [vmem:[%s175_s26] sm:$0xff] (%p50_p3)  ;;  %v190_v1 = vld [vmem:[%s175_s26 + $0x8] sm:$0xff] (%p50_p3)  ;;  %v192_v2 = vld [vmem:[%s175_s26 + $0x10] sm:$0xff] (%p50_p3) }
  0x12   : > { %189 = vst [vmem:[%s169_s27] sm:$0xff] (%p50_p3), %v188_v0  ;;  %191 = vst [vmem:[%s169_s27 + $0x8] sm:$0xff] (%p50_p3), %v190_v1  ;;  %v194_v3 = vld [vmem:[%s175_s26 + $0x18] sm:$0xff] (%p50_p3)  ;;  %v196_v4 = vld [vmem:[%s175_s26 + $0x100] sm:$0xff] (%p50_p3) }
  0x13   : > { %193 = vst [vmem:[%s169_s27 + $0x10] sm:$0xff] (%p50_p3), %v192_v2  ;;  %v198_v5 = vld [vmem:[%s175_s26 + $0x108] sm:$0xff] (%p50_p3)  ;;  %195 = vst [vmem:[%s169_s27 + $0x18] sm:$0xff] (%p50_p3), %v194_v3  ;;  %v200_v6 = vld [vmem:[%s175_s26 + $0x110] sm:$0xff] (%p50_p3) }
  0x14   : > { %197 = vst [vmem:[%s169_s27 + $0x20] sm:$0xff] (%p50_p3), %v196_v4  ;;  %199 = vst [vmem:[%s169_s27 + $0x28] sm:$0xff] (%p50_p3), %v198_v5  ;;  %v202_v7 = vld [vmem:[%s175_s26 + $0x118] sm:$0xff] (%p50_p3) }
  0x15   : > { %201 = vst [vmem:[%s169_s27 + $0x30] sm:$0xff] %v200_v6  ;;  %203 = vst [vmem:[%s169_s27 + $0x38] sm:$0xff] %v202_v7 }
  0x16 PF: > { %p1171_p6 = scmp.ge.s32.totalorder %s1496_s16, 1  ;;  %p220_p7 = scmp.lt.s32.totalorder %s1496_s16, 9 }
  0x18   : > { %p221_p8 = pnand %p1171_p6, %p220_p7 }
  0x19   : > { %s227_s28 = sand.u32 (!%p221_p8), 1, %s1480_s12   ;;  %s1173_s29 = sshll.u32 (!%p221_p8), %s1488_s14, 7 }
  0x1a   : > { %224 = sbr.rel (%p221_p8) target bundleno = 366 (0x16e), region = 51  ;;  %s1172_s30 = sshll.u32 (!%p221_p8), %s227_s28, 6 }
  0x1b   : > { %p267_p9 = scmp.lt.s32.totalorder (!%p221_p8), %s1173_s29, 1023  ;;  %s1571_s8 = scalar_lea.vmem (!%p221_p8), [#allocation2], %s1172_s30 }
  0x1c   : > { %p1175_p10 = scmp.ne.s32.totalorder (!%p221_p8), %s1488_s14, 0 }
  0x21   : > { %s1706_s29 = smov (!%p267_p9, %s1173_s29), 1023  ;;  %291 = sbr.rel (%p1175_p10) target bundleno = 40 (0x28), region = 59 }
  0x22   : > { %s1174_s4 = sshll.u32 %s1706_s29, 2  ;;  %v1498_v8 = vmov (!%p1175_p10), 0.0  }
  0x23   : > { %s1569_s7 = scalar_lea.vmem %s1696_s1, %s1174_s4  ;;  %292 = vst [vmem:[%s1698_s3] sm:$0xff] (!%p1175_p10), %v1498_v8  ;;  %293 = vst [vmem:[%s1698_s3 + $0x8] sm:$0xff] (!%p1175_p10), %v1498_v8 }
  0x28 PF: > { %v1386_v9 = vld [vmem:[%s1569_s7 + $0x40] sm:$0xff]   ;;  %v1390_v13 = vld [vmem:[%s1569_s7 + $0x48] sm:$0xff]   ;;  %v1394_v17 = vld [vmem:[%s1569_s7 + $0x50] sm:$0xff]   ;;  %p1248_p11 = scmp.ne.s32.totalorder %s1488_s14, 7 }
  0x29   : > { %v1387_v10 = vld [vmem:[%s1569_s7 + $0xc0] sm:$0xff]   ;;  %1257 = vmatprep.subr.bf16.mxu0 %v1386_v9  ;;  %v1391_v14 = vld [vmem:[%s1569_s7 + $0xc8] sm:$0xff]   ;;  %v1395_v18 = vld [vmem:[%s1569_s7 + $0xd0] sm:$0xff]  }
  0x2a   : > { %v1388_v11 = vld [vmem:[%s1569_s7] sm:$0xff]   ;;  %1279 = vmatprep.subr.bf16.mxu1 %v1387_v10  ;;  %v1392_v15 = vld [vmem:[%s1569_s7 + $0x8] sm:$0xff]   ;;  %v1396_v19 = vld [vmem:[%s1569_s7 + $0x10] sm:$0xff]  }
  0x2b   : > { %v1389_v12 = vld [vmem:[%s1569_s7 + $0x80] sm:$0xff]   ;;  %1258 = vmatpush3.bf16.msra.mxu0 %v1388_v11  ;;  %v1393_v16 = vld [vmem:[%s1569_s7 + $0x88] sm:$0xff]   ;;  %v1397_v20 = vld [vmem:[%s1569_s7 + $0x90] sm:$0xff]  }
  0x2c   : > { %1280 = vmatpush3.bf16.msra.mxu1 %v1389_v12  ;;  %1259 = vmatprep.subr.bf16.mxu0 %v1390_v13  ;;  %v1398_v21 = vld [vmem:[%s1569_s7 + $0x58] sm:$0xff]   ;;  %v1402_v25 = vld [vmem:[%s1569_s7 + $0x60] sm:$0xff]   ;;  %v1406_v29 = vld [vmem:[%s1569_s7 + $0x68] sm:$0xff]  }
  0x2d   : > { %1281 = vmatprep.subr.bf16.mxu1 %v1391_v14  ;;  %v1399_v22 = vld [vmem:[%s1569_s7 + $0xd8] sm:$0xff]   ;;  %v1403_v26 = vld [vmem:[%s1569_s7 + $0xe0] sm:$0xff]   ;;  %v1407_v30 = vld [vmem:[%s1569_s7 + $0xe8] sm:$0xff]  }
  0x2e   : > { %v1400_v23 = vld [vmem:[%s1569_s7 + $0x18] sm:$0xff]   ;;  %v1404_v27 = vld [vmem:[%s1569_s7 + $0x20] sm:$0xff]   ;;  %v1408_v31 = vld [vmem:[%s1569_s7 + $0x28] sm:$0xff]  }
  0x2f   : > { %1260 = vmatpush3.bf16.msra.mxu0 %v1392_v15  ;;  %v1401_v24 = vld [vmem:[%s1569_s7 + $0x98] sm:$0xff]   ;;  %v1405_v28 = vld [vmem:[%s1569_s7 + $0xa0] sm:$0xff]   ;;  %v1409_v32 = vld [vmem:[%s1569_s7 + $0xa8] sm:$0xff]  }
  0x30   : > { %1282 = vmatpush3.bf16.msra.mxu1 %v1393_v16  ;;  %1261 = vmatprep.subr.bf16.mxu0 %v1394_v17  ;;  %v1410_v33 = vld [vmem:[%s1569_s7 + $0x70] sm:$0xff]   ;;  %v1414_v37 = vld [vmem:[%s1569_s7 + $0x78] sm:$0xff]   ;;  %v296_v41 = vld [vmem:[%s1571_s8] sm:$0xff] }
  0x31   : > { %1283 = vmatprep.subr.bf16.mxu1 %v1395_v18  ;;  %v1411_v34 = vld [vmem:[%s1569_s7 + $0xf0] sm:$0xff]   ;;  %v1415_v38 = vld [vmem:[%s1569_s7 + $0xf8] sm:$0xff]   ;;  %v300_v42 = vld [vmem:[%s1571_s8 + $0x20] sm:$0xff] }
  0x32   : > { %v1412_v35 = vld [vmem:[%s1569_s7 + $0x30] sm:$0xff]   ;;  %v1416_v39 = vld [vmem:[%s1569_s7 + $0x38] sm:$0xff]   ;;  %v297_v43 = vld [vmem:[%s1571_s8 + $0x8] sm:$0xff]  ;;  %v1176_v44 = vcombine.low %v296_v41, %v300_v42  ;;  %v1177_v45 = vcombine.high %v296_v41, %v300_v42 }
  0x33   : > { %1262 = vmatpush3.bf16.msra.mxu0 %v1396_v19  ;;  %v1413_v36 = vld [vmem:[%s1569_s7 + $0xb0] sm:$0xff]   ;;  %v1417_v40 = vld [vmem:[%s1569_s7 + $0xb8] sm:$0xff]   ;;  %v301_v46 = vld [vmem:[%s1571_s8 + $0x28] sm:$0xff] }
  0x34   : > { %1284 = vmatpush3.bf16.msra.mxu1 %v1397_v20  ;;  %1263 = vmatprep.subr.bf16.mxu0 %v1398_v21  ;;  %v1178_v47 = vcombine.low %v297_v43, %v301_v46  ;;  %v1179_v48 = vcombine.high %v297_v43, %v301_v46  ;;  %v1418_v49 = vld [vmem:[%s1569_s7 + $0x140] sm:$0xff]   ;;  %v1422_v53 = vld [vmem:[%s1569_s7 + $0x148] sm:$0xff]   ;;  %v1426_v57 = vld [vmem:[%s1569_s7 + $0x150] sm:$0xff]  }
  0x35   : > { %1285 = vmatprep.subr.bf16.mxu1 %v1399_v22  ;;  %888 = vmatprep.mubr.bf16.mxu0 %v1177_v45  ;;  %v1419_v50 = vld [vmem:[%s1569_s7 + $0x1c0] sm:$0xff]   ;;  %v1423_v54 = vld [vmem:[%s1569_s7 + $0x1c8] sm:$0xff]   ;;  %v1427_v58 = vld [vmem:[%s1569_s7 + $0x1d0] sm:$0xff]  }
  0x36   : > { %929 = vmatprep.mubr.bf16.mxu1 %v1179_v48  ;;  %v1420_v51 = vld [vmem:[%s1569_s7 + $0x100] sm:$0xff]   ;;  %v1424_v55 = vld [vmem:[%s1569_s7 + $0x108] sm:$0xff]   ;;  %v1428_v59 = vld [vmem:[%s1569_s7 + $0x110] sm:$0xff]  }
  0x37   : > { %1264 = vmatpush3.bf16.msra.mxu0 %v1400_v23  ;;  %v1421_v52 = vld [vmem:[%s1569_s7 + $0x180] sm:$0xff]   ;;  %v1425_v56 = vld [vmem:[%s1569_s7 + $0x188] sm:$0xff]   ;;  %v1429_v60 = vld [vmem:[%s1569_s7 + $0x190] sm:$0xff]  }
  0x38   : > { %1286 = vmatpush3.bf16.msra.mxu1 %v1401_v24  ;;  %1265 = vmatprep.subr.bf16.mxu0 %v1402_v25  ;;  %v1430_v61 = vld [vmem:[%s1569_s7 + $0x158] sm:$0xff]   ;;  %v1434_v1 = vld [vmem:[%s1569_s7 + $0x160] sm:$0xff]   ;;  %v1438_v5 = vld [vmem:[%s1569_s7 + $0x168] sm:$0xff]  }
  0x39   : > { %1287 = vmatprep.subr.bf16.mxu1 %v1403_v26  ;;  %v1431_v62 = vld [vmem:[%s1569_s7 + $0x1d8] sm:$0xff]   ;;  %v1435_v2 = vld [vmem:[%s1569_s7 + $0x1e0] sm:$0xff]   ;;  %v1439_v6 = vld [vmem:[%s1569_s7 + $0x1e8] sm:$0xff]  }
  0x3a   : > { %v1432_v63 = vld [vmem:[%s1569_s7 + $0x118] sm:$0xff]   ;;  %v1436_v3 = vld [vmem:[%s1569_s7 + $0x120] sm:$0xff]   ;;  %v1440_v7 = vld [vmem:[%s1569_s7 + $0x128] sm:$0xff]  }
  0x3b   : > { %1266 = vmatpush3.bf16.msra.mxu0 %v1404_v27  ;;  %v1433_v0 = vld [vmem:[%s1569_s7 + $0x198] sm:$0xff]   ;;  %v1437_v4 = vld [vmem:[%s1569_s7 + $0x1a0] sm:$0xff]   ;;  %v1441_v8 = vld [vmem:[%s1569_s7 + $0x1a8] sm:$0xff]  }
  0x3c   : > { %1288 = vmatpush3.bf16.msra.mxu1 %v1405_v28  ;;  %1267 = vmatprep.subr.bf16.mxu0 %v1406_v29  ;;  %v1442_v9 = vld [vmem:[%s1569_s7 + $0x170] sm:$0xff]   ;;  %v1446_v13 = vld [vmem:[%s1569_s7 + $0x178] sm:$0xff]  }
  0x3d   : > { %1289 = vmatprep.subr.bf16.mxu1 %v1407_v30  ;;  %v1443_v10 = vld [vmem:[%s1569_s7 + $0x1f0] sm:$0xff]   ;;  %v1447_v14 = vld [vmem:[%s1569_s7 + $0x1f8] sm:$0xff]  }
  0x3e   : > { %v1444_v11 = vld [vmem:[%s1569_s7 + $0x130] sm:$0xff]   ;;  %v1448_v15 = vld [vmem:[%s1569_s7 + $0x138] sm:$0xff]  }
  0x3f   : > { %1268 = vmatpush3.bf16.msra.mxu0 %v1408_v31  ;;  %v1445_v12 = vld [vmem:[%s1569_s7 + $0x1b0] sm:$0xff]   ;;  %v1449_v16 = vld [vmem:[%s1569_s7 + $0x1b8] sm:$0xff]  }
  0x40   : > { %1290 = vmatpush3.bf16.msra.mxu1 %v1409_v32  ;;  %1269 = vmatprep.subr.bf16.mxu0 %v1410_v33  ;;  %v298_v17 = vld [vmem:[%s1571_s8 + $0x10] sm:$0xff]  ;;  %v299_v21 = vld [vmem:[%s1571_s8 + $0x18] sm:$0xff] }
  0x41   : > { %1291 = vmatprep.subr.bf16.mxu1 %v1411_v34  ;;  %v302_v18 = vld [vmem:[%s1571_s8 + $0x30] sm:$0xff]  ;;  %v303_v22 = vld [vmem:[%s1571_s8 + $0x38] sm:$0xff] }
  0x42   : > { %v1180_v19 = vcombine.low %v298_v17, %v302_v18  ;;  %v1181_v20 = vcombine.high %v298_v17, %v302_v18  ;;  %v1182_v23 = vcombine.low %v299_v21, %v303_v22  ;;  %v1183_v24 = vcombine.high %v299_v21, %v303_v22 }
  0x43   : > { %1270 = vmatpush3.bf16.msra.mxu0 %v1412_v35 }
  0x44   : > { %1292 = vmatpush3.bf16.msra.mxu1 %v1413_v36  ;;  %1271 = vmatprep.subr.bf16.mxu0 %v1414_v37 }
  0x45   : > { %1293 = vmatprep.subr.bf16.mxu1 %v1415_v38 }
  0x47   : > { %1272 = vmatpush3.bf16.msra.mxu0 %v1416_v39 }
  0x48   : > { %1294 = vmatpush3.bf16.msra.mxu1 %v1417_v40  ;;  %1301 = vmatprep.subr.bf16.mxu0 %v1418_v49 }
  0x49   : > { %1323 = vmatprep.subr.bf16.mxu1 %v1419_v50 }
  0x4a   : > { %889 = vmatmul.mubr.bf16.vlgmr.msra.gmra.mrb[0].mxu0 %v1176_v44 }
  0x4b   : > { %930 = vmatmul.mubr.bf16.vlgmr.msra.gmra.mrb[0].mxu1 %v1178_v47  ;;  %1302 = vmatpush3.bf16.msra.mxu0 %v1420_v51  ;;  %v294_v51 = vld [vmem:[%s1698_s3] sm:$0xff] }
  0x4c   : > { %1324 = vmatpush3.bf16.msra.mxu1 %v1421_v52  ;;  %1303 = vmatprep.subr.bf16.mxu0 %v1422_v53 }
  0x4d   : > { %1325 = vmatprep.subr.bf16.mxu1 %v1423_v54  ;;  %970 = vmatprep.mubr.bf16.mxu0 %v1181_v20 }
  0x4e   : > { %1011 = vmatprep.mubr.bf16.mxu1 %v1183_v24 }
  0x4f   : > { %1304 = vmatpush3.bf16.msra.mxu0 %v1424_v55  ;;  %v295_v55 = vld [vmem:[%s1698_s3 + $0x8] sm:$0xff] }
  0x50   : > { %1326 = vmatpush3.bf16.msra.mxu1 %v1425_v56  ;;  %1305 = vmatprep.subr.bf16.mxu0 %v1426_v57 }
  0x51   : > { %1327 = vmatprep.subr.bf16.mxu1 %v1427_v58 }
  0x53   : > { %1306 = vmatpush3.bf16.msra.mxu0 %v1428_v59 }
  0x54   : > { %1328 = vmatpush3.bf16.msra.mxu1 %v1429_v60  ;;  %1307 = vmatprep.subr.bf16.mxu0 %v1430_v61  ;;  %v1249_v60 = vld [vmem:[%s1697_s2] ss:$0 sm:$0xff] (!%p1248_p11) }
  0x55   : > { %1329 = vmatprep.subr.bf16.mxu1 %v1431_v62 }
  0x57   : > { %1308 = vmatpush3.bf16.msra.mxu0 %v1432_v63 }
  0x58   : > { %1330 = vmatpush3.bf16.msra.mxu1 %v1433_v0  ;;  %1309 = vmatprep.subr.bf16.mxu0 %v1434_v1 }
  0x59   : > { %1331 = vmatprep.subr.bf16.mxu1 %v1435_v2 }
  0x5b   : > { %1310 = vmatpush3.bf16.msra.mxu0 %v1436_v3 }
  0x5c   : > { %1332 = vmatpush3.bf16.msra.mxu1 %v1437_v4  ;;  %1311 = vmatprep.subr.bf16.mxu0 %v1438_v5 }
  0x5d   : > { %1333 = vmatprep.subr.bf16.mxu1 %v1439_v6 }
  0x5f   : > { %1312 = vmatpush3.bf16.msra.mxu0 %v1440_v7 }
  0x60   : > { %1334 = vmatpush3.bf16.msra.mxu1 %v1441_v8  ;;  %1313 = vmatprep.subr.bf16.mxu0 %v1442_v9 }
  0x61   : > { %1335 = vmatprep.subr.bf16.mxu1 %v1443_v10 }
  0x63   : > { %1314 = vmatpush3.bf16.msra.mxu0 %v1444_v11 }
  0x64   : > { %1336 = vmatpush3.bf16.msra.mxu1 %v1445_v12  ;;  %1315 = vmatprep.subr.bf16.mxu0 %v1446_v13 }
  0x65   : > { %1337 = vmatprep.subr.bf16.mxu1 %v1447_v14 }
  0x67   : > { %1316 = vmatpush3.bf16.msra.mxu0 %v1448_v15 }
  0x68   : > { %1338 = vmatpush3.bf16.msra.mxu1 %v1449_v16 }
  0x6a   : > { %971 = vmatmul.mubr.bf16.vlgmr.msra.gmra.mrb[4].mxu0 %v1180_v19 }
  0x6b   : > { %1012 = vmatmul.mubr.bf16.vlgmr.msra.gmra.mrb[4].mxu1 %v1182_v23 }
 0x11d   : > { %v1273_v25 = vpop.f32.mrb[0].mxu0 }
 0x11e   : > { %v1295_v26 = vpop.f32.mrb[0].mxu1  ;;  %v1274_v27 = vpop.f32.mrb[1].mxu0 }
 0x11f   : > { %v1275_v28 = vadd.f32 %v1274_v27, %v1273_v25  ;;  %v1296_v29 = vpop.f32.mrb[1].mxu1  ;;  %v1276_v30 = vpop.f32.mrb[2].mxu0 }
 0x120   : > { %v1297_v31 = vadd.f32 %v1296_v29, %v1295_v26  ;;  %v1298_v32 = vpop.f32.mrb[2].mxu1  ;;  %v1277_v33 = vpop.f32.mrb[3].mxu0 }
 0x121   : > { %v1278_v34 = vadd.f32 %v1277_v33, %v1276_v30  ;;  %v1299_v35 = vpop.f32.mrb[3].mxu1 }
 0x122   : > { %v932_v36 = vadd.f32 %v1297_v31, %v1275_v28  ;;  %v1300_v37 = vadd.f32 %v1299_v35, %v1298_v32 }
 0x124   : > { %v935_v38 = vadd.f32 %v1300_v37, %v1278_v34 }
 0x13d   : > { %v1317_v39 = vpop.f32.mrb[4].mxu0 }
 0x13e   : > { %v1339_v40 = vpop.f32.mrb[4].mxu1  ;;  %v1318_v41 = vpop.f32.mrb[5].mxu0 }
 0x13f   : > { %v1319_v42 = vadd.f32 %v1318_v41, %v1317_v39  ;;  %v1340_v43 = vpop.f32.mrb[5].mxu1  ;;  %v1320_v44 = vpop.f32.mrb[6].mxu0 }
 0x140   : > { %v1341_v45 = vadd.f32 %v1340_v43, %v1339_v40  ;;  %v1342_v46 = vpop.f32.mrb[6].mxu1  ;;  %v1321_v47 = vpop.f32.mrb[7].mxu0 }
 0x141   : > { %v973_v48 = vadd.f32 %v1319_v42, %v932_v36  ;;  %v1322_v49 = vadd.f32 %v1321_v47, %v1320_v44  ;;  %v1343_v50 = vpop.f32.mrb[7].mxu1 }
 0x142   : > { %v1344_v52 = vadd.f32 %v1343_v50, %v1342_v46 }
 0x143   : > { %v1014_v53 = vadd.f32 %v1341_v45, %v973_v48  ;;  %v976_v54 = vadd.f32 %v1322_v49, %v935_v38  ;;  %1027 = sbr.rel (%p1248_p11) target bundleno = 366 (0x16e), region = 63 }
 0x145   : > { %v1020_v56 = vadd.f32 %v1014_v53, %v294_v51  ;;  %v1017_v57 = vadd.f32 %v1344_v52, %v976_v54 }
 0x147   : > { %1022 = vst [vmem:[%s1698_s3] sm:$0xff] %v1020_v56  ;;  %v1021_v58 = vadd.f32 %v1017_v57, %v295_v55 }
 0x149   : > { %1023 = vst [vmem:[%s1698_s3 + $0x8] sm:$0xff] %v1021_v58 }
 0x14e   : > { %v1028_v59 = vld [vmem:[%s1698_s3] sm:$0xff] }
 0x14f   : > { %v1037_v62 = vadd.f32 %v1249_v60, %v1028_v59 }
 0x150   : > { %v1029_v61 = vld [vmem:[%s1698_s3 + $0x8] sm:$0xff] }
 0x151   : > { %v1038_v63 = vadd.f32 %v1249_v60, %v1029_v61  ;;  %v1250_v0 = vmul.f32 -1.442695, %v1037_v62 }
 0x153   : > { %v1251_v1 = vmul.f32 -1.442695, %v1038_v63  ;;  %1450 = vpow2.f32 %v1250_v0 }
 0x155   : > { %1452 = vpow2.f32 %v1251_v1 }
 0x15d   : > { %v1451_v2 = vpop.eup %1450 }
 0x15e   : > { %v1045_v4 = vadd.f32 1.0, %v1451_v2 }
 0x15f   : > { %v1453_v3 = vpop.eup %1452 }
 0x160   : > { %v1046_v5 = vadd.f32 1.0, %v1453_v3  ;;  %1454 = vrcp.f32 %v1045_v4 }
 0x162   : > { %1456 = vrcp.f32 %v1046_v5 }
 0x16a   : > { %v1455_v6 = vpop.eup %1454 }
 0x16b   : > { %1051 = vst [vmem:[%s1698_s3] sm:$0xff] %v1455_v6 }
 0x16c   : > { %v1457_v7 = vpop.eup %1456 }
 0x16d   : > { %1052 = vst [vmem:[%s1698_s3 + $0x8] sm:$0xff] %v1457_v7 }
 0x16e PF: > { %s13_s16 = sadd.s32 1, %s1496_s16   ;;  %s1699_s12 = smov %s1484_s13 }
 0x16f   : > { %p10_p12 = scmp.ge.s32.totalorder %s13_s16, 10   ;;  %s1700_s13 = smov %s1554_s20 }
 0x170   : > { %s1701_s14 = smov %s1492_s15  ;;  %s1702_s15 = smov %s1704_s17 }
 0x171   :  { %12 = sbr.rel (!%p10_p12) target bundleno = 3 (0x3), region = 104 }

</bundles_post_ra>
